<compile_context>
chip_gen: v7x
topology: tpu7x:2x2x1
jax: 0.10.0
libtpu: 0.0.40
codegen_flags: <defaults>
</compile_context>

<pallas_src>
import functools

import jax
import jax.numpy as jnp
from jax.experimental import pallas as pl
from jax.experimental.pallas import tpu as pltpu


def traj_lstm_kernel(obs_ref, wih_ref, whh_ref, a_ref, b_ref, wdec_ref, bdec_ref,
                     out_ref, *, hidden_pad, pred_len):
    Hp = hidden_pad
    T, TB, D = obs_ref.shape                     # time-major obs block

    obs = obs_ref[...].astype(jnp.float32)       # (T, TB, D)
    wih = wih_ref[...]                           # (D, 4Hp)   i/f/o cols pre-scaled by 0.5
    whh = whh_ref[...]                           # (Hp, 4Hp)  i/f/o cols pre-scaled by 0.5
    a_mat = a_ref[...]                           # (Hp, 4Hp)  = whh + wdec @ wih (folded)
    b = b_ref[...]                               # (1, 4Hp)
    wdec = wdec_ref[...]                         # (Hp, 2)
    bdec = bdec_ref[...]                         # (1, 2)

    wih_rows = [wih[d:d + 1, :] for d in range(D)]   # hoisted (1, 4Hp) row slices

    def xpath(pos, base):
        # x-path via VPU broadcast-FMAs (D == 2): no degenerate-K MXU pass.
        acc = base
        for d in range(D):
            acc = acc + pos[:, d:d + 1] * wih_rows[d]
        return acc

    def nonlin(gates, c):
        # Single EUP tanh over the whole (TB, 4Hp) gate vector.
        # sigmoid(x) = 0.5*tanh(x/2) + 0.5; the x/2 is folded into the weights.
        tg = jnp.tanh(gates)
        sg = 0.5 * tg + 0.5
        i_g = sg[:, 0 * Hp:1 * Hp]               # all slices are whole-vreg extracts
        f_g = sg[:, 1 * Hp:2 * Hp]
        g_g = tg[:, 2 * Hp:3 * Hp]
        o_g = sg[:, 3 * Hp:4 * Hp]
        c_new = f_g * c + i_g * g_g
        h_new = o_g * jnp.tanh(c_new)
        return h_new, c_new

    # Zero-init of h/c is required by the padding invariant (see header comment).
    h = jnp.zeros((TB, Hp), jnp.float32)
    c = jnp.zeros((TB, Hp), jnp.float32)

    # ---- Encoder: one h@whh MXU matmul per step; x-path is input-only work ----
    # that the scheduler can pull into the recurrence slack.
    for t in range(T):
        gate_x = xpath(obs[t], b)                             # off-chain (inputs only)
        gates = gate_x + jnp.dot(h, whh, preferred_element_type=jnp.float32)
        h, c = nonlin(gates, c)

    # ---- Autoregressive decoder with the delta head folded into A. ----------
    # Q carry: Q_{s-1} + h_s @ A == gate_x_s + h_s @ whh  (exact algebraic fold).
    # A "phantom" delta from the encoder-final hidden makes step 0 uniform.
    last_pos = obs[T - 1]                                     # (TB, D)
    delta = jnp.dot(h, wdec, preferred_element_type=jnp.float32) + bdec   # phantom
    q = xpath(last_pos - delta + bdec, b)                     # Q_{-1}

    for s in range(pred_len):
        # Serial chain: h -> h@A -> nonlin -> h.  Everything else has slack.
        gates = q + jnp.dot(h, a_mat, preferred_element_type=jnp.float32)
        q = xpath(delta, q)                                   # feeds step s+1 only
        h, c = nonlin(gates, c)
        delta = jnp.dot(h, wdec, preferred_element_type=jnp.float32) + bdec  # off-chain
        last_pos = last_pos + delta                           # off-chain
        out_ref[:, 2 * s:2 * s + 2] = last_pos.astype(out_ref.dtype)        # off-chain store


def _pad_and_fold_params(wih, whh, bias, wdec, hidden_dim, hidden_pad):
    """Pad each gate block H->Hp (lane alignment), fold the sigmoid 0.5 input
    scale into the i/f/o gate columns of W_ih, W_hh and the combined bias, and
    build the decode matrix A = W_hh + W_dec @ W_ih (folded).  Padded W_hh / A /
    W_dec rows stay zero so padded hidden lanes never feed back."""
    H, Hp = hidden_dim, hidden_pad

    def per_gate(w):
        blocks = []
        for g in range(4):
            blk = w[:, g * H:(g + 1) * H]
            if g != 2:                          # i, f, o use sigmoid -> fold the 0.5
                blk = blk * 0.5
            blocks.append(jnp.pad(blk, ((0, 0), (0, Hp - H))))
        return jnp.concatenate(blocks, axis=1)

    wih_p = per_gate(wih)                                        # (D, 4Hp)
    whh_p = jnp.pad(per_gate(whh), ((0, Hp - H), (0, 0)))        # (Hp, 4Hp)
    b_p = per_gate(bias)                                         # (1, 4Hp)
    wdec_p = jnp.pad(wdec, ((0, Hp - H), (0, 0)))                # (Hp, 2)
    a_p = whh_p + wdec_p @ wih_p                                 # (Hp, 4Hp)
    return wih_p, whh_p, a_p, b_p, wdec_p


def _default_batch_block(batch):
    """Split the batch only when a 2nd TensorCore exists to absorb it (v7x);
    on 1-TC parts (v5e/v6e) the grid is a serial loop and one block is best."""
    try:
        kind = jax.devices()[0].device_kind.lower()
    except Exception:
        kind = ""
    two_tensorcores = ("v7" in kind) or ("7x" in kind)
    if two_tensorcores and batch >= 16 and batch % 16 == 0:
        return batch // 2          # multiple of 8, gives >= 2 "parallel" grid points
    return batch


def trajectory_lstm_forward(obs, wih, whh, bias, wdec, bdec, pred_len,
                            batch_block=None):
    B, T, D = obs.shape
    H = whh.shape[0]
    Hp = max(((H + 127) // 128) * 128, 128)    # lane-aligned hidden width

    wih_p, whh_p, a_p, b_p, wdec_p = _pad_and_fold_params(wih, whh, bias, wdec, H, Hp)
    obs_t = jnp.transpose(obs, (1, 0, 2))      # time-major: (T, B, D)

    TB = _default_batch_block(B) if batch_block is None else batch_block
    assert B % TB == 0, "batch must be a multiple of batch_block"
    grid = (B // TB,)

    kernel = functools.partial(traj_lstm_kernel, hidden_pad=Hp, pred_len=pred_len)

    def full_spec(arr):
        nd = arr.ndim
        return pl.BlockSpec(arr.shape, lambda i, _nd=nd: (0,) * _nd)

    out_flat = pl.pallas_call(
        kernel,
        out_shape=jax.ShapeDtypeStruct((B, pred_len * 2), jnp.float32),
        grid=grid,
        in_specs=[
            pl.BlockSpec((T, TB, D), lambda i: (0, i, 0)),   # batch-blocked obs
            full_spec(wih_p),
            full_spec(whh_p),
            full_spec(a_p),
            full_spec(b_p),
            full_spec(wdec_p),
            full_spec(bdec),
        ],
        out_specs=pl.BlockSpec((TB, pred_len * 2), lambda i: (i, 0)),
        compiler_params=pltpu.CompilerParams(
            dimension_semantics=("parallel",)),  # shards batch blocks across v7x's 2 TCs
    )(obs_t, wih_p, whh_p, a_p, b_p, wdec_p, bdec)

    return out_flat.reshape(B, pred_len, 2)


def reference_forward(obs, wih, whh, b, wdec, bdec, pred_len):
    """Pure-JAX reference matching PyTorch LSTM semantics (unpadded params)."""
    B, T, D = obs.shape
    H = whh.shape[0]

    def cell(x, h, c):
        gates = x @ wih + h @ whh + b
        i_g = jax.nn.sigmoid(gates[:, :H])
        f_g = jax.nn.sigmoid(gates[:, H:2 * H])
        g_g = jnp.tanh(gates[:, 2 * H:3 * H])
        o_g = jax.nn.sigmoid(gates[:, 3 * H:])
        c = f_g * c + i_g * g_g
        h = o_g * jnp.tanh(c)
        return h, c

    h = jnp.zeros((B, H), jnp.float32)
    c = jnp.zeros((B, H), jnp.float32)
    for t in range(T):
        h, c = cell(obs[:, t, :], h, c)
    last = obs[:, -1, :]
    preds = []
    for _ in range(pred_len):
        h, c = cell(last, h, c)
        last = last + (h @ wdec + bdec)
        preds.append(last[:, None, :])
    return jnp.concatenate(preds, axis=1)


if __name__ == "__main__":
    # B = 8 fills the sublanes; module defaults: input_dim=2, hidden_dim=64, pred_len=12.
    B, T, D, H, PRED_LEN = 8, 8, 2, 64, 12

    key = jax.random.PRNGKey(0)
    keys = jax.random.split(key, 7)
    k = 1.0 / jnp.sqrt(jnp.float32(H))

    obs = jax.random.normal(keys[0], (B, T, D), jnp.float32)
    # Deterministic parameter init (PyTorch-style uniform(-1/sqrt(H), 1/sqrt(H))).
    wih = jax.random.uniform(keys[1], (D, 4 * H), jnp.float32, -k, k)
    whh = jax.random.uniform(keys[2], (H, 4 * H), jnp.float32, -k, k)
    b_ih = jax.random.uniform(keys[3], (4 * H,), jnp.float32, -k, k)
    b_hh = jax.random.uniform(keys[4], (4 * H,), jnp.float32, -k, k)
    bias = (b_ih + b_hh).reshape(1, 4 * H)
    wdec = jax.random.uniform(keys[5], (H, 2), jnp.float32, -k, k)
    bdec = jax.random.uniform(keys[6], (1, 2), jnp.float32, -k, k)

    out = trajectory_lstm_forward(obs, wih, whh, bias, wdec, bdec, PRED_LEN)
    out = jax.block_until_ready(out)

    ref = reference_forward(obs, wih, whh, bias, wdec, bdec, PRED_LEN)
    assert out.shape == (B, PRED_LEN, 2), out.shape
    assert jnp.allclose(out, ref, rtol=1e-3, atol=1e-3), "mismatch vs pure-JAX reference"

    # Also exercise the batch-blocked grid path (2 grid steps of TB=8; on v7x these
    # blocks shard across the two TensorCores via the 'parallel' axis).
    obs16 = jax.random.normal(jax.random.PRNGKey(1), (16, T, D), jnp.float32)
    out16 = trajectory_lstm_forward(obs16, wih, whh, bias, wdec, bdec, PRED_LEN,
                                    batch_block=8)
    out16 = jax.block_until_ready(out16)
    ref16 = reference_forward(obs16, wih, whh, bias, wdec, bdec, PRED_LEN)
    assert jnp.allclose(out16, ref16, rtol=1e-3, atol=1e-3), "mismatch (blocked grid)"

    print("KERNEL_OK")
</pallas_src>

<mosaic_0001>
module attributes {stable_mosaic.version = 11 : i64} {
  func.func @traj_lstm_kernel(%arg0: i32, %arg1: memref<8x8x2xf32, #tpu.memory_space<vmem>>, %arg2: memref<2x512xf32, #tpu.memory_space<vmem>>, %arg3: memref<128x512xf32, #tpu.memory_space<vmem>>, %arg4: memref<128x512xf32, #tpu.memory_space<vmem>>, %arg5: memref<1x512xf32, #tpu.memory_space<vmem>>, %arg6: memref<128x2xf32, #tpu.memory_space<vmem>>, %arg7: memref<1x2xf32, #tpu.memory_space<vmem>>, %arg8: memref<8x24xf32, #tpu.memory_space<vmem>>) attributes {dimension_semantics = [#tpu.dimension_semantics<parallel>], iteration_bounds = array<i64: 1>, scalar_prefetch = 0 : i64, scratch_operands = 0 : i64, tpu.core_type = #tpu.core_type<tc>, window_params = [{transform_indices = @transform_0, window_bounds = array<i64: 8, 8, 2>}, {pipeline_mode = #tpu.pipeline_mode<synchronous>, transform_indices = @transform_1, window_bounds = array<i64: 2, 512>}, {pipeline_mode = #tpu.pipeline_mode<synchronous>, transform_indices = @transform_2, window_bounds = array<i64: 128, 512>}, {pipeline_mode = #tpu.pipeline_mode<synchronous>, transform_indices = @transform_3, window_bounds = array<i64: 128, 512>}, {pipeline_mode = #tpu.pipeline_mode<synchronous>, transform_indices = @transform_4, window_bounds = array<i64: 1, 512>}, {pipeline_mode = #tpu.pipeline_mode<synchronous>, transform_indices = @transform_5, window_bounds = array<i64: 128, 2>}, {pipeline_mode = #tpu.pipeline_mode<synchronous>, transform_indices = @transform_6, window_bounds = array<i64: 1, 2>}, {transform_indices = @transform_7, window_bounds = array<i64: 8, 24>}]} {
    %c0 = arith.constant 0 : index
    %c0_0 = arith.constant 0 : index
    %c0_1 = arith.constant 0 : index
    %0 = vector.load %arg1[%c0, %c0_0, %c0_1] : memref<8x8x2xf32, #tpu.memory_space<vmem>>, vector<8x8x2xf32>
    %c0_2 = arith.constant 0 : index
    %c0_3 = arith.constant 0 : index
    %1 = vector.load %arg2[%c0_2, %c0_3] : memref<2x512xf32, #tpu.memory_space<vmem>>, vector<2x512xf32>
    %c0_4 = arith.constant 0 : index
    %c0_5 = arith.constant 0 : index
    %2 = vector.load %arg3[%c0_4, %c0_5] : memref<128x512xf32, #tpu.memory_space<vmem>>, vector<128x512xf32>
    %c0_6 = arith.constant 0 : index
    %c0_7 = arith.constant 0 : index
    %3 = vector.load %arg4[%c0_6, %c0_7] : memref<128x512xf32, #tpu.memory_space<vmem>>, vector<128x512xf32>
    %c0_8 = arith.constant 0 : index
    %c0_9 = arith.constant 0 : index
    %4 = vector.load %arg5[%c0_8, %c0_9] : memref<1x512xf32, #tpu.memory_space<vmem>>, vector<1x512xf32>
    %c0_10 = arith.constant 0 : index
    %c0_11 = arith.constant 0 : index
    %5 = vector.load %arg6[%c0_10, %c0_11] : memref<128x2xf32, #tpu.memory_space<vmem>>, vector<128x2xf32>
    %c0_12 = arith.constant 0 : index
    %c0_13 = arith.constant 0 : index
    %6 = vector.load %arg7[%c0_12, %c0_13] : memref<1x2xf32, #tpu.memory_space<vmem>>, vector<1x2xf32>
    %7 = vector.extract_strided_slice %1 {offsets = [0, 0], sizes = [1, 512], strides = [1, 1]} : vector<2x512xf32> to vector<1x512xf32>
    %8 = vector.extract_strided_slice %1 {offsets = [1, 0], sizes = [1, 512], strides = [1, 1]} : vector<2x512xf32> to vector<1x512xf32>
    %cst = arith.constant 0.000000e+00 : f32
    %9 = vector.broadcast %cst : f32 to vector<8x128xf32>
    %cst_14 = arith.constant 0.000000e+00 : f32
    %10 = vector.broadcast %cst_14 : f32 to vector<8x128xf32>
    %11 = vector.extract_strided_slice %0 {offsets = [0, 0, 0], sizes = [1, 8, 2], strides = [1, 1, 1]} : vector<8x8x2xf32> to vector<1x8x2xf32>
    %12 = vector.shape_cast %11 : vector<1x8x2xf32> to vector<8x2xf32>
    %13 = vector.extract_strided_slice %12 {offsets = [0, 0], sizes = [8, 1], strides = [1, 1]} : vector<8x2xf32> to vector<8x1xf32>
    %14 = vector.broadcast %13 : vector<8x1xf32> to vector<8x512xf32>
    %15 = vector.broadcast %7 : vector<1x512xf32> to vector<8x512xf32>
    %16 = arith.mulf %14, %15 : vector<8x512xf32>
    %17 = vector.broadcast %4 : vector<1x512xf32> to vector<8x512xf32>
    %18 = arith.addf %17, %16 : vector<8x512xf32>
    %19 = vector.extract_strided_slice %12 {offsets = [0, 1], sizes = [8, 1], strides = [1, 1]} : vector<8x2xf32> to vector<8x1xf32>
    %20 = vector.broadcast %19 : vector<8x1xf32> to vector<8x512xf32>
    %21 = vector.broadcast %8 : vector<1x512xf32> to vector<8x512xf32>
    %22 = arith.mulf %20, %21 : vector<8x512xf32>
    %23 = arith.addf %18, %22 : vector<8x512xf32>
    %cst_15 = arith.constant dense<0.000000e+00> : vector<8x512xf32>
    %24 = tpu.matmul %9, %2, %cst_15 {dimension_numbers = #tpu.dot_dimension_numbers<[1], [0], [0], [1], [0, 0, 1, 1], [], []>} : vector<8x128xf32>, vector<128x512xf32>, vector<8x512xf32> -> vector<8x512xf32>
    %25 = arith.addf %23, %24 : vector<8x512xf32>
    %26 = math.tanh %25 : vector<8x512xf32>
    %cst_16 = arith.constant 5.000000e-01 : f32
    %27 = vector.broadcast %cst_16 : f32 to vector<8x512xf32>
    %28 = arith.mulf %27, %26 : vector<8x512xf32>
    %cst_17 = arith.constant 5.000000e-01 : f32
    %29 = vector.broadcast %cst_17 : f32 to vector<8x512xf32>
    %30 = arith.addf %28, %29 : vector<8x512xf32>
    %31 = vector.extract_strided_slice %30 {offsets = [0, 0], sizes = [8, 128], strides = [1, 1]} : vector<8x512xf32> to vector<8x128xf32>
    %32 = vector.extract_strided_slice %30 {offsets = [0, 128], sizes = [8, 128], strides = [1, 1]} : vector<8x512xf32> to vector<8x128xf32>
    %33 = vector.extract_strided_slice %26 {offsets = [0, 256], sizes = [8, 128], strides = [1, 1]} : vector<8x512xf32> to vector<8x128xf32>
    %34 = vector.extract_strided_slice %30 {offsets = [0, 384], sizes = [8, 128], strides = [1, 1]} : vector<8x512xf32> to vector<8x128xf32>
    %35 = arith.mulf %32, %10 : vector<8x128xf32>
    %36 = arith.mulf %31, %33 : vector<8x128xf32>
    %37 = arith.addf %35, %36 : vector<8x128xf32>
    %38 = math.tanh %37 : vector<8x128xf32>
    %39 = arith.mulf %34, %38 : vector<8x128xf32>
    %40 = vector.extract_strided_slice %0 {offsets = [1, 0, 0], sizes = [1, 8, 2], strides = [1, 1, 1]} : vector<8x8x2xf32> to vector<1x8x2xf32>
    %41 = vector.shape_cast %40 : vector<1x8x2xf32> to vector<8x2xf32>
    %42 = vector.extract_strided_slice %41 {offsets = [0, 0], sizes = [8, 1], strides = [1, 1]} : vector<8x2xf32> to vector<8x1xf32>
    %43 = vector.broadcast %42 : vector<8x1xf32> to vector<8x512xf32>
    %44 = vector.broadcast %7 : vector<1x512xf32> to vector<8x512xf32>
    %45 = arith.mulf %43, %44 : vector<8x512xf32>
    %46 = vector.broadcast %4 : vector<1x512xf32> to vector<8x512xf32>
    %47 = arith.addf %46, %45 : vector<8x512xf32>
    %48 = vector.extract_strided_slice %41 {offsets = [0, 1], sizes = [8, 1], strides = [1, 1]} : vector<8x2xf32> to vector<8x1xf32>
    %49 = vector.broadcast %48 : vector<8x1xf32> to vector<8x512xf32>
    %50 = vector.broadcast %8 : vector<1x512xf32> to vector<8x512xf32>
    %51 = arith.mulf %49, %50 : vector<8x512xf32>
    %52 = arith.addf %47, %51 : vector<8x512xf32>
    %cst_18 = arith.constant dense<0.000000e+00> : vector<8x512xf32>
    %53 = tpu.matmul %39, %2, %cst_18 {dimension_numbers = #tpu.dot_dimension_numbers<[1], [0], [0], [1], [0, 0, 1, 1], [], []>} : vector<8x128xf32>, vector<128x512xf32>, vector<8x512xf32> -> vector<8x512xf32>
    %54 = arith.addf %52, %53 : vector<8x512xf32>
    %55 = math.tanh %54 : vector<8x512xf32>
    %cst_19 = arith.constant 5.000000e-01 : f32
    %56 = vector.broadcast %cst_19 : f32 to vector<8x512xf32>
    %57 = arith.mulf %56, %55 : vector<8x512xf32>
    %cst_20 = arith.constant 5.000000e-01 : f32
    %58 = vector.broadcast %cst_20 : f32 to vector<8x512xf32>
    %59 = arith.addf %57, %58 : vector<8x512xf32>
    %60 = vector.extract_strided_slice %59 {offsets = [0, 0], sizes = [8, 128], strides = [1, 1]} : vector<8x512xf32> to vector<8x128xf32>
    %61 = vector.extract_strided_slice %59 {offsets = [0, 128], sizes = [8, 128], strides = [1, 1]} : vector<8x512xf32> to vector<8x128xf32>
    %62 = vector.extract_strided_slice %55 {offsets = [0, 256], sizes = [8, 128], strides = [1, 1]} : vector<8x512xf32> to vector<8x128xf32>
    %63 = vector.extract_strided_slice %59 {offsets = [0, 384], sizes = [8, 128], strides = [1, 1]} : vector<8x512xf32> to vector<8x128xf32>
    %64 = arith.mulf %61, %37 : vector<8x128xf32>
    %65 = arith.mulf %60, %62 : vector<8x128xf32>
    %66 = arith.addf %64, %65 : vector<8x128xf32>
    %67 = math.tanh %66 : vector<8x128xf32>
    %68 = arith.mulf %63, %67 : vector<8x128xf32>
    %69 = vector.extract_strided_slice %0 {offsets = [2, 0, 0], sizes = [1, 8, 2], strides = [1, 1, 1]} : vector<8x8x2xf32> to vector<1x8x2xf32>
    %70 = vector.shape_cast %69 : vector<1x8x2xf32> to vector<8x2xf32>
    %71 = vector.extract_strided_slice %70 {offsets = [0, 0], sizes = [8, 1], strides = [1, 1]} : vector<8x2xf32> to vector<8x1xf32>
    %72 = vector.broadcast %71 : vector<8x1xf32> to vector<8x512xf32>
    %73 = vector.broadcast %7 : vector<1x512xf32> to vector<8x512xf32>
    %74 = arith.mulf %72, %73 : vector<8x512xf32>
    %75 = vector.broadcast %4 : vector<1x512xf32> to vector<8x512xf32>
    %76 = arith.addf %75, %74 : vector<8x512xf32>
    %77 = vector.extract_strided_slice %70 {offsets = [0, 1], sizes = [8, 1], strides = [1, 1]} : vector<8x2xf32> to vector<8x1xf32>
    %78 = vector.broadcast %77 : vector<8x1xf32> to vector<8x512xf32>
    %79 = vector.broadcast %8 : vector<1x512xf32> to vector<8x512xf32>
    %80 = arith.mulf %78, %79 : vector<8x512xf32>
    %81 = arith.addf %76, %80 : vector<8x512xf32>
    %cst_21 = arith.constant dense<0.000000e+00> : vector<8x512xf32>
    %82 = tpu.matmul %68, %2, %cst_21 {dimension_numbers = #tpu.dot_dimension_numbers<[1], [0], [0], [1], [0, 0, 1, 1], [], []>} : vector<8x128xf32>, vector<128x512xf32>, vector<8x512xf32> -> vector<8x512xf32>
    %83 = arith.addf %81, %82 : vector<8x512xf32>
    %84 = math.tanh %83 : vector<8x512xf32>
    %cst_22 = arith.constant 5.000000e-01 : f32
    %85 = vector.broadcast %cst_22 : f32 to vector<8x512xf32>
    %86 = arith.mulf %85, %84 : vector<8x512xf32>
    %cst_23 = arith.constant 5.000000e-01 : f32
    %87 = vector.broadcast %cst_23 : f32 to vector<8x512xf32>
    %88 = arith.addf %86, %87 : vector<8x512xf32>
    %89 = vector.extract_strided_slice %88 {offsets = [0, 0], sizes = [8, 128], strides = [1, 1]} : vector<8x512xf32> to vector<8x128xf32>
    %90 = vector.extract_strided_slice %88 {offsets = [0, 128], sizes = [8, 128], strides = [1, 1]} : vector<8x512xf32> to vector<8x128xf32>
    %91 = vector.extract_strided_slice %84 {offsets = [0, 256], sizes = [8, 128], strides = [1, 1]} : vector<8x512xf32> to vector<8x128xf32>
    %92 = vector.extract_strided_slice %88 {offsets = [0, 384], sizes = [8, 128], strides = [1, 1]} : vector<8x512xf32> to vector<8x128xf32>
    %93 = arith.mulf %90, %66 : vector<8x128xf32>
    %94 = arith.mulf %89, %91 : vector<8x128xf32>
    %95 = arith.addf %93, %94 : vector<8x128xf32>
    %96 = math.tanh %95 : vector<8x128xf32>
    %97 = arith.mulf %92, %96 : vector<8x128xf32>
    %98 = vector.extract_strided_slice %0 {offsets = [3, 0, 0], sizes = [1, 8, 2], strides = [1, 1, 1]} : vector<8x8x2xf32> to vector<1x8x2xf32>
    %99 = vector.shape_cast %98 : vector<1x8x2xf32> to vector<8x2xf32>
    %100 = vector.extract_strided_slice %99 {offsets = [0, 0], sizes = [8, 1], strides = [1, 1]} : vector<8x2xf32> to vector<8x1xf32>
    %101 = vector.broadcast %100 : vector<8x1xf32> to vector<8x512xf32>
    %102 = vector.broadcast %7 : vector<1x512xf32> to vector<8x512xf32>
    %103 = arith.mulf %101, %102 : vector<8x512xf32>
    %104 = vector.broadcast %4 : vector<1x512xf32> to vector<8x512xf32>
    %105 = arith.addf %104, %103 : vector<8x512xf32>
    %106 = vector.extract_strided_slice %99 {offsets = [0, 1], sizes = [8, 1], strides = [1, 1]} : vector<8x2xf32> to vector<8x1xf32>
    %107 = vector.broadcast %106 : vector<8x1xf32> to vector<8x512xf32>
    %108 = vector.broadcast %8 : vector<1x512xf32> to vector<8x512xf32>
    %109 = arith.mulf %107, %108 : vector<8x512xf32>
    %110 = arith.addf %105, %109 : vector<8x512xf32>
    %cst_24 = arith.constant dense<0.000000e+00> : vector<8x512xf32>
    %111 = tpu.matmul %97, %2, %cst_24 {dimension_numbers = #tpu.dot_dimension_numbers<[1], [0], [0], [1], [0, 0, 1, 1], [], []>} : vector<8x128xf32>, vector<128x512xf32>, vector<8x512xf32> -> vector<8x512xf32>
    %112 = arith.addf %110, %111 : vector<8x512xf32>
    %113 = math.tanh %112 : vector<8x512xf32>
    %cst_25 = arith.constant 5.000000e-01 : f32
    %114 = vector.broadcast %cst_25 : f32 to vector<8x512xf32>
    %115 = arith.mulf %114, %113 : vector<8x512xf32>
    %cst_26 = arith.constant 5.000000e-01 : f32
    %116 = vector.broadcast %cst_26 : f32 to vector<8x512xf32>
    %117 = arith.addf %115, %116 : vector<8x512xf32>
    %118 = vector.extract_strided_slice %117 {offsets = [0, 0], sizes = [8, 128], strides = [1, 1]} : vector<8x512xf32> to vector<8x128xf32>
    %119 = vector.extract_strided_slice %117 {offsets = [0, 128], sizes = [8, 128], strides = [1, 1]} : vector<8x512xf32> to vector<8x128xf32>
    %120 = vector.extract_strided_slice %113 {offsets = [0, 256], sizes = [8, 128], strides = [1, 1]} : vector<8x512xf32> to vector<8x128xf32>
    %121 = vector.extract_strided_slice %117 {offsets = [0, 384], sizes = [8, 128], strides = [1, 1]} : vector<8x512xf32> to vector<8x128xf32>
    %122 = arith.mulf %119, %95 : vector<8x128xf32>
    %123 = arith.mulf %118, %120 : vector<8x128xf32>
    %124 = arith.addf %122, %123 : vector<8x128xf32>
    %125 = math.tanh %124 : vector<8x128xf32>
    %126 = arith.mulf %121, %125 : vector<8x128xf32>
    %127 = vector.extract_strided_slice %0 {offsets = [4, 0, 0], sizes = [1, 8, 2], strides = [1, 1, 1]} : vector<8x8x2xf32> to vector<1x8x2xf32>
    %128 = vector.shape_cast %127 : vector<1x8x2xf32> to vector<8x2xf32>
    %129 = vector.extract_strided_slice %128 {offsets = [0, 0], sizes = [8, 1], strides = [1, 1]} : vector<8x2xf32> to vector<8x1xf32>
    %130 = vector.broadcast %129 : vector<8x1xf32> to vector<8x512xf32>
    %131 = vector.broadcast %7 : vector<1x512xf32> to vector<8x512xf32>
    %132 = arith.mulf %130, %131 : vector<8x512xf32>
    %133 = vector.broadcast %4 : vector<1x512xf32> to vector<8x512xf32>
    %134 = arith.addf %133, %132 : vector<8x512xf32>
    %135 = vector.extract_strided_slice %128 {offsets = [0, 1], sizes = [8, 1], strides = [1, 1]} : vector<8x2xf32> to vector<8x1xf32>
    %136 = vector.broadcast %135 : vector<8x1xf32> to vector<8x512xf32>
    %137 = vector.broadcast %8 : vector<1x512xf32> to vector<8x512xf32>
    %138 = arith.mulf %136, %137 : vector<8x512xf32>
    %139 = arith.addf %134, %138 : vector<8x512xf32>
    %cst_27 = arith.constant dense<0.000000e+00> : vector<8x512xf32>
    %140 = tpu.matmul %126, %2, %cst_27 {dimension_numbers = #tpu.dot_dimension_numbers<[1], [0], [0], [1], [0, 0, 1, 1], [], []>} : vector<8x128xf32>, vector<128x512xf32>, vector<8x512xf32> -> vector<8x512xf32>
    %141 = arith.addf %139, %140 : vector<8x512xf32>
    %142 = math.tanh %141 : vector<8x512xf32>
    %cst_28 = arith.constant 5.000000e-01 : f32
    %143 = vector.broadcast %cst_28 : f32 to vector<8x512xf32>
    %144 = arith.mulf %143, %142 : vector<8x512xf32>
    %cst_29 = arith.constant 5.000000e-01 : f32
    %145 = vector.broadcast %cst_29 : f32 to vector<8x512xf32>
    %146 = arith.addf %144, %145 : vector<8x512xf32>
    %147 = vector.extract_strided_slice %146 {offsets = [0, 0], sizes = [8, 128], strides = [1, 1]} : vector<8x512xf32> to vector<8x128xf32>
    %148 = vector.extract_strided_slice %146 {offsets = [0, 128], sizes = [8, 128], strides = [1, 1]} : vector<8x512xf32> to vector<8x128xf32>
    %149 = vector.extract_strided_slice %142 {offsets = [0, 256], sizes = [8, 128], strides = [1, 1]} : vector<8x512xf32> to vector<8x128xf32>
    %150 = vector.extract_strided_slice %146 {offsets = [0, 384], sizes = [8, 128], strides = [1, 1]} : vector<8x512xf32> to vector<8x128xf32>
    %151 = arith.mulf %148, %124 : vector<8x128xf32>
    %152 = arith.mulf %147, %149 : vector<8x128xf32>
    %153 = arith.addf %151, %152 : vector<8x128xf32>
    %154 = math.tanh %153 : vector<8x128xf32>
    %155 = arith.mulf %150, %154 : vector<8x128xf32>
    %156 = vector.extract_strided_slice %0 {offsets = [5, 0, 0], sizes = [1, 8, 2], strides = [1, 1, 1]} : vector<8x8x2xf32> to vector<1x8x2xf32>
    %157 = vector.shape_cast %156 : vector<1x8x2xf32> to vector<8x2xf32>
    %158 = vector.extract_strided_slice %157 {offsets = [0, 0], sizes = [8, 1], strides = [1, 1]} : vector<8x2xf32> to vector<8x1xf32>
    %159 = vector.broadcast %158 : vector<8x1xf32> to vector<8x512xf32>
    %160 = vector.broadcast %7 : vector<1x512xf32> to vector<8x512xf32>
    %161 = arith.mulf %159, %160 : vector<8x512xf32>
    %162 = vector.broadcast %4 : vector<1x512xf32> to vector<8x512xf32>
    %163 = arith.addf %162, %161 : vector<8x512xf32>
    %164 = vector.extract_strided_slice %157 {offsets = [0, 1], sizes = [8, 1], strides = [1, 1]} : vector<8x2xf32> to vector<8x1xf32>
    %165 = vector.broadcast %164 : vector<8x1xf32> to vector<8x512xf32>
    %166 = vector.broadcast %8 : vector<1x512xf32> to vector<8x512xf32>
    %167 = arith.mulf %165, %166 : vector<8x512xf32>
    %168 = arith.addf %163, %167 : vector<8x512xf32>
    %cst_30 = arith.constant dense<0.000000e+00> : vector<8x512xf32>
    %169 = tpu.matmul %155, %2, %cst_30 {dimension_numbers = #tpu.dot_dimension_numbers<[1], [0], [0], [1], [0, 0, 1, 1], [], []>} : vector<8x128xf32>, vector<128x512xf32>, vector<8x512xf32> -> vector<8x512xf32>
    %170 = arith.addf %168, %169 : vector<8x512xf32>
    %171 = math.tanh %170 : vector<8x512xf32>
    %cst_31 = arith.constant 5.000000e-01 : f32
    %172 = vector.broadcast %cst_31 : f32 to vector<8x512xf32>
    %173 = arith.mulf %172, %171 : vector<8x512xf32>
    %cst_32 = arith.constant 5.000000e-01 : f32
    %174 = vector.broadcast %cst_32 : f32 to vector<8x512xf32>
    %175 = arith.addf %173, %174 : vector<8x512xf32>
    %176 = vector.extract_strided_slice %175 {offsets = [0, 0], sizes = [8, 128], strides = [1, 1]} : vector<8x512xf32> to vector<8x128xf32>
    %177 = vector.extract_strided_slice %175 {offsets = [0, 128], sizes = [8, 128], strides = [1, 1]} : vector<8x512xf32> to vector<8x128xf32>
    %178 = vector.extract_strided_slice %171 {offsets = [0, 256], sizes = [8, 128], strides = [1, 1]} : vector<8x512xf32> to vector<8x128xf32>
    %179 = vector.extract_strided_slice %175 {offsets = [0, 384], sizes = [8, 128], strides = [1, 1]} : vector<8x512xf32> to vector<8x128xf32>
    %180 = arith.mulf %177, %153 : vector<8x128xf32>
    %181 = arith.mulf %176, %178 : vector<8x128xf32>
    %182 = arith.addf %180, %181 : vector<8x128xf32>
    %183 = math.tanh %182 : vector<8x128xf32>
    %184 = arith.mulf %179, %183 : vector<8x128xf32>
    %185 = vector.extract_strided_slice %0 {offsets = [6, 0, 0], sizes = [1, 8, 2], strides = [1, 1, 1]} : vector<8x8x2xf32> to vector<1x8x2xf32>
    %186 = vector.shape_cast %185 : vector<1x8x2xf32> to vector<8x2xf32>
    %187 = vector.extract_strided_slice %186 {offsets = [0, 0], sizes = [8, 1], strides = [1, 1]} : vector<8x2xf32> to vector<8x1xf32>
    %188 = vector.broadcast %187 : vector<8x1xf32> to vector<8x512xf32>
    %189 = vector.broadcast %7 : vector<1x512xf32> to vector<8x512xf32>
    %190 = arith.mulf %188, %189 : vector<8x512xf32>
    %191 = vector.broadcast %4 : vector<1x512xf32> to vector<8x512xf32>
    %192 = arith.addf %191, %190 : vector<8x512xf32>
    %193 = vector.extract_strided_slice %186 {offsets = [0, 1], sizes = [8, 1], strides = [1, 1]} : vector<8x2xf32> to vector<8x1xf32>
    %194 = vector.broadcast %193 : vector<8x1xf32> to vector<8x512xf32>
    %195 = vector.broadcast %8 : vector<1x512xf32> to vector<8x512xf32>
    %196 = arith.mulf %194, %195 : vector<8x512xf32>
    %197 = arith.addf %192, %196 : vector<8x512xf32>
    %cst_33 = arith.constant dense<0.000000e+00> : vector<8x512xf32>
    %198 = tpu.matmul %184, %2, %cst_33 {dimension_numbers = #tpu.dot_dimension_numbers<[1], [0], [0], [1], [0, 0, 1, 1], [], []>} : vector<8x128xf32>, vector<128x512xf32>, vector<8x512xf32> -> vector<8x512xf32>
    %199 = arith.addf %197, %198 : vector<8x512xf32>
    %200 = math.tanh %199 : vector<8x512xf32>
    %cst_34 = arith.constant 5.000000e-01 : f32
    %201 = vector.broadcast %cst_34 : f32 to vector<8x512xf32>
    %202 = arith.mulf %201, %200 : vector<8x512xf32>
    %cst_35 = arith.constant 5.000000e-01 : f32
    %203 = vector.broadcast %cst_35 : f32 to vector<8x512xf32>
    %204 = arith.addf %202, %203 : vector<8x512xf32>
    %205 = vector.extract_strided_slice %204 {offsets = [0, 0], sizes = [8, 128], strides = [1, 1]} : vector<8x512xf32> to vector<8x128xf32>
    %206 = vector.extract_strided_slice %204 {offsets = [0, 128], sizes = [8, 128], strides = [1, 1]} : vector<8x512xf32> to vector<8x128xf32>
    %207 = vector.extract_strided_slice %200 {offsets = [0, 256], sizes = [8, 128], strides = [1, 1]} : vector<8x512xf32> to vector<8x128xf32>
    %208 = vector.extract_strided_slice %204 {offsets = [0, 384], sizes = [8, 128], strides = [1, 1]} : vector<8x512xf32> to vector<8x128xf32>
    %209 = arith.mulf %206, %182 : vector<8x128xf32>
    %210 = arith.mulf %205, %207 : vector<8x128xf32>
    %211 = arith.addf %209, %210 : vector<8x128xf32>
    %212 = math.tanh %211 : vector<8x128xf32>
    %213 = arith.mulf %208, %212 : vector<8x128xf32>
    %214 = vector.extract_strided_slice %0 {offsets = [7, 0, 0], sizes = [1, 8, 2], strides = [1, 1, 1]} : vector<8x8x2xf32> to vector<1x8x2xf32>
    %215 = vector.shape_cast %214 : vector<1x8x2xf32> to vector<8x2xf32>
    %216 = vector.extract_strided_slice %215 {offsets = [0, 0], sizes = [8, 1], strides = [1, 1]} : vector<8x2xf32> to vector<8x1xf32>
    %217 = vector.broadcast %216 : vector<8x1xf32> to vector<8x512xf32>
    %218 = vector.broadcast %7 : vector<1x512xf32> to vector<8x512xf32>
    %219 = arith.mulf %217, %218 : vector<8x512xf32>
    %220 = vector.broadcast %4 : vector<1x512xf32> to vector<8x512xf32>
    %221 = arith.addf %220, %219 : vector<8x512xf32>
    %222 = vector.extract_strided_slice %215 {offsets = [0, 1], sizes = [8, 1], strides = [1, 1]} : vector<8x2xf32> to vector<8x1xf32>
    %223 = vector.broadcast %222 : vector<8x1xf32> to vector<8x512xf32>
    %224 = vector.broadcast %8 : vector<1x512xf32> to vector<8x512xf32>
    %225 = arith.mulf %223, %224 : vector<8x512xf32>
    %226 = arith.addf %221, %225 : vector<8x512xf32>
    %cst_36 = arith.constant dense<0.000000e+00> : vector<8x512xf32>
    %227 = tpu.matmul %213, %2, %cst_36 {dimension_numbers = #tpu.dot_dimension_numbers<[1], [0], [0], [1], [0, 0, 1, 1], [], []>} : vector<8x128xf32>, vector<128x512xf32>, vector<8x512xf32> -> vector<8x512xf32>
    %228 = arith.addf %226, %227 : vector<8x512xf32>
    %229 = math.tanh %228 : vector<8x512xf32>
    %cst_37 = arith.constant 5.000000e-01 : f32
    %230 = vector.broadcast %cst_37 : f32 to vector<8x512xf32>
    %231 = arith.mulf %230, %229 : vector<8x512xf32>
    %cst_38 = arith.constant 5.000000e-01 : f32
    %232 = vector.broadcast %cst_38 : f32 to vector<8x512xf32>
    %233 = arith.addf %231, %232 : vector<8x512xf32>
    %234 = vector.extract_strided_slice %233 {offsets = [0, 0], sizes = [8, 128], strides = [1, 1]} : vector<8x512xf32> to vector<8x128xf32>
    %235 = vector.extract_strided_slice %233 {offsets = [0, 128], sizes = [8, 128], strides = [1, 1]} : vector<8x512xf32> to vector<8x128xf32>
    %236 = vector.extract_strided_slice %229 {offsets = [0, 256], sizes = [8, 128], strides = [1, 1]} : vector<8x512xf32> to vector<8x128xf32>
    %237 = vector.extract_strided_slice %233 {offsets = [0, 384], sizes = [8, 128], strides = [1, 1]} : vector<8x512xf32> to vector<8x128xf32>
    %238 = arith.mulf %235, %211 : vector<8x128xf32>
    %239 = arith.mulf %234, %236 : vector<8x128xf32>
    %240 = arith.addf %238, %239 : vector<8x128xf32>
    %241 = math.tanh %240 : vector<8x128xf32>
    %242 = arith.mulf %237, %241 : vector<8x128xf32>
    %243 = vector.extract_strided_slice %0 {offsets = [7, 0, 0], sizes = [1, 8, 2], strides = [1, 1, 1]} : vector<8x8x2xf32> to vector<1x8x2xf32>
    %244 = vector.shape_cast %243 : vector<1x8x2xf32> to vector<8x2xf32>
    %cst_39 = arith.constant dense<0.000000e+00> : vector<8x2xf32>
    %245 = tpu.matmul %242, %5, %cst_39 {dimension_numbers = #tpu.dot_dimension_numbers<[1], [0], [0], [1], [0, 0, 1, 1], [], []>} : vector<8x128xf32>, vector<128x2xf32>, vector<8x2xf32> -> vector<8x2xf32>
    %246 = vector.broadcast %6 : vector<1x2xf32> to vector<8x2xf32>
    %247 = arith.addf %245, %246 : vector<8x2xf32>
    %248 = arith.subf %244, %247 : vector<8x2xf32>
    %249 = vector.broadcast %6 : vector<1x2xf32> to vector<8x2xf32>
    %250 = arith.addf %248, %249 : vector<8x2xf32>
    %251 = vector.extract_strided_slice %250 {offsets = [0, 0], sizes = [8, 1], strides = [1, 1]} : vector<8x2xf32> to vector<8x1xf32>
    %252 = vector.broadcast %251 : vector<8x1xf32> to vector<8x512xf32>
    %253 = vector.broadcast %7 : vector<1x512xf32> to vector<8x512xf32>
    %254 = arith.mulf %252, %253 : vector<8x512xf32>
    %255 = vector.broadcast %4 : vector<1x512xf32> to vector<8x512xf32>
    %256 = arith.addf %255, %254 : vector<8x512xf32>
    %257 = vector.extract_strided_slice %250 {offsets = [0, 1], sizes = [8, 1], strides = [1, 1]} : vector<8x2xf32> to vector<8x1xf32>
    %258 = vector.broadcast %257 : vector<8x1xf32> to vector<8x512xf32>
    %259 = vector.broadcast %8 : vector<1x512xf32> to vector<8x512xf32>
    %260 = arith.mulf %258, %259 : vector<8x512xf32>
    %261 = arith.addf %256, %260 : vector<8x512xf32>
    %cst_40 = arith.constant dense<0.000000e+00> : vector<8x512xf32>
    %262 = tpu.matmul %242, %3, %cst_40 {dimension_numbers = #tpu.dot_dimension_numbers<[1], [0], [0], [1], [0, 0, 1, 1], [], []>} : vector<8x128xf32>, vector<128x512xf32>, vector<8x512xf32> -> vector<8x512xf32>
    %263 = arith.addf %261, %262 : vector<8x512xf32>
    %264 = vector.extract_strided_slice %247 {offsets = [0, 0], sizes = [8, 1], strides = [1, 1]} : vector<8x2xf32> to vector<8x1xf32>
    %265 = vector.broadcast %264 : vector<8x1xf32> to vector<8x512xf32>
    %266 = vector.broadcast %7 : vector<1x512xf32> to vector<8x512xf32>
    %267 = arith.mulf %265, %266 : vector<8x512xf32>
    %268 = arith.addf %261, %267 : vector<8x512xf32>
    %269 = vector.extract_strided_slice %247 {offsets = [0, 1], sizes = [8, 1], strides = [1, 1]} : vector<8x2xf32> to vector<8x1xf32>
    %270 = vector.broadcast %269 : vector<8x1xf32> to vector<8x512xf32>
    %271 = vector.broadcast %8 : vector<1x512xf32> to vector<8x512xf32>
    %272 = arith.mulf %270, %271 : vector<8x512xf32>
    %273 = arith.addf %268, %272 : vector<8x512xf32>
    %274 = math.tanh %263 : vector<8x512xf32>
    %cst_41 = arith.constant 5.000000e-01 : f32
    %275 = vector.broadcast %cst_41 : f32 to vector<8x512xf32>
    %276 = arith.mulf %275, %274 : vector<8x512xf32>
    %cst_42 = arith.constant 5.000000e-01 : f32
    %277 = vector.broadcast %cst_42 : f32 to vector<8x512xf32>
    %278 = arith.addf %276, %277 : vector<8x512xf32>
    %279 = vector.extract_strided_slice %278 {offsets = [0, 0], sizes = [8, 128], strides = [1, 1]} : vector<8x512xf32> to vector<8x128xf32>
    %280 = vector.extract_strided_slice %278 {offsets = [0, 128], sizes = [8, 128], strides = [1, 1]} : vector<8x512xf32> to vector<8x128xf32>
    %281 = vector.extract_strided_slice %274 {offsets = [0, 256], sizes = [8, 128], strides = [1, 1]} : vector<8x512xf32> to vector<8x128xf32>
    %282 = vector.extract_strided_slice %278 {offsets = [0, 384], sizes = [8, 128], strides = [1, 1]} : vector<8x512xf32> to vector<8x128xf32>
    %283 = arith.mulf %280, %240 : vector<8x128xf32>
    %284 = arith.mulf %279, %281 : vector<8x128xf32>
    %285 = arith.addf %283, %284 : vector<8x128xf32>
    %286 = math.tanh %285 : vector<8x128xf32>
    %287 = arith.mulf %282, %286 : vector<8x128xf32>
    %cst_43 = arith.constant dense<0.000000e+00> : vector<8x2xf32>
    %288 = tpu.matmul %287, %5, %cst_43 {dimension_numbers = #tpu.dot_dimension_numbers<[1], [0], [0], [1], [0, 0, 1, 1], [], []>} : vector<8x128xf32>, vector<128x2xf32>, vector<8x2xf32> -> vector<8x2xf32>
    %289 = vector.broadcast %6 : vector<1x2xf32> to vector<8x2xf32>
    %290 = arith.addf %288, %289 : vector<8x2xf32>
    %291 = arith.addf %244, %290 : vector<8x2xf32>
    %c0_44 = arith.constant 0 : index
    %c0_45 = arith.constant 0 : index
    %292 = vector.load %arg8[%c0_44, %c0_45] : memref<8x24xf32, #tpu.memory_space<vmem>>, vector<8x2xf32>
    tpu.vector_store %arg8[%c0_44, %c0_45], %291 {strides = array<i32>} : memref<8x24xf32, #tpu.memory_space<vmem>>, vector<8x2xf32>,
    %cst_46 = arith.constant dense<0.000000e+00> : vector<8x512xf32>
    %293 = tpu.matmul %287, %3, %cst_46 {dimension_numbers = #tpu.dot_dimension_numbers<[1], [0], [0], [1], [0, 0, 1, 1], [], []>} : vector<8x128xf32>, vector<128x512xf32>, vector<8x512xf32> -> vector<8x512xf32>
    %294 = arith.addf %273, %293 : vector<8x512xf32>
    %295 = vector.extract_strided_slice %290 {offsets = [0, 0], sizes = [8, 1], strides = [1, 1]} : vector<8x2xf32> to vector<8x1xf32>
    %296 = vector.broadcast %295 : vector<8x1xf32> to vector<8x512xf32>
    %297 = vector.broadcast %7 : vector<1x512xf32> to vector<8x512xf32>
    %298 = arith.mulf %296, %297 : vector<8x512xf32>
    %299 = arith.addf %273, %298 : vector<8x512xf32>
    %300 = vector.extract_strided_slice %290 {offsets = [0, 1], sizes = [8, 1], strides = [1, 1]} : vector<8x2xf32> to vector<8x1xf32>
    %301 = vector.broadcast %300 : vector<8x1xf32> to vector<8x512xf32>
    %302 = vector.broadcast %8 : vector<1x512xf32> to vector<8x512xf32>
    %303 = arith.mulf %301, %302 : vector<8x512xf32>
    %304 = arith.addf %299, %303 : vector<8x512xf32>
    %305 = math.tanh %294 : vector<8x512xf32>
    %cst_47 = arith.constant 5.000000e-01 : f32
    %306 = vector.broadcast %cst_47 : f32 to vector<8x512xf32>
    %307 = arith.mulf %306, %305 : vector<8x512xf32>
    %cst_48 = arith.constant 5.000000e-01 : f32
    %308 = vector.broadcast %cst_48 : f32 to vector<8x512xf32>
    %309 = arith.addf %307, %308 : vector<8x512xf32>
    %310 = vector.extract_strided_slice %309 {offsets = [0, 0], sizes = [8, 128], strides = [1, 1]} : vector<8x512xf32> to vector<8x128xf32>
    %311 = vector.extract_strided_slice %309 {offsets = [0, 128], sizes = [8, 128], strides = [1, 1]} : vector<8x512xf32> to vector<8x128xf32>
    %312 = vector.extract_strided_slice %305 {offsets = [0, 256], sizes = [8, 128], strides = [1, 1]} : vector<8x512xf32> to vector<8x128xf32>
    %313 = vector.extract_strided_slice %309 {offsets = [0, 384], sizes = [8, 128], strides = [1, 1]} : vector<8x512xf32> to vector<8x128xf32>
    %314 = arith.mulf %311, %285 : vector<8x128xf32>
    %315 = arith.mulf %310, %312 : vector<8x128xf32>
    %316 = arith.addf %314, %315 : vector<8x128xf32>
    %317 = math.tanh %316 : vector<8x128xf32>
    %318 = arith.mulf %313, %317 : vector<8x128xf32>
    %cst_49 = arith.constant dense<0.000000e+00> : vector<8x2xf32>
    %319 = tpu.matmul %318, %5, %cst_49 {dimension_numbers = #tpu.dot_dimension_numbers<[1], [0], [0], [1], [0, 0, 1, 1], [], []>} : vector<8x128xf32>, vector<128x2xf32>, vector<8x2xf32> -> vector<8x2xf32>
    %320 = vector.broadcast %6 : vector<1x2xf32> to vector<8x2xf32>
    %321 = arith.addf %319, %320 : vector<8x2xf32>
    %322 = arith.addf %291, %321 : vector<8x2xf32>
    %c0_50 = arith.constant 0 : index
    %c2 = arith.constant 2 : index
    %323 = vector.load %arg8[%c0_50, %c2] : memref<8x24xf32, #tpu.memory_space<vmem>>, vector<8x2xf32>
    tpu.vector_store %arg8[%c0_50, %c2], %322 {strides = array<i32>} : memref<8x24xf32, #tpu.memory_space<vmem>>, vector<8x2xf32>,
    %cst_51 = arith.constant dense<0.000000e+00> : vector<8x512xf32>
    %324 = tpu.matmul %318, %3, %cst_51 {dimension_numbers = #tpu.dot_dimension_numbers<[1], [0], [0], [1], [0, 0, 1, 1], [], []>} : vector<8x128xf32>, vector<128x512xf32>, vector<8x512xf32> -> vector<8x512xf32>
    %325 = arith.addf %304, %324 : vector<8x512xf32>
    %326 = vector.extract_strided_slice %321 {offsets = [0, 0], sizes = [8, 1], strides = [1, 1]} : vector<8x2xf32> to vector<8x1xf32>
    %327 = vector.broadcast %326 : vector<8x1xf32> to vector<8x512xf32>
    %328 = vector.broadcast %7 : vector<1x512xf32> to vector<8x512xf32>
    %329 = arith.mulf %327, %328 : vector<8x512xf32>
    %330 = arith.addf %304, %329 : vector<8x512xf32>
    %331 = vector.extract_strided_slice %321 {offsets = [0, 1], sizes = [8, 1], strides = [1, 1]} : vector<8x2xf32> to vector<8x1xf32>
    %332 = vector.broadcast %331 : vector<8x1xf32> to vector<8x512xf32>
    %333 = vector.broadcast %8 : vector<1x512xf32> to vector<8x512xf32>
    %334 = arith.mulf %332, %333 : vector<8x512xf32>
    %335 = arith.addf %330, %334 : vector<8x512xf32>
    %336 = math.tanh %325 : vector<8x512xf32>
    %cst_52 = arith.constant 5.000000e-01 : f32
    %337 = vector.broadcast %cst_52 : f32 to vector<8x512xf32>
    %338 = arith.mulf %337, %336 : vector<8x512xf32>
    %cst_53 = arith.constant 5.000000e-01 : f32
    %339 = vector.broadcast %cst_53 : f32 to vector<8x512xf32>
    %340 = arith.addf %338, %339 : vector<8x512xf32>
    %341 = vector.extract_strided_slice %340 {offsets = [0, 0], sizes = [8, 128], strides = [1, 1]} : vector<8x512xf32> to vector<8x128xf32>
    %342 = vector.extract_strided_slice %340 {offsets = [0, 128], sizes = [8, 128], strides = [1, 1]} : vector<8x512xf32> to vector<8x128xf32>
    %343 = vector.extract_strided_slice %336 {offsets = [0, 256], sizes = [8, 128], strides = [1, 1]} : vector<8x512xf32> to vector<8x128xf32>
    %344 = vector.extract_strided_slice %340 {offsets = [0, 384], sizes = [8, 128], strides = [1, 1]} : vector<8x512xf32> to vector<8x128xf32>
    %345 = arith.mulf %342, %316 : vector<8x128xf32>
    %346 = arith.mulf %341, %343 : vector<8x128xf32>
    %347 = arith.addf %345, %346 : vector<8x128xf32>
    %348 = math.tanh %347 : vector<8x128xf32>
    %349 = arith.mulf %344, %348 : vector<8x128xf32>
    %cst_54 = arith.constant dense<0.000000e+00> : vector<8x2xf32>
    %350 = tpu.matmul %349, %5, %cst_54 {dimension_numbers = #tpu.dot_dimension_numbers<[1], [0], [0], [1], [0, 0, 1, 1], [], []>} : vector<8x128xf32>, vector<128x2xf32>, vector<8x2xf32> -> vector<8x2xf32>
    %351 = vector.broadcast %6 : vector<1x2xf32> to vector<8x2xf32>
    %352 = arith.addf %350, %351 : vector<8x2xf32>
    %353 = arith.addf %322, %352 : vector<8x2xf32>
    %c0_55 = arith.constant 0 : index
    %c4 = arith.constant 4 : index
    %354 = vector.load %arg8[%c0_55, %c4] : memref<8x24xf32, #tpu.memory_space<vmem>>, vector<8x2xf32>
    tpu.vector_store %arg8[%c0_55, %c4], %353 {strides = array<i32>} : memref<8x24xf32, #tpu.memory_space<vmem>>, vector<8x2xf32>,
    %cst_56 = arith.constant dense<0.000000e+00> : vector<8x512xf32>
    %355 = tpu.matmul %349, %3, %cst_56 {dimension_numbers = #tpu.dot_dimension_numbers<[1], [0], [0], [1], [0, 0, 1, 1], [], []>} : vector<8x128xf32>, vector<128x512xf32>, vector<8x512xf32> -> vector<8x512xf32>
    %356 = arith.addf %335, %355 : vector<8x512xf32>
    %357 = vector.extract_strided_slice %352 {offsets = [0, 0], sizes = [8, 1], strides = [1, 1]} : vector<8x2xf32> to vector<8x1xf32>
    %358 = vector.broadcast %357 : vector<8x1xf32> to vector<8x512xf32>
    %359 = vector.broadcast %7 : vector<1x512xf32> to vector<8x512xf32>
    %360 = arith.mulf %358, %359 : vector<8x512xf32>
    %361 = arith.addf %335, %360 : vector<8x512xf32>
    %362 = vector.extract_strided_slice %352 {offsets = [0, 1], sizes = [8, 1], strides = [1, 1]} : vector<8x2xf32> to vector<8x1xf32>
    %363 = vector.broadcast %362 : vector<8x1xf32> to vector<8x512xf32>
    %364 = vector.broadcast %8 : vector<1x512xf32> to vector<8x512xf32>
    %365 = arith.mulf %363, %364 : vector<8x512xf32>
    %366 = arith.addf %361, %365 : vector<8x512xf32>
    %367 = math.tanh %356 : vector<8x512xf32>
    %cst_57 = arith.constant 5.000000e-01 : f32
    %368 = vector.broadcast %cst_57 : f32 to vector<8x512xf32>
    %369 = arith.mulf %368, %367 : vector<8x512xf32>
    %cst_58 = arith.constant 5.000000e-01 : f32
    %370 = vector.broadcast %cst_58 : f32 to vector<8x512xf32>
    %371 = arith.addf %369, %370 : vector<8x512xf32>
    %372 = vector.extract_strided_slice %371 {offsets = [0, 0], sizes = [8, 128], strides = [1, 1]} : vector<8x512xf32> to vector<8x128xf32>
    %373 = vector.extract_strided_slice %371 {offsets = [0, 128], sizes = [8, 128], strides = [1, 1]} : vector<8x512xf32> to vector<8x128xf32>
    %374 = vector.extract_strided_slice %367 {offsets = [0, 256], sizes = [8, 128], strides = [1, 1]} : vector<8x512xf32> to vector<8x128xf32>
    %375 = vector.extract_strided_slice %371 {offsets = [0, 384], sizes = [8, 128], strides = [1, 1]} : vector<8x512xf32> to vector<8x128xf32>
    %376 = arith.mulf %373, %347 : vector<8x128xf32>
    %377 = arith.mulf %372, %374 : vector<8x128xf32>
    %378 = arith.addf %376, %377 : vector<8x128xf32>
    %379 = math.tanh %378 : vector<8x128xf32>
    %380 = arith.mulf %375, %379 : vector<8x128xf32>
    %cst_59 = arith.constant dense<0.000000e+00> : vector<8x2xf32>
    %381 = tpu.matmul %380, %5, %cst_59 {dimension_numbers = #tpu.dot_dimension_numbers<[1], [0], [0], [1], [0, 0, 1, 1], [], []>} : vector<8x128xf32>, vector<128x2xf32>, vector<8x2xf32> -> vector<8x2xf32>
    %382 = vector.broadcast %6 : vector<1x2xf32> to vector<8x2xf32>
    %383 = arith.addf %381, %382 : vector<8x2xf32>
    %384 = arith.addf %353, %383 : vector<8x2xf32>
    %c0_60 = arith.constant 0 : index
    %c6 = arith.constant 6 : index
    %385 = vector.load %arg8[%c0_60, %c6] : memref<8x24xf32, #tpu.memory_space<vmem>>, vector<8x2xf32>
    tpu.vector_store %arg8[%c0_60, %c6], %384 {strides = array<i32>} : memref<8x24xf32, #tpu.memory_space<vmem>>, vector<8x2xf32>,
    %cst_61 = arith.constant dense<0.000000e+00> : vector<8x512xf32>
    %386 = tpu.matmul %380, %3, %cst_61 {dimension_numbers = #tpu.dot_dimension_numbers<[1], [0], [0], [1], [0, 0, 1, 1], [], []>} : vector<8x128xf32>, vector<128x512xf32>, vector<8x512xf32> -> vector<8x512xf32>
    %387 = arith.addf %366, %386 : vector<8x512xf32>
    %388 = vector.extract_strided_slice %383 {offsets = [0, 0], sizes = [8, 1], strides = [1, 1]} : vector<8x2xf32> to vector<8x1xf32>
    %389 = vector.broadcast %388 : vector<8x1xf32> to vector<8x512xf32>
    %390 = vector.broadcast %7 : vector<1x512xf32> to vector<8x512xf32>
    %391 = arith.mulf %389, %390 : vector<8x512xf32>
    %392 = arith.addf %366, %391 : vector<8x512xf32>
    %393 = vector.extract_strided_slice %383 {offsets = [0, 1], sizes = [8, 1], strides = [1, 1]} : vector<8x2xf32> to vector<8x1xf32>
    %394 = vector.broadcast %393 : vector<8x1xf32> to vector<8x512xf32>
    %395 = vector.broadcast %8 : vector<1x512xf32> to vector<8x512xf32>
    %396 = arith.mulf %394, %395 : vector<8x512xf32>
    %397 = arith.addf %392, %396 : vector<8x512xf32>
    %398 = math.tanh %387 : vector<8x512xf32>
    %cst_62 = arith.constant 5.000000e-01 : f32
    %399 = vector.broadcast %cst_62 : f32 to vector<8x512xf32>
    %400 = arith.mulf %399, %398 : vector<8x512xf32>
    %cst_63 = arith.constant 5.000000e-01 : f32
    %401 = vector.broadcast %cst_63 : f32 to vector<8x512xf32>
    %402 = arith.addf %400, %401 : vector<8x512xf32>
    %403 = vector.extract_strided_slice %402 {offsets = [0, 0], sizes = [8, 128], strides = [1, 1]} : vector<8x512xf32> to vector<8x128xf32>
    %404 = vector.extract_strided_slice %402 {offsets = [0, 128], sizes = [8, 128], strides = [1, 1]} : vector<8x512xf32> to vector<8x128xf32>
    %405 = vector.extract_strided_slice %398 {offsets = [0, 256], sizes = [8, 128], strides = [1, 1]} : vector<8x512xf32> to vector<8x128xf32>
    %406 = vector.extract_strided_slice %402 {offsets = [0, 384], sizes = [8, 128], strides = [1, 1]} : vector<8x512xf32> to vector<8x128xf32>
    %407 = arith.mulf %404, %378 : vector<8x128xf32>
    %408 = arith.mulf %403, %405 : vector<8x128xf32>
    %409 = arith.addf %407, %408 : vector<8x128xf32>
    %410 = math.tanh %409 : vector<8x128xf32>
    %411 = arith.mulf %406, %410 : vector<8x128xf32>
    %cst_64 = arith.constant dense<0.000000e+00> : vector<8x2xf32>
    %412 = tpu.matmul %411, %5, %cst_64 {dimension_numbers = #tpu.dot_dimension_numbers<[1], [0], [0], [1], [0, 0, 1, 1], [], []>} : vector<8x128xf32>, vector<128x2xf32>, vector<8x2xf32> -> vector<8x2xf32>
    %413 = vector.broadcast %6 : vector<1x2xf32> to vector<8x2xf32>
    %414 = arith.addf %412, %413 : vector<8x2xf32>
    %415 = arith.addf %384, %414 : vector<8x2xf32>
    %c0_65 = arith.constant 0 : index
    %c8 = arith.constant 8 : index
    %416 = vector.load %arg8[%c0_65, %c8] : memref<8x24xf32, #tpu.memory_space<vmem>>, vector<8x2xf32>
    tpu.vector_store %arg8[%c0_65, %c8], %415 {strides = array<i32>} : memref<8x24xf32, #tpu.memory_space<vmem>>, vector<8x2xf32>,
    %cst_66 = arith.constant dense<0.000000e+00> : vector<8x512xf32>
    %417 = tpu.matmul %411, %3, %cst_66 {dimension_numbers = #tpu.dot_dimension_numbers<[1], [0], [0], [1], [0, 0, 1, 1], [], []>} : vector<8x128xf32>, vector<128x512xf32>, vector<8x512xf32> -> vector<8x512xf32>
    %418 = arith.addf %397, %417 : vector<8x512xf32>
    %419 = vector.extract_strided_slice %414 {offsets = [0, 0], sizes = [8, 1], strides = [1, 1]} : vector<8x2xf32> to vector<8x1xf32>
    %420 = vector.broadcast %419 : vector<8x1xf32> to vector<8x512xf32>
    %421 = vector.broadcast %7 : vector<1x512xf32> to vector<8x512xf32>
    %422 = arith.mulf %420, %421 : vector<8x512xf32>
    %423 = arith.addf %397, %422 : vector<8x512xf32>
    %424 = vector.extract_strided_slice %414 {offsets = [0, 1], sizes = [8, 1], strides = [1, 1]} : vector<8x2xf32> to vector<8x1xf32>
    %425 = vector.broadcast %424 : vector<8x1xf32> to vector<8x512xf32>
    %426 = vector.broadcast %8 : vector<1x512xf32> to vector<8x512xf32>
    %427 = arith.mulf %425, %426 : vector<8x512xf32>
    %428 = arith.addf %423, %427 : vector<8x512xf32>
    %429 = math.tanh %418 : vector<8x512xf32>
    %cst_67 = arith.constant 5.000000e-01 : f32
    %430 = vector.broadcast %cst_67 : f32 to vector<8x512xf32>
    %431 = arith.mulf %430, %429 : vector<8x512xf32>
    %cst_68 = arith.constant 5.000000e-01 : f32
    %432 = vector.broadcast %cst_68 : f32 to vector<8x512xf32>
    %433 = arith.addf %431, %432 : vector<8x512xf32>
    %434 = vector.extract_strided_slice %433 {offsets = [0, 0], sizes = [8, 128], strides = [1, 1]} : vector<8x512xf32> to vector<8x128xf32>
    %435 = vector.extract_strided_slice %433 {offsets = [0, 128], sizes = [8, 128], strides = [1, 1]} : vector<8x512xf32> to vector<8x128xf32>
    %436 = vector.extract_strided_slice %429 {offsets = [0, 256], sizes = [8, 128], strides = [1, 1]} : vector<8x512xf32> to vector<8x128xf32>
    %437 = vector.extract_strided_slice %433 {offsets = [0, 384], sizes = [8, 128], strides = [1, 1]} : vector<8x512xf32> to vector<8x128xf32>
    %438 = arith.mulf %435, %409 : vector<8x128xf32>
    %439 = arith.mulf %434, %436 : vector<8x128xf32>
    %440 = arith.addf %438, %439 : vector<8x128xf32>
    %441 = math.tanh %440 : vector<8x128xf32>
    %442 = arith.mulf %437, %441 : vector<8x128xf32>
    %cst_69 = arith.constant dense<0.000000e+00> : vector<8x2xf32>
    %443 = tpu.matmul %442, %5, %cst_69 {dimension_numbers = #tpu.dot_dimension_numbers<[1], [0], [0], [1], [0, 0, 1, 1], [], []>} : vector<8x128xf32>, vector<128x2xf32>, vector<8x2xf32> -> vector<8x2xf32>
    %444 = vector.broadcast %6 : vector<1x2xf32> to vector<8x2xf32>
    %445 = arith.addf %443, %444 : vector<8x2xf32>
    %446 = arith.addf %415, %445 : vector<8x2xf32>
    %c0_70 = arith.constant 0 : index
    %c10 = arith.constant 10 : index
    %447 = vector.load %arg8[%c0_70, %c10] : memref<8x24xf32, #tpu.memory_space<vmem>>, vector<8x2xf32>
    tpu.vector_store %arg8[%c0_70, %c10], %446 {strides = array<i32>} : memref<8x24xf32, #tpu.memory_space<vmem>>, vector<8x2xf32>,
    %cst_71 = arith.constant dense<0.000000e+00> : vector<8x512xf32>
    %448 = tpu.matmul %442, %3, %cst_71 {dimension_numbers = #tpu.dot_dimension_numbers<[1], [0], [0], [1], [0, 0, 1, 1], [], []>} : vector<8x128xf32>, vector<128x512xf32>, vector<8x512xf32> -> vector<8x512xf32>
    %449 = arith.addf %428, %448 : vector<8x512xf32>
    %450 = vector.extract_strided_slice %445 {offsets = [0, 0], sizes = [8, 1], strides = [1, 1]} : vector<8x2xf32> to vector<8x1xf32>
    %451 = vector.broadcast %450 : vector<8x1xf32> to vector<8x512xf32>
    %452 = vector.broadcast %7 : vector<1x512xf32> to vector<8x512xf32>
    %453 = arith.mulf %451, %452 : vector<8x512xf32>
    %454 = arith.addf %428, %453 : vector<8x512xf32>
    %455 = vector.extract_strided_slice %445 {offsets = [0, 1], sizes = [8, 1], strides = [1, 1]} : vector<8x2xf32> to vector<8x1xf32>
    %456 = vector.broadcast %455 : vector<8x1xf32> to vector<8x512xf32>
    %457 = vector.broadcast %8 : vector<1x512xf32> to vector<8x512xf32>
    %458 = arith.mulf %456, %457 : vector<8x512xf32>
    %459 = arith.addf %454, %458 : vector<8x512xf32>
    %460 = math.tanh %449 : vector<8x512xf32>
    %cst_72 = arith.constant 5.000000e-01 : f32
    %461 = vector.broadcast %cst_72 : f32 to vector<8x512xf32>
    %462 = arith.mulf %461, %460 : vector<8x512xf32>
    %cst_73 = arith.constant 5.000000e-01 : f32
    %463 = vector.broadcast %cst_73 : f32 to vector<8x512xf32>
    %464 = arith.addf %462, %463 : vector<8x512xf32>
    %465 = vector.extract_strided_slice %464 {offsets = [0, 0], sizes = [8, 128], strides = [1, 1]} : vector<8x512xf32> to vector<8x128xf32>
    %466 = vector.extract_strided_slice %464 {offsets = [0, 128], sizes = [8, 128], strides = [1, 1]} : vector<8x512xf32> to vector<8x128xf32>
    %467 = vector.extract_strided_slice %460 {offsets = [0, 256], sizes = [8, 128], strides = [1, 1]} : vector<8x512xf32> to vector<8x128xf32>
    %468 = vector.extract_strided_slice %464 {offsets = [0, 384], sizes = [8, 128], strides = [1, 1]} : vector<8x512xf32> to vector<8x128xf32>
    %469 = arith.mulf %466, %440 : vector<8x128xf32>
    %470 = arith.mulf %465, %467 : vector<8x128xf32>
    %471 = arith.addf %469, %470 : vector<8x128xf32>
    %472 = math.tanh %471 : vector<8x128xf32>
    %473 = arith.mulf %468, %472 : vector<8x128xf32>
    %cst_74 = arith.constant dense<0.000000e+00> : vector<8x2xf32>
    %474 = tpu.matmul %473, %5, %cst_74 {dimension_numbers = #tpu.dot_dimension_numbers<[1], [0], [0], [1], [0, 0, 1, 1], [], []>} : vector<8x128xf32>, vector<128x2xf32>, vector<8x2xf32> -> vector<8x2xf32>
    %475 = vector.broadcast %6 : vector<1x2xf32> to vector<8x2xf32>
    %476 = arith.addf %474, %475 : vector<8x2xf32>
    %477 = arith.addf %446, %476 : vector<8x2xf32>
    %c0_75 = arith.constant 0 : index
    %c12 = arith.constant 12 : index
    %478 = vector.load %arg8[%c0_75, %c12] : memref<8x24xf32, #tpu.memory_space<vmem>>, vector<8x2xf32>
    tpu.vector_store %arg8[%c0_75, %c12], %477 {strides = array<i32>} : memref<8x24xf32, #tpu.memory_space<vmem>>, vector<8x2xf32>,
    %cst_76 = arith.constant dense<0.000000e+00> : vector<8x512xf32>
    %479 = tpu.matmul %473, %3, %cst_76 {dimension_numbers = #tpu.dot_dimension_numbers<[1], [0], [0], [1], [0, 0, 1, 1], [], []>} : vector<8x128xf32>, vector<128x512xf32>, vector<8x512xf32> -> vector<8x512xf32>
    %480 = arith.addf %459, %479 : vector<8x512xf32>
    %481 = vector.extract_strided_slice %476 {offsets = [0, 0], sizes = [8, 1], strides = [1, 1]} : vector<8x2xf32> to vector<8x1xf32>
    %482 = vector.broadcast %481 : vector<8x1xf32> to vector<8x512xf32>
    %483 = vector.broadcast %7 : vector<1x512xf32> to vector<8x512xf32>
    %484 = arith.mulf %482, %483 : vector<8x512xf32>
    %485 = arith.addf %459, %484 : vector<8x512xf32>
    %486 = vector.extract_strided_slice %476 {offsets = [0, 1], sizes = [8, 1], strides = [1, 1]} : vector<8x2xf32> to vector<8x1xf32>
    %487 = vector.broadcast %486 : vector<8x1xf32> to vector<8x512xf32>
    %488 = vector.broadcast %8 : vector<1x512xf32> to vector<8x512xf32>
    %489 = arith.mulf %487, %488 : vector<8x512xf32>
    %490 = arith.addf %485, %489 : vector<8x512xf32>
    %491 = math.tanh %480 : vector<8x512xf32>
    %cst_77 = arith.constant 5.000000e-01 : f32
    %492 = vector.broadcast %cst_77 : f32 to vector<8x512xf32>
    %493 = arith.mulf %492, %491 : vector<8x512xf32>
    %cst_78 = arith.constant 5.000000e-01 : f32
    %494 = vector.broadcast %cst_78 : f32 to vector<8x512xf32>
    %495 = arith.addf %493, %494 : vector<8x512xf32>
    %496 = vector.extract_strided_slice %495 {offsets = [0, 0], sizes = [8, 128], strides = [1, 1]} : vector<8x512xf32> to vector<8x128xf32>
    %497 = vector.extract_strided_slice %495 {offsets = [0, 128], sizes = [8, 128], strides = [1, 1]} : vector<8x512xf32> to vector<8x128xf32>
    %498 = vector.extract_strided_slice %491 {offsets = [0, 256], sizes = [8, 128], strides = [1, 1]} : vector<8x512xf32> to vector<8x128xf32>
    %499 = vector.extract_strided_slice %495 {offsets = [0, 384], sizes = [8, 128], strides = [1, 1]} : vector<8x512xf32> to vector<8x128xf32>
    %500 = arith.mulf %497, %471 : vector<8x128xf32>
    %501 = arith.mulf %496, %498 : vector<8x128xf32>
    %502 = arith.addf %500, %501 : vector<8x128xf32>
    %503 = math.tanh %502 : vector<8x128xf32>
    %504 = arith.mulf %499, %503 : vector<8x128xf32>
    %cst_79 = arith.constant dense<0.000000e+00> : vector<8x2xf32>
    %505 = tpu.matmul %504, %5, %cst_79 {dimension_numbers = #tpu.dot_dimension_numbers<[1], [0], [0], [1], [0, 0, 1, 1], [], []>} : vector<8x128xf32>, vector<128x2xf32>, vector<8x2xf32> -> vector<8x2xf32>
    %506 = vector.broadcast %6 : vector<1x2xf32> to vector<8x2xf32>
    %507 = arith.addf %505, %506 : vector<8x2xf32>
    %508 = arith.addf %477, %507 : vector<8x2xf32>
    %c0_80 = arith.constant 0 : index
    %c14 = arith.constant 14 : index
    %509 = vector.load %arg8[%c0_80, %c14] : memref<8x24xf32, #tpu.memory_space<vmem>>, vector<8x2xf32>
    tpu.vector_store %arg8[%c0_80, %c14], %508 {strides = array<i32>} : memref<8x24xf32, #tpu.memory_space<vmem>>, vector<8x2xf32>,
    %cst_81 = arith.constant dense<0.000000e+00> : vector<8x512xf32>
    %510 = tpu.matmul %504, %3, %cst_81 {dimension_numbers = #tpu.dot_dimension_numbers<[1], [0], [0], [1], [0, 0, 1, 1], [], []>} : vector<8x128xf32>, vector<128x512xf32>, vector<8x512xf32> -> vector<8x512xf32>
    %511 = arith.addf %490, %510 : vector<8x512xf32>
    %512 = vector.extract_strided_slice %507 {offsets = [0, 0], sizes = [8, 1], strides = [1, 1]} : vector<8x2xf32> to vector<8x1xf32>
    %513 = vector.broadcast %512 : vector<8x1xf32> to vector<8x512xf32>
    %514 = vector.broadcast %7 : vector<1x512xf32> to vector<8x512xf32>
    %515 = arith.mulf %513, %514 : vector<8x512xf32>
    %516 = arith.addf %490, %515 : vector<8x512xf32>
    %517 = vector.extract_strided_slice %507 {offsets = [0, 1], sizes = [8, 1], strides = [1, 1]} : vector<8x2xf32> to vector<8x1xf32>
    %518 = vector.broadcast %517 : vector<8x1xf32> to vector<8x512xf32>
    %519 = vector.broadcast %8 : vector<1x512xf32> to vector<8x512xf32>
    %520 = arith.mulf %518, %519 : vector<8x512xf32>
    %521 = arith.addf %516, %520 : vector<8x512xf32>
    %522 = math.tanh %511 : vector<8x512xf32>
    %cst_82 = arith.constant 5.000000e-01 : f32
    %523 = vector.broadcast %cst_82 : f32 to vector<8x512xf32>
    %524 = arith.mulf %523, %522 : vector<8x512xf32>
    %cst_83 = arith.constant 5.000000e-01 : f32
    %525 = vector.broadcast %cst_83 : f32 to vector<8x512xf32>
    %526 = arith.addf %524, %525 : vector<8x512xf32>
    %527 = vector.extract_strided_slice %526 {offsets = [0, 0], sizes = [8, 128], strides = [1, 1]} : vector<8x512xf32> to vector<8x128xf32>
    %528 = vector.extract_strided_slice %526 {offsets = [0, 128], sizes = [8, 128], strides = [1, 1]} : vector<8x512xf32> to vector<8x128xf32>
    %529 = vector.extract_strided_slice %522 {offsets = [0, 256], sizes = [8, 128], strides = [1, 1]} : vector<8x512xf32> to vector<8x128xf32>
    %530 = vector.extract_strided_slice %526 {offsets = [0, 384], sizes = [8, 128], strides = [1, 1]} : vector<8x512xf32> to vector<8x128xf32>
    %531 = arith.mulf %528, %502 : vector<8x128xf32>
    %532 = arith.mulf %527, %529 : vector<8x128xf32>
    %533 = arith.addf %531, %532 : vector<8x128xf32>
    %534 = math.tanh %533 : vector<8x128xf32>
    %535 = arith.mulf %530, %534 : vector<8x128xf32>
    %cst_84 = arith.constant dense<0.000000e+00> : vector<8x2xf32>
    %536 = tpu.matmul %535, %5, %cst_84 {dimension_numbers = #tpu.dot_dimension_numbers<[1], [0], [0], [1], [0, 0, 1, 1], [], []>} : vector<8x128xf32>, vector<128x2xf32>, vector<8x2xf32> -> vector<8x2xf32>
    %537 = vector.broadcast %6 : vector<1x2xf32> to vector<8x2xf32>
    %538 = arith.addf %536, %537 : vector<8x2xf32>
    %539 = arith.addf %508, %538 : vector<8x2xf32>
    %c0_85 = arith.constant 0 : index
    %c16 = arith.constant 16 : index
    %540 = vector.load %arg8[%c0_85, %c16] : memref<8x24xf32, #tpu.memory_space<vmem>>, vector<8x2xf32>
    tpu.vector_store %arg8[%c0_85, %c16], %539 {strides = array<i32>} : memref<8x24xf32, #tpu.memory_space<vmem>>, vector<8x2xf32>,
    %cst_86 = arith.constant dense<0.000000e+00> : vector<8x512xf32>
    %541 = tpu.matmul %535, %3, %cst_86 {dimension_numbers = #tpu.dot_dimension_numbers<[1], [0], [0], [1], [0, 0, 1, 1], [], []>} : vector<8x128xf32>, vector<128x512xf32>, vector<8x512xf32> -> vector<8x512xf32>
    %542 = arith.addf %521, %541 : vector<8x512xf32>
    %543 = vector.extract_strided_slice %538 {offsets = [0, 0], sizes = [8, 1], strides = [1, 1]} : vector<8x2xf32> to vector<8x1xf32>
    %544 = vector.broadcast %543 : vector<8x1xf32> to vector<8x512xf32>
    %545 = vector.broadcast %7 : vector<1x512xf32> to vector<8x512xf32>
    %546 = arith.mulf %544, %545 : vector<8x512xf32>
    %547 = arith.addf %521, %546 : vector<8x512xf32>
    %548 = vector.extract_strided_slice %538 {offsets = [0, 1], sizes = [8, 1], strides = [1, 1]} : vector<8x2xf32> to vector<8x1xf32>
    %549 = vector.broadcast %548 : vector<8x1xf32> to vector<8x512xf32>
    %550 = vector.broadcast %8 : vector<1x512xf32> to vector<8x512xf32>
    %551 = arith.mulf %549, %550 : vector<8x512xf32>
    %552 = arith.addf %547, %551 : vector<8x512xf32>
    %553 = math.tanh %542 : vector<8x512xf32>
    %cst_87 = arith.constant 5.000000e-01 : f32
    %554 = vector.broadcast %cst_87 : f32 to vector<8x512xf32>
    %555 = arith.mulf %554, %553 : vector<8x512xf32>
    %cst_88 = arith.constant 5.000000e-01 : f32
    %556 = vector.broadcast %cst_88 : f32 to vector<8x512xf32>
    %557 = arith.addf %555, %556 : vector<8x512xf32>
    %558 = vector.extract_strided_slice %557 {offsets = [0, 0], sizes = [8, 128], strides = [1, 1]} : vector<8x512xf32> to vector<8x128xf32>
    %559 = vector.extract_strided_slice %557 {offsets = [0, 128], sizes = [8, 128], strides = [1, 1]} : vector<8x512xf32> to vector<8x128xf32>
    %560 = vector.extract_strided_slice %553 {offsets = [0, 256], sizes = [8, 128], strides = [1, 1]} : vector<8x512xf32> to vector<8x128xf32>
    %561 = vector.extract_strided_slice %557 {offsets = [0, 384], sizes = [8, 128], strides = [1, 1]} : vector<8x512xf32> to vector<8x128xf32>
    %562 = arith.mulf %559, %533 : vector<8x128xf32>
    %563 = arith.mulf %558, %560 : vector<8x128xf32>
    %564 = arith.addf %562, %563 : vector<8x128xf32>
    %565 = math.tanh %564 : vector<8x128xf32>
    %566 = arith.mulf %561, %565 : vector<8x128xf32>
    %cst_89 = arith.constant dense<0.000000e+00> : vector<8x2xf32>
    %567 = tpu.matmul %566, %5, %cst_89 {dimension_numbers = #tpu.dot_dimension_numbers<[1], [0], [0], [1], [0, 0, 1, 1], [], []>} : vector<8x128xf32>, vector<128x2xf32>, vector<8x2xf32> -> vector<8x2xf32>
    %568 = vector.broadcast %6 : vector<1x2xf32> to vector<8x2xf32>
    %569 = arith.addf %567, %568 : vector<8x2xf32>
    %570 = arith.addf %539, %569 : vector<8x2xf32>
    %c0_90 = arith.constant 0 : index
    %c18 = arith.constant 18 : index
    %571 = vector.load %arg8[%c0_90, %c18] : memref<8x24xf32, #tpu.memory_space<vmem>>, vector<8x2xf32>
    tpu.vector_store %arg8[%c0_90, %c18], %570 {strides = array<i32>} : memref<8x24xf32, #tpu.memory_space<vmem>>, vector<8x2xf32>,
    %cst_91 = arith.constant dense<0.000000e+00> : vector<8x512xf32>
    %572 = tpu.matmul %566, %3, %cst_91 {dimension_numbers = #tpu.dot_dimension_numbers<[1], [0], [0], [1], [0, 0, 1, 1], [], []>} : vector<8x128xf32>, vector<128x512xf32>, vector<8x512xf32> -> vector<8x512xf32>
    %573 = arith.addf %552, %572 : vector<8x512xf32>
    %574 = vector.extract_strided_slice %569 {offsets = [0, 0], sizes = [8, 1], strides = [1, 1]} : vector<8x2xf32> to vector<8x1xf32>
    %575 = vector.broadcast %574 : vector<8x1xf32> to vector<8x512xf32>
    %576 = vector.broadcast %7 : vector<1x512xf32> to vector<8x512xf32>
    %577 = arith.mulf %575, %576 : vector<8x512xf32>
    %578 = arith.addf %552, %577 : vector<8x512xf32>
    %579 = vector.extract_strided_slice %569 {offsets = [0, 1], sizes = [8, 1], strides = [1, 1]} : vector<8x2xf32> to vector<8x1xf32>
    %580 = vector.broadcast %579 : vector<8x1xf32> to vector<8x512xf32>
    %581 = vector.broadcast %8 : vector<1x512xf32> to vector<8x512xf32>
    %582 = arith.mulf %580, %581 : vector<8x512xf32>
    %583 = arith.addf %578, %582 : vector<8x512xf32>
    %584 = math.tanh %573 : vector<8x512xf32>
    %cst_92 = arith.constant 5.000000e-01 : f32
    %585 = vector.broadcast %cst_92 : f32 to vector<8x512xf32>
    %586 = arith.mulf %585, %584 : vector<8x512xf32>
    %cst_93 = arith.constant 5.000000e-01 : f32
    %587 = vector.broadcast %cst_93 : f32 to vector<8x512xf32>
    %588 = arith.addf %586, %587 : vector<8x512xf32>
    %589 = vector.extract_strided_slice %588 {offsets = [0, 0], sizes = [8, 128], strides = [1, 1]} : vector<8x512xf32> to vector<8x128xf32>
    %590 = vector.extract_strided_slice %588 {offsets = [0, 128], sizes = [8, 128], strides = [1, 1]} : vector<8x512xf32> to vector<8x128xf32>
    %591 = vector.extract_strided_slice %584 {offsets = [0, 256], sizes = [8, 128], strides = [1, 1]} : vector<8x512xf32> to vector<8x128xf32>
    %592 = vector.extract_strided_slice %588 {offsets = [0, 384], sizes = [8, 128], strides = [1, 1]} : vector<8x512xf32> to vector<8x128xf32>
    %593 = arith.mulf %590, %564 : vector<8x128xf32>
    %594 = arith.mulf %589, %591 : vector<8x128xf32>
    %595 = arith.addf %593, %594 : vector<8x128xf32>
    %596 = math.tanh %595 : vector<8x128xf32>
    %597 = arith.mulf %592, %596 : vector<8x128xf32>
    %cst_94 = arith.constant dense<0.000000e+00> : vector<8x2xf32>
    %598 = tpu.matmul %597, %5, %cst_94 {dimension_numbers = #tpu.dot_dimension_numbers<[1], [0], [0], [1], [0, 0, 1, 1], [], []>} : vector<8x128xf32>, vector<128x2xf32>, vector<8x2xf32> -> vector<8x2xf32>
    %599 = vector.broadcast %6 : vector<1x2xf32> to vector<8x2xf32>
    %600 = arith.addf %598, %599 : vector<8x2xf32>
    %601 = arith.addf %570, %600 : vector<8x2xf32>
    %c0_95 = arith.constant 0 : index
    %c20 = arith.constant 20 : index
    %602 = vector.load %arg8[%c0_95, %c20] : memref<8x24xf32, #tpu.memory_space<vmem>>, vector<8x2xf32>
    tpu.vector_store %arg8[%c0_95, %c20], %601 {strides = array<i32>} : memref<8x24xf32, #tpu.memory_space<vmem>>, vector<8x2xf32>,
    %cst_96 = arith.constant dense<0.000000e+00> : vector<8x512xf32>
    %603 = tpu.matmul %597, %3, %cst_96 {dimension_numbers = #tpu.dot_dimension_numbers<[1], [0], [0], [1], [0, 0, 1, 1], [], []>} : vector<8x128xf32>, vector<128x512xf32>, vector<8x512xf32> -> vector<8x512xf32>
    %604 = arith.addf %583, %603 : vector<8x512xf32>
    %605 = math.tanh %604 : vector<8x512xf32>
    %cst_97 = arith.constant 5.000000e-01 : f32
    %606 = vector.broadcast %cst_97 : f32 to vector<8x512xf32>
    %607 = arith.mulf %606, %605 : vector<8x512xf32>
    %cst_98 = arith.constant 5.000000e-01 : f32
    %608 = vector.broadcast %cst_98 : f32 to vector<8x512xf32>
    %609 = arith.addf %607, %608 : vector<8x512xf32>
    %610 = vector.extract_strided_slice %609 {offsets = [0, 0], sizes = [8, 128], strides = [1, 1]} : vector<8x512xf32> to vector<8x128xf32>
    %611 = vector.extract_strided_slice %609 {offsets = [0, 128], sizes = [8, 128], strides = [1, 1]} : vector<8x512xf32> to vector<8x128xf32>
    %612 = vector.extract_strided_slice %605 {offsets = [0, 256], sizes = [8, 128], strides = [1, 1]} : vector<8x512xf32> to vector<8x128xf32>
    %613 = vector.extract_strided_slice %609 {offsets = [0, 384], sizes = [8, 128], strides = [1, 1]} : vector<8x512xf32> to vector<8x128xf32>
    %614 = arith.mulf %611, %595 : vector<8x128xf32>
    %615 = arith.mulf %610, %612 : vector<8x128xf32>
    %616 = arith.addf %614, %615 : vector<8x128xf32>
    %617 = math.tanh %616 : vector<8x128xf32>
    %618 = arith.mulf %613, %617 : vector<8x128xf32>
    %cst_99 = arith.constant dense<0.000000e+00> : vector<8x2xf32>
    %619 = tpu.matmul %618, %5, %cst_99 {dimension_numbers = #tpu.dot_dimension_numbers<[1], [0], [0], [1], [0, 0, 1, 1], [], []>} : vector<8x128xf32>, vector<128x2xf32>, vector<8x2xf32> -> vector<8x2xf32>
    %620 = vector.broadcast %6 : vector<1x2xf32> to vector<8x2xf32>
    %621 = arith.addf %619, %620 : vector<8x2xf32>
    %622 = arith.addf %601, %621 : vector<8x2xf32>
    %c0_100 = arith.constant 0 : index
    %c22 = arith.constant 22 : index
    %623 = vector.load %arg8[%c0_100, %c22] : memref<8x24xf32, #tpu.memory_space<vmem>>, vector<8x2xf32>
    tpu.vector_store %arg8[%c0_100, %c22], %622 {strides = array<i32>} : memref<8x24xf32, #tpu.memory_space<vmem>>, vector<8x2xf32>,
    return
  }
  func.func @transform_0(%arg0: i32) -> (i32, i32, i32) {
    %c0_i32 = arith.constant 0 : i32
    %c0_i32_0 = arith.constant 0 : i32
    %c0_i32_1 = arith.constant 0 : i32
    return %c0_i32, %arg0, %c0_i32_0 : i32, i32, i32
  }
  func.func @transform_1(%arg0: i32) -> (i32, i32) {
    %c0_i32 = arith.constant 0 : i32
    %c0_i32_0 = arith.constant 0 : i32
    %c0_i32_1 = arith.constant 0 : i32
    return %c0_i32, %c0_i32_0 : i32, i32
  }
  func.func @transform_2(%arg0: i32) -> (i32, i32) {
    %c0_i32 = arith.constant 0 : i32
    %c0_i32_0 = arith.constant 0 : i32
    %c0_i32_1 = arith.constant 0 : i32
    return %c0_i32, %c0_i32_0 : i32, i32
  }
  func.func @transform_3(%arg0: i32) -> (i32, i32) {
    %c0_i32 = arith.constant 0 : i32
    %c0_i32_0 = arith.constant 0 : i32
    %c0_i32_1 = arith.constant 0 : i32
    return %c0_i32, %c0_i32_0 : i32, i32
  }
  func.func @transform_4(%arg0: i32) -> (i32, i32) {
    %c0_i32 = arith.constant 0 : i32
    %c0_i32_0 = arith.constant 0 : i32
    %c0_i32_1 = arith.constant 0 : i32
    return %c0_i32, %c0_i32_0 : i32, i32
  }
  func.func @transform_5(%arg0: i32) -> (i32, i32) {
    %c0_i32 = arith.constant 0 : i32
    %c0_i32_0 = arith.constant 0 : i32
    %c0_i32_1 = arith.constant 0 : i32
    return %c0_i32, %c0_i32_0 : i32, i32
  }
  func.func @transform_6(%arg0: i32) -> (i32, i32) {
    %c0_i32 = arith.constant 0 : i32
    %c0_i32_0 = arith.constant 0 : i32
    %c0_i32_1 = arith.constant 0 : i32
    return %c0_i32, %c0_i32_0 : i32, i32
  }
  func.func @transform_7(%arg0: i32) -> (i32, i32) {
    %c0_i32 = arith.constant 0 : i32
    %c0_i32_0 = arith.constant 0 : i32
    return %arg0, %c0_i32 : i32, i32
  }
}

</mosaic_0001>

<bundles_post_ra>
// kernel: tpu_custom_call.1
= control target key start
LH: loop header
LB: loop body
LE: loop exit
PB: predicated region body
PF: predicated region fallthrough
CT: control target
= control target key end

     0   :  { %12 = vsyncpa [#allocation3], 0  ;;  %s9406_s0 = inlined_call_operand.vmem [shape: f32[8,8,2], index: 0, kind: input, shape index: {}]   ;;  %s9407_s1 = inlined_call_operand.vmem [shape: f32[2,512], index: 1, kind: input, shape index: {}]   ;;  %s9408_s2 = inlined_call_operand.hbm [shape: f32[128,512], index: 2, kind: input, shape index: {}]   ;;  %s9409_s3 = inlined_call_operand.hbm [shape: f32[128,512], index: 3, kind: input, shape index: {}]   ;;  %s9410_s4 = inlined_call_operand.vmem [shape: f32[1,512], index: 4, kind: input, shape index: {}]   ;;  %s9411_s5 = inlined_call_operand.vmem [shape: f32[128,2], index: 5, kind: input, shape index: {}]   ;;  %s9412_s6 = inlined_call_operand.vmem [shape: f32[1,2], index: 6, kind: input, shape index: {}]   ;;  %s9413_s7 = inlined_call_operand.hbm [shape: f32[8,24], index: 7, kind: output, shape index: {}]  }
   0x1   :  { %13 = vsyncpa [#allocation6], 0 }
   0x2   :  { %14 = vsyncpa [#allocation4], 0  ;;  %s7608_s24 = smov [#allocation2]   ;;  %s7536_s28 = scalar_lea.hbm %s9408_s2, 8192 }
   0x3   :  { %s24_s25 = sshll.u32 %s7608_s24, 4  ;;  %p7537_p0 = scmp.ne.s32.totalorder %s9408_s2, %s7536_s28  ;;  %s25_s25 = int_to_ptr.vmem [resolvable:$true] %s24_s25 }
   0x4   :  { %p7540_p1 = scmp.lt.u32.totalorder %s7536_s28, %s9408_s2 }
   0x6   :  { %p7542_p2 = pnand %p7540_p1, %p7537_p0 }
   0x8   :  { %7545 = shalt.err (!%p7542_p2)
}
   0x9   :  { %s7546_s10 = scalar_lea.vmem %s25_s25, 8192  ;;  %p7551_p4 = scmp.lt.s32.totalorder %s25_s25, %s25_s25 }
   0xa   :  { %p7547_p3 = scmp.ne.s32.totalorder %s25_s25, %s7546_s10  ;;  %p7552_p5 = scmp.lt.s32.totalorder %s7546_s10, %s7546_s10 }
   0xc   :  { %p7553_p6 = por %p7552_p5, %p7551_p4 }
   0xe   :  { %p7554_p7 = pnand %p7553_p6, %p7547_p3 }
  0x10   :  { %7557 = shalt.err (!%p7554_p7)
}
  0x11   :  { %s7609_s11 = smov 512   ;;  %s7610_s12 = smov 32  }
  0x12   :  { %30 = dma.hbm_to_vmem [thread:$0]  %s9408_s2, 8192, %s25_s25, [#allocation3], %s7609_s11, %s7609_s11, %s7610_s12  }
  0x13   :  { %s7611_s15 = smov [#allocation5]   ;;  %s7558_s19 = scalar_lea.hbm %s9409_s3, 8192 }
  0x14   :  { %s36_s16 = sshll.u32 %s7611_s15, 4  ;;  %p7559_p8 = scmp.ne.s32.totalorder %s9409_s3, %s7558_s19  ;;  %s37_s16 = int_to_ptr.vmem [resolvable:$true] %s36_s16 }
  0x15   :  { %p7562_p9 = scmp.lt.u32.totalorder %s7558_s19, %s9409_s3 }
  0x17   :  { %p7564_p10 = pnand %p7562_p9, %p7559_p8 }
  0x19   :  { %7567 = shalt.err (!%p7564_p10)
}
  0x1a   :  { %s7568_s24 = scalar_lea.vmem %s37_s16, 8192  ;;  %p7573_p12 = scmp.lt.s32.totalorder %s37_s16, %s37_s16 }
  0x1b   :  { %p7569_p11 = scmp.ne.s32.totalorder %s37_s16, %s7568_s24  ;;  %p7574_p13 = scmp.lt.s32.totalorder %s7568_s24, %s7568_s24 }
  0x1d   :  { %p7575_p0 = por %p7574_p13, %p7573_p12 }
  0x1f   :  { %p7576_p1 = pnand %p7575_p0, %p7569_p11 }
  0x21   :  { %7579 = shalt.err (!%p7576_p1)
}
  0x22   :  { %42 = dma.hbm_to_vmem [thread:$0]  %s9409_s3, 8192, %s37_s16, [#allocation6], %s7609_s11, %s7609_s11, %s7610_s12  }
  0x23   :  { %7602 = dma.done.wait [#allocation3], 8192  }
  0x24   :  { %7603 = vsyncadd [#allocation3], 4294959104 }
  0x25   :  { %7604 = dma.done.wait [#allocation6], 8192  }
  0x26   :  { %7605 = vsyncadd [#allocation6], 4294959104  ;;  %v9414_v0 = vmov 0.0   ;;  %v7613_v1 = vmov 0   ;;  %v65_v2 = vld [vmem:[#allocation2 + $0x8] sm:$0xff]  ;;  %v67_v4 = vld [vmem:[#allocation2 + $0x18] sm:$0xff] }
  0x27   :  { %393 = vmatprep.mubr.f32.mxu0 %v9414_v0  ;;  %464 = vmatprep.mubr.f32.mxu1 %v9414_v0  ;;  %v69_v3 = vld [vmem:[#allocation2 + $0x28] sm:$0xff]  ;;  %v71_v6 = vld [vmem:[#allocation2 + $0x38] sm:$0xff]  ;;  %v64_v7 = vld [vmem:[#allocation2] sm:$0xff]  ;;  %vm7616_vm0 = vmmov 0   ;;  %vm2152_vm1 = vcmask 15360   ;;  %s7617_s29 = smov 4  }
  0x28   :  { %7330 = vset.pattern.permute.xlu1 %v7613_v1  ;;  %7328 = vset.pattern.permute.xlu0 %v7613_v1  ;;  %v7697_v5 = vpack.c.bf16 %v69_v3, %v65_v2  ;;  %v68_v8 = vld [vmem:[#allocation2 + $0x20] sm:$0xff]  ;;  %v7699_v9 = vpack.c.bf16 %v71_v6, %v67_v4  ;;  %v66_v11 = vld [vmem:[#allocation2 + $0x10] sm:$0xff]  ;;  %v73_v13 = vld [vmem:[#allocation2 + $0x48] sm:$0xff]  ;;  %s7618_s30 = smov 2   ;;  %s7620_s8 = smov 6   ;;  %vm2415_vm2 = vcmask 31760  }
  0x29   :  { %v7701_v10 = vpack.c.bf16 %v68_v8, %v64_v7  ;;  %v70_v12 = vld [vmem:[#allocation2 + $0x30] sm:$0xff]  ;;  %v77_v15 = vld [vmem:[#allocation2 + $0x68] sm:$0xff]  ;;  %v75_v16 = vld [vmem:[#allocation2 + $0x58] sm:$0xff]  ;;  %s7621_s9 = smov 12   ;;  %s7622_s10 = smov 10   ;;  %vm2678_vm3 = vcmask 48160  }
  0x2a   :  { %5716 = vmatprep.subr.bf16.mxu0 %v7697_v5  ;;  %v7704_v14 = vpack.c.bf16 %v70_v12, %v66_v11  ;;  %v79_v17 = vld [vmem:[#allocation2 + $0x78] sm:$0xff]  ;;  %5748 = vmatprep.subr.bf16.mxu1 %v7699_v9  ;;  %v7708_v18 = vpack.c.bf16 %v77_v15, %v73_v13  ;;  %v72_v20 = vld [vmem:[#allocation2 + $0x40] sm:$0xff]  ;;  %v74_v22 = vld [vmem:[#allocation2 + $0x50] sm:$0xff]  ;;  %s7623_s11 = smov 16   ;;  %s7624_s12 = smov 14   ;;  %vm2941_vm4 = vcmask 64560  }
  0x2b   :  { %5718 = vmatpush1.bf16.msra.mxu0 %v7701_v10  ;;  %v7710_v19 = vpack.c.bf16 %v79_v17, %v75_v16  ;;  %v76_v21 = vld [vmem:[#allocation2 + $0x60] sm:$0xff]  ;;  %v78_v24 = vld [vmem:[#allocation2 + $0x70] sm:$0xff]  ;;  %v81_v25 = vld [vmem:[#allocation2 + $0x88] sm:$0xff]  ;;  %s7625_s13 = smov 18   ;;  %vm3204_vm5 = vcmask 80960   ;;  %vm3467_vm6 = vcmask 97360  }
  0x2c   :  { %5750 = vmatpush1.bf16.msra.mxu1 %v7704_v14  ;;  %v7713_v23 = vpack.c.bf16 %v76_v21, %v72_v20  ;;  %v85_v26 = vld [vmem:[#allocation2 + $0xa8] sm:$0xff]  ;;  %5720 = vmatprep.subr.bf16.mxu0 %v7708_v18  ;;  %v7717_v27 = vpack.c.bf16 %v78_v24, %v74_v22  ;;  %v83_v29 = vld [vmem:[#allocation2 + $0x98] sm:$0xff]  ;;  %v80_v31 = vld [vmem:[#allocation2 + $0x80] sm:$0xff]  ;;  %vm3730_vm7 = vcmask 113760   ;;  %vm3993_vm8 = vcmask 130160   ;;  %s7626_s14 = smov 20  }
  0x2d   :  { %5752 = vmatprep.subr.bf16.mxu1 %v7710_v19  ;;  %v7719_v28 = vpack.c.bf16 %v85_v26, %v81_v25  ;;  %v87_v30 = vld [vmem:[#allocation2 + $0xb8] sm:$0xff]  ;;  %v84_v33 = vld [vmem:[#allocation2 + $0xa0] sm:$0xff]  ;;  %v82_v34 = vld [vmem:[#allocation2 + $0x90] sm:$0xff]  ;;  %vm4256_vm9 = vcmask 146560   ;;  %vm4519_vm10 = vcmask 162960   ;;  %vm4782_vm11 = vcmask 179360  }
  0x2e   :  { %v7721_v32 = vpack.c.bf16 %v87_v30, %v83_v29  ;;  %v86_v35 = vld [vmem:[#allocation2 + $0xb0] sm:$0xff]  ;;  %v7724_v36 = vpack.c.bf16 %v84_v33, %v80_v31  ;;  %v89_v37 = vld [vmem:[#allocation2 + $0xc8] sm:$0xff]  ;;  %v91_v39 = vld [vmem:[#allocation2 + $0xd8] sm:$0xff]  ;;  %s7627_s15 = smov 22   ;;  %s7628_s16 = smov [#allocation7]   ;;  %vm5020_vm12 = vcmask 195760  }
  0x2f   :  { %5722 = vmatpush1.bf16.msra.mxu0 %v7713_v23  ;;  %v93_v38 = vld [vmem:[#allocation2 + $0xe8] sm:$0xff]  ;;  %v7728_v40 = vpack.c.bf16 %v86_v35, %v82_v34  ;;  %v95_v42 = vld [vmem:[#allocation2 + $0xf8] sm:$0xff]  ;;  %v88_v43 = vld [vmem:[#allocation2 + $0xc0] sm:$0xff]  ;;  %s5028_s17 = sshll.u32 %s7628_s16, 4  ;;  %s5029_s17 = int_to_ptr.vmem [resolvable:$true] %s5028_s17 }
  0x30   :  { %5754 = vmatpush1.bf16.msra.mxu1 %v7717_v27  ;;  %5724 = vmatprep.subr.bf16.mxu0 %v7719_v28  ;;  %v7730_v41 = vpack.c.bf16 %v93_v38, %v89_v37  ;;  %v92_v44 = vld [vmem:[#allocation2 + $0xe0] sm:$0xff]  ;;  %v7733_v45 = vpack.c.bf16 %v95_v42, %v91_v39  ;;  %v90_v46 = vld [vmem:[#allocation2 + $0xd0] sm:$0xff]  ;;  %v97_v48 = vld [vmem:[#allocation2 + $0x108] sm:$0xff]  ;;  %s7580_s18 = scalar_lea.vmem %s5029_s17, 128  ;;  %p7585_p3 = scmp.lt.s32.totalorder %s5029_s17, %s5029_s17 }
  0x31   :  { %5756 = vmatprep.subr.bf16.mxu1 %v7721_v32  ;;  %v94_v47 = vld [vmem:[#allocation2 + $0xf0] sm:$0xff]  ;;  %v101_v49 = vld [vmem:[#allocation2 + $0x128] sm:$0xff]  ;;  %v99_v50 = vld [vmem:[#allocation2 + $0x118] sm:$0xff]  ;;  %v7736_v52 = vpack.c.bf16 %v92_v44, %v88_v43  ;;  %p7581_p2 = scmp.ne.s32.totalorder %s5029_s17, %s7580_s18  ;;  %p7586_p4 = scmp.lt.s32.totalorder %s7580_s18, %s7580_s18 }
  0x32   :  { %v103_v51 = vld [vmem:[#allocation2 + $0x138] sm:$0xff]  ;;  %v7740_v53 = vpack.c.bf16 %v94_v47, %v90_v46  ;;  %v7742_v54 = vpack.c.bf16 %v101_v49, %v97_v48  ;;  %v96_v55 = vld [vmem:[#allocation2 + $0x100] sm:$0xff]  ;;  %v98_v57 = vld [vmem:[#allocation2 + $0x110] sm:$0xff] }
  0x33   :  { %5726 = vmatpush1.bf16.msra.mxu0 %v7724_v36  ;;  %v100_v56 = vld [vmem:[#allocation2 + $0x120] sm:$0xff]  ;;  %v7745_v58 = vpack.c.bf16 %v103_v51, %v99_v50  ;;  %v102_v59 = vld [vmem:[#allocation2 + $0x130] sm:$0xff]  ;;  %v105_v60 = vld [vmem:[#allocation2 + $0x148] sm:$0xff]  ;;  %v7614_v50 = vmov 1   ;;  %p7587_p5 = por %p7586_p4, %p7585_p3 }
  0x34   :  { %5758 = vmatpush1.bf16.msra.mxu1 %v7728_v40  ;;  %5728 = vmatprep.subr.bf16.mxu0 %v7730_v41  ;;  %v109_v61 = vld [vmem:[#allocation2 + $0x168] sm:$0xff]  ;;  %v107_v62 = vld [vmem:[#allocation2 + $0x158] sm:$0xff]  ;;  %v7748_v2 = vpack.c.bf16 %v100_v56, %v96_v55  ;;  %v7752_v3 = vpack.c.bf16 %v102_v59, %v98_v57  ;;  %v104_v6 = vld [vmem:[#allocation2 + $0x140] sm:$0xff] }
  0x35   :  { %5760 = vmatprep.subr.bf16.mxu1 %v7733_v45  ;;  %v111_v63 = vld [vmem:[#allocation2 + $0x178] sm:$0xff]  ;;  %v7754_v4 = vpack.c.bf16 %v109_v61, %v105_v60  ;;  %v108_v7 = vld [vmem:[#allocation2 + $0x160] sm:$0xff]  ;;  %v106_v8 = vld [vmem:[#allocation2 + $0x150] sm:$0xff]  ;;  %p7588_p6 = pnand %p7587_p5, %p7581_p2 }
  0x36   :  { %v7757_v11 = vpack.c.bf16 %v111_v63, %v107_v62  ;;  %v110_v12 = vld [vmem:[#allocation2 + $0x170] sm:$0xff]  ;;  %v113_v13 = vld [vmem:[#allocation2 + $0x188] sm:$0xff]  ;;  %v115_v16 = vld [vmem:[#allocation2 + $0x198] sm:$0xff]  ;;  %v7760_v20 = vpack.c.bf16 %v108_v7, %v104_v6  ;;  %v216_v62 = vlaneseq }
  0x37   :  { %5730 = vmatpush1.bf16.msra.mxu0 %v7736_v52  ;;  %v117_v15 = vld [vmem:[#allocation2 + $0x1a8] sm:$0xff]  ;;  %v119_v17 = vld [vmem:[#allocation2 + $0x1b8] sm:$0xff]  ;;  %v112_v21 = vld [vmem:[#allocation2 + $0x180] sm:$0xff]  ;;  %v7764_v24 = vpack.c.bf16 %v110_v12, %v106_v8 }
  0x38   :  { %5762 = vmatpush1.bf16.msra.mxu1 %v7740_v53  ;;  %5732 = vmatprep.subr.bf16.mxu0 %v7742_v54  ;;  %v116_v22 = vld [vmem:[#allocation2 + $0x1a0] sm:$0xff]  ;;  %v7766_v25 = vpack.c.bf16 %v117_v15, %v113_v13  ;;  %v114_v26 = vld [vmem:[#allocation2 + $0x190] sm:$0xff]  ;;  %v56_v29 = vld [vmem:[%s9406_s0 + $0x8] sm:$0xff]  ;;  %v7775_v31 = vpack.c.bf16 %v119_v17, %v115_v16  ;;  %v217_v63 = vshrl.u32 %v216_v62, 7 }
  0x39   :  { %5764 = vmatprep.subr.bf16.mxu1 %v7745_v58  ;;  %v55_v30 = vld [vmem:[%s9406_s0] sm:$0xff]  ;;  %v118_v33 = vld [vmem:[#allocation2 + $0x1b0] sm:$0xff]  ;;  %v121_v34 = vld [vmem:[#allocation2 + $0x1c8] sm:$0xff]  ;;  %492 = vperm.xlu1 %7330, %v56_v29   ;;  %v7778_v39 = vpack.c.bf16 %v116_v22, %v112_v21 }
  0x3a   :  { %v125_v35 = vld [vmem:[#allocation2 + $0x1e8] sm:$0xff]  ;;  %v123_v37 = vld [vmem:[#allocation2 + $0x1d8] sm:$0xff]  ;;  %212 = vperm.xlu0 %7328, %v55_v30   ;;  %v7782_v42 = vpack.c.bf16 %v118_v33, %v114_v26  ;;  %v120_v44 = vld [vmem:[#allocation2 + $0x1c0] sm:$0xff]  ;;  %v218_v6 = vsub.s32 0, %v217_v63  ;;  %v222_v8 = vsub.s32 2, %v217_v63  ;;  %v226_v12 = vsub.s32 4, %v217_v63 }
  0x3b   :  { %5734 = vmatpush1.bf16.msra.mxu0 %v7748_v2  ;;  %v127_v38 = vld [vmem:[#allocation2 + $0x1f8] sm:$0xff]  ;;  %v7784_v43 = vpack.c.bf16 %v125_v35, %v121_v34  ;;  %v124_v46 = vld [vmem:[#allocation2 + $0x1e0] sm:$0xff]  ;;  %v122_v48 = vld [vmem:[#allocation2 + $0x1d0] sm:$0xff]  ;;  %v263_v15 = vsub.s32 1, %v217_v63  ;;  %v271_v17 = vsub.s32 3, %v217_v63  ;;  %v295_v22 = vsub.s32 5, %v217_v63 }
  0x3c   :  { %5766 = vmatpush1.bf16.msra.mxu1 %v7752_v3  ;;  %5736 = vmatprep.subr.bf16.mxu0 %v7754_v4  ;;  %v7787_v47 = vpack.c.bf16 %v127_v38, %v123_v37  ;;  %v126_v49 = vld [vmem:[#allocation2 + $0x1f0] sm:$0xff]  ;;  %v7790_v51 = vpack.c.bf16 %v124_v46, %v120_v44  ;;  %v58_v57 = vld [vmem:[%s9406_s0 + $0x18] sm:$0xff]  ;;  %v60_v59 = vld [vmem:[%s9406_s0 + $0x28] sm:$0xff]  ;;  %v230_v44 = vsub.s32 6, %v217_v63 }
  0x3d   :  { %5768 = vmatprep.subr.bf16.mxu1 %v7757_v11  ;;  %7331 = vset.pattern.permute.xlu1 %v7614_v50  ;;  %v7794_v55 = vpack.c.bf16 %v126_v49, %v122_v48  ;;  %v57_v56 = vld [vmem:[%s9406_s0 + $0x10] sm:$0xff]  ;;  %v62_v61 = vld [vmem:[%s9406_s0 + $0x38] sm:$0xff]  ;;  %v63_v7 = vld [vmem:[%s9407_s1] sm:$0xff] }
  0x3e   :  { %504 = vperm.xlu1 %7331, %v56_v29   ;;  %7329 = vset.pattern.permute.xlu0 %v7614_v50  ;;  %v61_v60 = vld [vmem:[%s9406_s0 + $0x30] sm:$0xff]  ;;  %v219_v13 = vrot.slane %v63_v7, %v218_v6  ;;  %v223_v16 = vrot.slane %v63_v7, %v222_v8  ;;  %v227_v21 = vrot.slane %v63_v7, %v226_v12  ;;  %v192_v34 = vld [vmem:[%s9410_s4] sm:$0xf]  ;;  %v299_v12 = vsub.s32 7, %v217_v63 }
  0x3f   :  { %5738 = vmatpush1.bf16.msra.mxu0 %v7760_v20  ;;  %282 = vperm.xlu0 %7329, %v55_v30   ;;  %v288_v29 = vrot.slane %v63_v7, %v263_v15  ;;  %v292_v35 = vrot.slane %v63_v7, %v271_v17  ;;  %v296_v38 = vrot.slane %v63_v7, %v295_v22 }
  0x40   :  { %5770 = vmatpush1.bf16.msra.mxu1 %v7764_v24  ;;  %5740 = vmatprep.subr.bf16.mxu0 %v7766_v25  ;;  %v7859_v26 = vrot.slane %v219_v13, %v218_v6  ;;  %v7861_v30 = vrot.slane %v223_v16, %v218_v6  ;;  %v7866_v37 = vrot.slane %v227_v21, %v218_v6 }
  0x41   :  { %5772 = vmatprep.subr.bf16.mxu1 %v7775_v31  ;;  %v7869_v48 = vrot.slane %v192_v34, %v218_v6  ;;  %v7871_v49 = vrot.slane %v288_v29, %v263_v15 }
  0x42   :  { %7332 = vset.pattern.permute.xlu1 %v7613_v1  ;;  %v59_v1 = vld [vmem:[%s9406_s0 + $0x20] sm:$0xff]  ;;  %9472 = vst [vmem:[#allocation11_spill] sm:$0xff] %v7859_v26  ;;  %9473 = vst [vmem:[#allocation12_spill] sm:$0xff] %v7861_v30 }
  0x43   :  { %5742 = vmatpush1.bf16.msra.mxu0 %v7778_v39  ;;  %678 = vperm.xlu1 %7332, %v57_v56   ;;  %9474 = vst [vmem:[#allocation13_spill] sm:$0xff] %v7866_v37  ;;  %9475 = vst [vmem:[#allocation14_spill] sm:$0xff] %v7869_v48 }
  0x44   :  { %5774 = vmatpush1.bf16.msra.mxu1 %v7782_v42  ;;  %5744 = vmatprep.subr.bf16.mxu0 %v7784_v43  ;;  %9476 = vst [vmem:[#allocation15_spill] sm:$0xff] %v7871_v49 }
  0x45   :  { %5776 = vmatprep.subr.bf16.mxu1 %v7787_v47  ;;  %690 = vperm.xlu0 %7329, %v57_v56   ;;  %v7874_v56 = vrot.slane %v192_v34, %v263_v15 }
  0x47   :  { %5746 = vmatpush1.bf16.msra.mxu0 %v7790_v51  ;;  %864 = vperm.xlu1 %7332, %v58_v57  }
  0x48   :  { %5778 = vmatpush1.bf16.msra.mxu1 %v7794_v55  ;;  %5780 = vmatprep.subr.bf16.mxu0 %v7697_v5 }
  0x49   :  { %5812 = vmatprep.subr.bf16.mxu1 %v7699_v9  ;;  %876 = vperm.xlu0 %7329, %v58_v57   ;;  %v7876_v57 = vrot.slane %v292_v35, %v263_v15 }
  0x4a   :  { %394 = vmatmul.mubr.f32.vlgmr.msra.gmra.mrb[0].mxu0 %v9414_v0 }
  0x4b   :  { %465 = vmatmul.mubr.f32.vlgmr.msra.gmra.mrb[0].mxu1 %v9414_v0  ;;  %5782 = vmatpush1.bf16.msra.mxu0 %v7701_v10  ;;  %9477 = vst [vmem:[#allocation16_spill] sm:$0xff] %v7876_v57 }
  0x4c   :  { %5814 = vmatpush1.bf16.msra.mxu1 %v7704_v14  ;;  %5784 = vmatprep.subr.bf16.mxu0 %v7708_v18 }
  0x4d   :  { %5816 = vmatprep.subr.bf16.mxu1 %v7710_v19  ;;  %579 = vmatprep.mubr.f32.mxu0 %v9414_v0 }
  0x4e   :  { %1050 = vperm.xlu1 %7332, %v59_v1   ;;  %650 = vmatprep.mubr.f32.mxu1 %v9414_v0 }
  0x4f   :  { %1062 = vperm.xlu0 %7329, %v59_v1   ;;  %5786 = vmatpush1.bf16.msra.mxu0 %v7713_v23 }
  0x50   :  { %5818 = vmatpush1.bf16.msra.mxu1 %v7717_v27  ;;  %5788 = vmatprep.subr.bf16.mxu0 %v7719_v28 }
  0x51   :  { %5820 = vmatprep.subr.bf16.mxu1 %v7721_v32 }
  0x52   :  { %1236 = vperm.xlu1 %7332, %v60_v59  }
  0x53   :  { %1248 = vperm.xlu0 %7329, %v60_v59   ;;  %5790 = vmatpush1.bf16.msra.mxu0 %v7724_v36  ;;  %v7879_v59 = vrot.slane %v192_v34, %v222_v8  ;;  %v300_v8 = vrot.slane %v63_v7, %v299_v12 }
  0x54   :  { %5822 = vmatpush1.bf16.msra.mxu1 %v7728_v40  ;;  %5792 = vmatprep.subr.bf16.mxu0 %v7730_v41 }
  0x55   :  { %5824 = vmatprep.subr.bf16.mxu1 %v7733_v45  ;;  %9478 = vst [vmem:[#allocation17_spill] sm:$0xff] %v7879_v59 }
  0x56   :  { %1422 = vperm.xlu1 %7332, %v61_v60  }
  0x57   :  { %1434 = vperm.xlu0 %7329, %v61_v60   ;;  %5794 = vmatpush1.bf16.msra.mxu0 %v7736_v52  ;;  %v7881_v60 = vrot.slane %v296_v38, %v263_v15 }
  0x58   :  { %5826 = vmatpush1.bf16.msra.mxu1 %v7740_v53  ;;  %5796 = vmatprep.subr.bf16.mxu0 %v7742_v54 }
  0x59   :  { %5828 = vmatprep.subr.bf16.mxu1 %v7745_v58  ;;  %9479 = vst [vmem:[#allocation18_spill] sm:$0xff] %v7881_v60 }
  0x5a   :  { %1608 = vperm.xlu1 %7332, %v62_v61  }
  0x5b   :  { %1620 = vperm.xlu0 %7329, %v62_v61   ;;  %5798 = vmatpush1.bf16.msra.mxu0 %v7748_v2  ;;  %v231_v61 = vrot.slane %v63_v7, %v230_v44 }
  0x5c   :  { %5830 = vmatpush1.bf16.msra.mxu1 %v7752_v3  ;;  %5800 = vmatprep.subr.bf16.mxu0 %v7754_v4 }
  0x5d   :  { %5832 = vmatprep.subr.bf16.mxu1 %v7757_v11  ;;  %v7889_v0 = vrot.slane %v231_v61, %v218_v6 }
  0x5f   :  { %5802 = vmatpush1.bf16.msra.mxu0 %v7760_v20 }
  0x60   :  { %5834 = vmatpush1.bf16.msra.mxu1 %v7764_v24  ;;  %5804 = vmatprep.subr.bf16.mxu0 %v7766_v25 }
  0x61   :  { %5836 = vmatprep.subr.bf16.mxu1 %v7775_v31 }
  0x63   :  { %5806 = vmatpush1.bf16.msra.mxu0 %v7778_v39 }
  0x64   :  { %5838 = vmatpush1.bf16.msra.mxu1 %v7782_v42  ;;  %5808 = vmatprep.subr.bf16.mxu0 %v7784_v43 }
  0x65   :  { %5840 = vmatprep.subr.bf16.mxu1 %v7787_v47 }
  0x67   :  { %5810 = vmatpush1.bf16.msra.mxu0 %v7790_v51 }
  0x68   :  { %5842 = vmatpush1.bf16.msra.mxu1 %v7794_v55  ;;  %5844 = vmatprep.subr.bf16.mxu0 %v7697_v5 }
  0x69   :  { %5876 = vmatprep.subr.bf16.mxu1 %v7699_v9 }
  0xb9   :  { %v213_v33 = vpop.permute.xlu0 %212 }
  0xba   :  { %v252_v46 = vmul.f32 %v7859_v26, %v213_v33  ;;  %v253_v50 = vmul.f32 %v7861_v30, %v213_v33  ;;  %v254_v1 = vmul.f32 %v7866_v37, %v213_v33 }
  0xbc   :  { %v277_v13 = vadd.f32 %v7869_v48, %v252_v46  ;;  %v278_v21 = vadd.f32 %v7874_v56, %v253_v50  ;;  %v279_v29 = vadd.f32 %v7879_v59, %v254_v1  ;;  %v7892_v48 = vrot.slane %v300_v8, %v263_v15  ;;  %v493_v8 = vpop.permute.xlu1 %492 }
  0xbe   :  { %v283_v62 = vpop.permute.xlu0 %282  ;;  %9480 = vst [vmem:[#allocation19_spill] sm:$0xff] %v7892_v48 }
  0xbf   :  { %v321_v16 = vmul.f32 %v7871_v49, %v283_v62  ;;  %v322_v22 = vmul.f32 %v7876_v57, %v283_v62  ;;  %v323_v35 = vmul.f32 %v7881_v60, %v283_v62  ;;  %v255_v49 = vmul.f32 %v7889_v0, %v213_v33 }
  0xc0   :  { %v7894_v57 = vrot.slane %v192_v34, %v271_v17  ;;  %v324_v7 = vmul.f32 %v7892_v48, %v283_v62 }
  0xc1   :  { %v325_v38 = vadd.f32 %v321_v16, %v277_v13  ;;  %v326_v44 = vadd.f32 %v322_v22, %v278_v21  ;;  %v327_v63 = vadd.f32 %v323_v35, %v279_v29  ;;  %v9481_v35 = vmov 0.0  }
  0xc2   :  { %v280_v6 = vadd.f32 %v7894_v57, %v255_v49 }
 0x11d   :  { %v395_v37 = vpop.f32.mrb[0].mxu0 }
 0x11e   :  { %v471_v30 = vadd.f32 %v395_v37, %v325_v38  ;;  %v466_v26 = vpop.f32.mrb[0].mxu1  ;;  %v397_v46 = vpop.f32.mrb[1].mxu0  ;;  %v328_v37 = vadd.f32 %v324_v7, %v280_v6  ;;  %v9482_v38 = vld [vmem:[#allocation11_spill] sm:$0xff]  ;;  %v9485_v7 = vld [vmem:[#allocation14_spill] sm:$0xff] }
 0x11f   :  { %v472_v50 = vadd.f32 %v397_v46, %v326_v44  ;;  %v468_v1 = vpop.f32.mrb[1].mxu1  ;;  %v473_v60 = vadd.f32 %v466_v26, %v327_v63  ;;  %v495_v44 = vmul.f32 %v493_v8, %v9482_v38  ;;  %v9483_v63 = vld [vmem:[#allocation12_spill] sm:$0xff]  ;;  %v505_v6 = vpop.permute.xlu1 %504 }
 0x120   :  { %7333 = vtanh.f32 %v471_v30  ;;  %v474_v61 = vadd.f32 %v468_v1, %v328_v37  ;;  %v496_v46 = vmul.f32 %v493_v8, %v9483_v63 }
 0x121   :  { %7335 = vtanh.f32 %v472_v50  ;;  %v9484_v50 = vld [vmem:[#allocation13_spill] sm:$0xff]  ;;  %v499_v37 = vadd.f32 %v495_v44, %v9485_v7  ;;  %v498_v44 = vmul.f32 %v493_v8, %v7889_v0 }
 0x122   :  { %7337 = vtanh.f32 %v473_v60  ;;  %v497_v1 = vmul.f32 %v493_v8, %v9484_v50 }
 0x123   :  { %7339 = vtanh.f32 %v474_v61  ;;  %v9486_v61 = vld [vmem:[#allocation15_spill] sm:$0xff] }
 0x12a   :  { %v7334_v12 = vpop.eup %7333 }
 0x12b   :  { %v479_v13 = vmul.f32 0.5, %v7334_v12  ;;  %v7336_v16 = vpop.eup %7335  ;;  %v507_v12 = vmul.f32 %v505_v6, %v9486_v61 }
 0x12c   :  { %v480_v15 = vmul.f32 0.5, %v7336_v16  ;;  %v7338_v21 = vpop.eup %7337  ;;  %v9487_v16 = vld [vmem:[#allocation16_spill] sm:$0xff] }
 0x12d   :  { %v482_v33 = vadd.f32 0.5, %v479_v13  ;;  %v7340_v26 = vpop.eup %7339  ;;  %v500_v13 = vadd.f32 %v496_v46, %v7874_v56  ;;  %v502_v46 = vadd.f32 %v498_v44, %v7894_v57  ;;  %v9490_v44 = vld [vmem:[#allocation14_spill] sm:$0xff] }
 0x12e   :  { %v483_v17 = vadd.f32 0.5, %v480_v15  ;;  %v481_v49 = vmul.f32 0.5, %v7340_v26  ;;  %v501_v15 = vadd.f32 %v497_v1, %v7879_v59  ;;  %v510_v1 = vmul.f32 %v505_v6, %v7892_v48 }
 0x12f   :  { %v486_v34 = vmul.f32 %v7338_v21, %v482_v33  ;;  %v508_v33 = vmul.f32 %v505_v6, %v9487_v16  ;;  %v9488_v21 = vld [vmem:[#allocation18_spill] sm:$0xff] }
 0x130   :  { %v485_v22 = vmul.f32 0.0, %v483_v17  ;;  %v484_v62 = vadd.f32 0.5, %v481_v49  ;;  %v509_v17 = vmul.f32 %v505_v6, %v9488_v21  ;;  %v514_v21 = vadd.f32 %v510_v1, %v502_v46  ;;  %v9491_v1 = vld [vmem:[#allocation15_spill] sm:$0xff] }
 0x131   :  { %v512_v49 = vadd.f32 %v508_v33, %v500_v13 }
 0x132   :  { %v7898_v30 = vadd.f32 %v486_v34, %v485_v22  ;;  %v511_v34 = vadd.f32 %v507_v12, %v499_v37 }
 0x134   :  { %7341 = vtanh.f32 %v7898_v30 }
 0x13e   :  { %v7342_v60 = vpop.eup %7341 }
 0x13f   :  { %v489_v29 = vmul.f32 %v7342_v60, %v484_v62  ;;  %v513_v60 = vadd.f32 %v509_v17, %v501_v15 }
 0x141   :  { %580 = vmatmul.mubr.f32.vlgmr.msra.gmra.mrb[2].mxu0 %v489_v29  ;;  %651 = vmatmul.mubr.f32.vlgmr.msra.gmra.mrb[2].mxu1 %v489_v29 }
 0x142   :  { %5846 = vmatpush1.bf16.msra.mxu0 %v7701_v10  ;;  %5878 = vmatpush1.bf16.msra.mxu1 %v7704_v14 }
 0x143   :  { %5848 = vmatprep.subr.bf16.mxu0 %v7708_v18  ;;  %5880 = vmatprep.subr.bf16.mxu1 %v7710_v19 }
 0x144   :  { %765 = vmatprep.mubr.f32.mxu0 %v9481_v35  ;;  %836 = vmatprep.mubr.f32.mxu1 %v9481_v35 }
 0x146   :  { %5850 = vmatpush1.bf16.msra.mxu0 %v7713_v23  ;;  %5882 = vmatpush1.bf16.msra.mxu1 %v7717_v27 }
 0x147   :  { %5852 = vmatprep.subr.bf16.mxu0 %v7719_v28  ;;  %5884 = vmatprep.subr.bf16.mxu1 %v7721_v32 }
 0x14a   :  { %5854 = vmatpush1.bf16.msra.mxu0 %v7724_v36  ;;  %5886 = vmatpush1.bf16.msra.mxu1 %v7728_v40 }
 0x14b   :  { %5856 = vmatprep.subr.bf16.mxu0 %v7730_v41  ;;  %5888 = vmatprep.subr.bf16.mxu1 %v7733_v45 }
 0x14e   :  { %5858 = vmatpush1.bf16.msra.mxu0 %v7736_v52  ;;  %5890 = vmatpush1.bf16.msra.mxu1 %v7740_v53 }
 0x14f   :  { %5860 = vmatprep.subr.bf16.mxu0 %v7742_v54  ;;  %5892 = vmatprep.subr.bf16.mxu1 %v7745_v58 }
 0x152   :  { %5862 = vmatpush1.bf16.msra.mxu0 %v7748_v2  ;;  %5894 = vmatpush1.bf16.msra.mxu1 %v7752_v3 }
 0x153   :  { %5864 = vmatprep.subr.bf16.mxu0 %v7754_v4  ;;  %5896 = vmatprep.subr.bf16.mxu1 %v7757_v11 }
 0x156   :  { %5866 = vmatpush1.bf16.msra.mxu0 %v7760_v20  ;;  %5898 = vmatpush1.bf16.msra.mxu1 %v7764_v24 }
 0x157   :  { %5868 = vmatprep.subr.bf16.mxu0 %v7766_v25  ;;  %5900 = vmatprep.subr.bf16.mxu1 %v7775_v31 }
 0x15a   :  { %5870 = vmatpush1.bf16.msra.mxu0 %v7778_v39  ;;  %5902 = vmatpush1.bf16.msra.mxu1 %v7782_v42 }
 0x15b   :  { %5872 = vmatprep.subr.bf16.mxu0 %v7784_v43  ;;  %5904 = vmatprep.subr.bf16.mxu1 %v7787_v47 }
 0x15e   :  { %5874 = vmatpush1.bf16.msra.mxu0 %v7790_v51  ;;  %5906 = vmatpush1.bf16.msra.mxu1 %v7794_v55 }
 0x15f   :  { %5908 = vmatprep.subr.bf16.mxu0 %v7697_v5  ;;  %5940 = vmatprep.subr.bf16.mxu1 %v7699_v9 }
 0x214   :  { %v581_v22 = vpop.f32.mrb[2].mxu0  ;;  %v652_v26 = vpop.f32.mrb[2].mxu1 }
 0x215   :  { %v657_v62 = vadd.f32 %v581_v22, %v511_v34  ;;  %v583_v29 = vpop.f32.mrb[3].mxu0  ;;  %v654_v50 = vpop.f32.mrb[3].mxu1  ;;  %v659_v61 = vadd.f32 %v652_v26, %v513_v60 }
 0x216   :  { %v658_v7 = vadd.f32 %v583_v29, %v512_v49  ;;  %v660_v37 = vadd.f32 %v654_v50, %v514_v21  ;;  %v691_v29 = vpop.permute.xlu0 %690 }
 0x217   :  { %7343 = vtanh.f32 %v657_v62  ;;  %v9489_v62 = vld [vmem:[#allocation13_spill] sm:$0xff] }
 0x218   :  { %7345 = vtanh.f32 %v658_v7 }
 0x219   :  { %7347 = vtanh.f32 %v659_v61 }
 0x21a   :  { %7349 = vtanh.f32 %v660_v37  ;;  %v693_v37 = vmul.f32 %v691_v29, %v9491_v1 }
 0x221   :  { %v7344_v12 = vpop.eup %7343 }
 0x222   :  { %v665_v59 = vmul.f32 0.5, %v7344_v12  ;;  %v7346_v13 = vpop.eup %7345 }
 0x223   :  { %v666_v15 = vmul.f32 0.5, %v7346_v13  ;;  %v7348_v17 = vpop.eup %7347  ;;  %v694_v13 = vmul.f32 %v691_v29, %v9487_v16 }
 0x224   :  { %v668_v33 = vadd.f32 0.5, %v665_v59  ;;  %v7350_v7 = vpop.eup %7349  ;;  %v679_v59 = vpop.permute.xlu1 %678 }
 0x225   :  { %v669_v34 = vadd.f32 0.5, %v666_v15  ;;  %v667_v6 = vmul.f32 0.5, %v7350_v7  ;;  %v682_v21 = vmul.f32 %v679_v59, %v9483_v63  ;;  %v683_v60 = vmul.f32 %v679_v59, %v9489_v62 }
 0x226   :  { %v672_v8 = vmul.f32 %v7348_v17, %v668_v33  ;;  %v9492_v33 = vld [vmem:[#allocation17_spill] sm:$0xff]  ;;  %v9493_v17 = vld [vmem:[#allocation18_spill] sm:$0xff] }
 0x227   :  { %v671_v22 = vmul.f32 %v669_v34, %v7898_v30  ;;  %v670_v61 = vadd.f32 0.5, %v667_v6  ;;  %v681_v30 = vmul.f32 %v679_v59, %v9482_v38  ;;  %v686_v12 = vadd.f32 %v682_v21, %v7874_v56 }
 0x228   :  { %v687_v15 = vadd.f32 %v683_v60, %v9492_v33  ;;  %v695_v34 = vmul.f32 %v691_v29, %v9493_v17  ;;  %v696_v60 = vmul.f32 %v691_v29, %v7892_v48 }
 0x229   :  { %v7948_v26 = vadd.f32 %v672_v8, %v671_v22  ;;  %v685_v46 = vadd.f32 %v681_v30, %v9490_v44  ;;  %v698_v6 = vadd.f32 %v694_v13, %v686_v12  ;;  %v684_v30 = vmul.f32 %v679_v59, %v7889_v0 }
 0x22b   :  { %7351 = vtanh.f32 %v7948_v26  ;;  %v697_v8 = vadd.f32 %v693_v37, %v685_v46  ;;  %v688_v21 = vadd.f32 %v684_v30, %v7894_v57  ;;  %v9495_v30 = vld [vmem:[#allocation14_spill] sm:$0xff] }
 0x22d   :  { %v700_v17 = vadd.f32 %v696_v60, %v688_v21  ;;  %v9496_v60 = vld [vmem:[#allocation15_spill] sm:$0xff] }
 0x235   :  { %v7352_v49 = vpop.eup %7351 }
 0x236   :  { %v675_v50 = vmul.f32 %v7352_v49, %v670_v61  ;;  %v699_v49 = vadd.f32 %v695_v34, %v687_v15 }
 0x238   :  { %766 = vmatmul.mubr.f32.vlgmr.msra.gmra.mrb[4].mxu0 %v675_v50  ;;  %837 = vmatmul.mubr.f32.vlgmr.msra.gmra.mrb[4].mxu1 %v675_v50 }
 0x239   :  { %5910 = vmatpush1.bf16.msra.mxu0 %v7701_v10  ;;  %5942 = vmatpush1.bf16.msra.mxu1 %v7704_v14 }
 0x23a   :  { %5912 = vmatprep.subr.bf16.mxu0 %v7708_v18  ;;  %5944 = vmatprep.subr.bf16.mxu1 %v7710_v19 }
 0x23b   :  { %951 = vmatprep.mubr.f32.mxu0 %v9481_v35  ;;  %1022 = vmatprep.mubr.f32.mxu1 %v9481_v35 }
 0x23d   :  { %5914 = vmatpush1.bf16.msra.mxu0 %v7713_v23  ;;  %5946 = vmatpush1.bf16.msra.mxu1 %v7717_v27 }
 0x23e   :  { %5916 = vmatprep.subr.bf16.mxu0 %v7719_v28  ;;  %5948 = vmatprep.subr.bf16.mxu1 %v7721_v32 }
 0x241   :  { %5918 = vmatpush1.bf16.msra.mxu0 %v7724_v36  ;;  %5950 = vmatpush1.bf16.msra.mxu1 %v7728_v40 }
 0x242   :  { %5920 = vmatprep.subr.bf16.mxu0 %v7730_v41  ;;  %5952 = vmatprep.subr.bf16.mxu1 %v7733_v45 }
 0x245   :  { %5922 = vmatpush1.bf16.msra.mxu0 %v7736_v52  ;;  %5954 = vmatpush1.bf16.msra.mxu1 %v7740_v53 }
 0x246   :  { %5924 = vmatprep.subr.bf16.mxu0 %v7742_v54  ;;  %5956 = vmatprep.subr.bf16.mxu1 %v7745_v58 }
 0x249   :  { %5926 = vmatpush1.bf16.msra.mxu0 %v7748_v2  ;;  %5958 = vmatpush1.bf16.msra.mxu1 %v7752_v3 }
 0x24a   :  { %5928 = vmatprep.subr.bf16.mxu0 %v7754_v4  ;;  %5960 = vmatprep.subr.bf16.mxu1 %v7757_v11 }
 0x24d   :  { %5930 = vmatpush1.bf16.msra.mxu0 %v7760_v20  ;;  %5962 = vmatpush1.bf16.msra.mxu1 %v7764_v24 }
 0x24e   :  { %5932 = vmatprep.subr.bf16.mxu0 %v7766_v25  ;;  %5964 = vmatprep.subr.bf16.mxu1 %v7775_v31 }
 0x251   :  { %5934 = vmatpush1.bf16.msra.mxu0 %v7778_v39  ;;  %5966 = vmatpush1.bf16.msra.mxu1 %v7782_v42 }
 0x252   :  { %5936 = vmatprep.subr.bf16.mxu0 %v7784_v43  ;;  %5968 = vmatprep.subr.bf16.mxu1 %v7787_v47 }
 0x255   :  { %5938 = vmatpush1.bf16.msra.mxu0 %v7790_v51  ;;  %5970 = vmatpush1.bf16.msra.mxu1 %v7794_v55 }
 0x256   :  { %5972 = vmatprep.subr.bf16.mxu0 %v7697_v5  ;;  %6004 = vmatprep.subr.bf16.mxu1 %v7699_v9 }
 0x30b   :  { %v767_v22 = vpop.f32.mrb[4].mxu0  ;;  %v838_v7 = vpop.f32.mrb[4].mxu1 }
 0x30c   :  { %v843_v61 = vadd.f32 %v767_v22, %v697_v8  ;;  %v769_v50 = vpop.f32.mrb[5].mxu0  ;;  %v840_v62 = vpop.f32.mrb[5].mxu1  ;;  %v845_v1 = vadd.f32 %v838_v7, %v699_v49 }
 0x30d   :  { %v844_v44 = vadd.f32 %v769_v50, %v698_v6  ;;  %v846_v46 = vadd.f32 %v840_v62, %v700_v17  ;;  %v877_v50 = vpop.permute.xlu0 %876 }
 0x30e   :  { %7353 = vtanh.f32 %v843_v61  ;;  %v9494_v61 = vld [vmem:[#allocation13_spill] sm:$0xff] }
 0x30f   :  { %7355 = vtanh.f32 %v844_v44 }
 0x310   :  { %7357 = vtanh.f32 %v845_v1 }
 0x311   :  { %7359 = vtanh.f32 %v846_v46  ;;  %v879_v46 = vmul.f32 %v877_v50, %v9496_v60 }
 0x318   :  { %v7354_v37 = vpop.eup %7353 }
 0x319   :  { %v851_v33 = vmul.f32 0.5, %v7354_v37  ;;  %v7356_v12 = vpop.eup %7355 }
 0x31a   :  { %v852_v15 = vmul.f32 0.5, %v7356_v12  ;;  %v7358_v34 = vpop.eup %7357  ;;  %v880_v12 = vmul.f32 %v877_v50, %v9487_v16 }
 0x31b   :  { %v854_v13 = vadd.f32 0.5, %v851_v33  ;;  %v7360_v44 = vpop.eup %7359 }
 0x31c   :  { %v855_v8 = vadd.f32 0.5, %v852_v15  ;;  %v853_v29 = vmul.f32 0.5, %v7360_v44 }
 0x31d   :  { %v858_v59 = vmul.f32 %v7358_v34, %v854_v13  ;;  %v9497_v13 = vld [vmem:[#allocation17_spill] sm:$0xff]  ;;  %v9498_v34 = vld [vmem:[#allocation18_spill] sm:$0xff] }
 0x31e   :  { %v857_v22 = vmul.f32 %v855_v8, %v7948_v26  ;;  %v856_v1 = vadd.f32 0.5, %v853_v29  ;;  %v865_v26 = vpop.permute.xlu1 %864  ;;  %v881_v8 = vmul.f32 %v877_v50, %v9498_v34 }
 0x31f   :  { %v867_v33 = vmul.f32 %v865_v26, %v9482_v38  ;;  %v868_v17 = vmul.f32 %v865_v26, %v9483_v63  ;;  %v869_v49 = vmul.f32 %v865_v26, %v9494_v61 }
 0x320   :  { %v7998_v7 = vadd.f32 %v858_v59, %v857_v22 }
 0x321   :  { %v871_v21 = vadd.f32 %v867_v33, %v9495_v30  ;;  %v872_v37 = vadd.f32 %v868_v17, %v7874_v56  ;;  %v873_v15 = vadd.f32 %v869_v49, %v9497_v13  ;;  %v870_v33 = vmul.f32 %v865_v26, %v7889_v0 }
 0x322   :  { %7361 = vtanh.f32 %v7998_v7  ;;  %v882_v49 = vmul.f32 %v877_v50, %v7892_v48 }
 0x323   :  { %v883_v59 = vadd.f32 %v879_v46, %v871_v21  ;;  %v884_v29 = vadd.f32 %v880_v12, %v872_v37  ;;  %v874_v17 = vadd.f32 %v870_v33, %v7894_v57  ;;  %v9500_v33 = vld [vmem:[#allocation14_spill] sm:$0xff] }
 0x325   :  { %v886_v34 = vadd.f32 %v882_v49, %v874_v17  ;;  %v9501_v49 = vld [vmem:[#allocation15_spill] sm:$0xff] }
 0x32c   :  { %v7362_v6 = vpop.eup %7361 }
 0x32d   :  { %v861_v62 = vmul.f32 %v7362_v6, %v856_v1  ;;  %v885_v6 = vadd.f32 %v881_v8, %v873_v15 }
 0x32f   :  { %952 = vmatmul.mubr.f32.vlgmr.msra.gmra.mrb[6].mxu0 %v861_v62  ;;  %1023 = vmatmul.mubr.f32.vlgmr.msra.gmra.mrb[6].mxu1 %v861_v62 }
 0x330   :  { %5974 = vmatpush1.bf16.msra.mxu0 %v7701_v10  ;;  %6006 = vmatpush1.bf16.msra.mxu1 %v7704_v14 }
 0x331   :  { %5976 = vmatprep.subr.bf16.mxu0 %v7708_v18  ;;  %6008 = vmatprep.subr.bf16.mxu1 %v7710_v19 }
 0x332   :  { %1137 = vmatprep.mubr.f32.mxu0 %v9481_v35  ;;  %1208 = vmatprep.mubr.f32.mxu1 %v9481_v35 }
 0x334   :  { %5978 = vmatpush1.bf16.msra.mxu0 %v7713_v23  ;;  %6010 = vmatpush1.bf16.msra.mxu1 %v7717_v27 }
 0x335   :  { %5980 = vmatprep.subr.bf16.mxu0 %v7719_v28  ;;  %6012 = vmatprep.subr.bf16.mxu1 %v7721_v32 }
 0x338   :  { %5982 = vmatpush1.bf16.msra.mxu0 %v7724_v36  ;;  %6014 = vmatpush1.bf16.msra.mxu1 %v7728_v40 }
 0x339   :  { %5984 = vmatprep.subr.bf16.mxu0 %v7730_v41  ;;  %6016 = vmatprep.subr.bf16.mxu1 %v7733_v45 }
 0x33c   :  { %5986 = vmatpush1.bf16.msra.mxu0 %v7736_v52  ;;  %6018 = vmatpush1.bf16.msra.mxu1 %v7740_v53 }
 0x33d   :  { %5988 = vmatprep.subr.bf16.mxu0 %v7742_v54  ;;  %6020 = vmatprep.subr.bf16.mxu1 %v7745_v58 }
 0x340   :  { %5990 = vmatpush1.bf16.msra.mxu0 %v7748_v2  ;;  %6022 = vmatpush1.bf16.msra.mxu1 %v7752_v3 }
 0x341   :  { %5992 = vmatprep.subr.bf16.mxu0 %v7754_v4  ;;  %6024 = vmatprep.subr.bf16.mxu1 %v7757_v11 }
 0x344   :  { %5994 = vmatpush1.bf16.msra.mxu0 %v7760_v20  ;;  %6026 = vmatpush1.bf16.msra.mxu1 %v7764_v24 }
 0x345   :  { %5996 = vmatprep.subr.bf16.mxu0 %v7766_v25  ;;  %6028 = vmatprep.subr.bf16.mxu1 %v7775_v31 }
 0x348   :  { %5998 = vmatpush1.bf16.msra.mxu0 %v7778_v39  ;;  %6030 = vmatpush1.bf16.msra.mxu1 %v7782_v42 }
 0x349   :  { %6000 = vmatprep.subr.bf16.mxu0 %v7784_v43  ;;  %6032 = vmatprep.subr.bf16.mxu1 %v7787_v47 }
 0x34c   :  { %6002 = vmatpush1.bf16.msra.mxu0 %v7790_v51  ;;  %6034 = vmatpush1.bf16.msra.mxu1 %v7794_v55 }
 0x34d   :  { %6036 = vmatprep.subr.bf16.mxu0 %v7697_v5  ;;  %6068 = vmatprep.subr.bf16.mxu1 %v7699_v9 }
 0x402   :  { %v953_v22 = vpop.f32.mrb[6].mxu0  ;;  %v1024_v44 = vpop.f32.mrb[6].mxu1 }
 0x403   :  { %v1029_v1 = vadd.f32 %v953_v22, %v883_v59  ;;  %v955_v62 = vpop.f32.mrb[7].mxu0  ;;  %v1026_v61 = vpop.f32.mrb[7].mxu1  ;;  %v1031_v60 = vadd.f32 %v1024_v44, %v885_v6 }
 0x404   :  { %v1030_v30 = vadd.f32 %v955_v62, %v884_v29  ;;  %v1032_v21 = vadd.f32 %v1026_v61, %v886_v34  ;;  %v1063_v62 = vpop.permute.xlu0 %1062 }
 0x405   :  { %7363 = vtanh.f32 %v1029_v1  ;;  %v9499_v1 = vld [vmem:[#allocation13_spill] sm:$0xff] }
 0x406   :  { %7365 = vtanh.f32 %v1030_v30 }
 0x407   :  { %7367 = vtanh.f32 %v1031_v60 }
 0x408   :  { %7369 = vtanh.f32 %v1032_v21  ;;  %v1065_v21 = vmul.f32 %v1063_v62, %v9501_v49 }
 0x40f   :  { %v7364_v46 = vpop.eup %7363 }
 0x410   :  { %v1037_v13 = vmul.f32 0.5, %v7364_v46  ;;  %v7366_v37 = vpop.eup %7365 }
 0x411   :  { %v1038_v15 = vmul.f32 0.5, %v7366_v37  ;;  %v7368_v8 = vpop.eup %7367  ;;  %v1066_v37 = vmul.f32 %v1063_v62, %v9487_v16 }
 0x412   :  { %v1040_v12 = vadd.f32 0.5, %v1037_v13  ;;  %v7370_v30 = vpop.eup %7369 }
 0x413   :  { %v1041_v59 = vadd.f32 0.5, %v1038_v15  ;;  %v1039_v50 = vmul.f32 0.5, %v7370_v30 }
 0x414   :  { %v1044_v26 = vmul.f32 %v7368_v8, %v1040_v12  ;;  %v9502_v12 = vld [vmem:[#allocation17_spill] sm:$0xff]  ;;  %v9503_v8 = vld [vmem:[#allocation18_spill] sm:$0xff] }
 0x415   :  { %v1043_v22 = vmul.f32 %v1041_v59, %v7998_v7  ;;  %v1042_v60 = vadd.f32 0.5, %v1039_v50  ;;  %v1051_v7 = vpop.permute.xlu1 %1050  ;;  %v1067_v59 = vmul.f32 %v1063_v62, %v9503_v8 }
 0x416   :  { %v1053_v13 = vmul.f32 %v1051_v7, %v9482_v38  ;;  %v1054_v34 = vmul.f32 %v1051_v7, %v9483_v63  ;;  %v1055_v6 = vmul.f32 %v1051_v7, %v9499_v1 }
 0x417   :  { %v8048_v44 = vadd.f32 %v1044_v26, %v1043_v22 }
 0x418   :  { %v1057_v17 = vadd.f32 %v1053_v13, %v9500_v33  ;;  %v1058_v46 = vadd.f32 %v1054_v34, %v7874_v56  ;;  %v1059_v15 = vadd.f32 %v1055_v6, %v9502_v12  ;;  %v1056_v13 = vmul.f32 %v1051_v7, %v7889_v0 }
 0x419   :  { %7371 = vtanh.f32 %v8048_v44  ;;  %v1068_v6 = vmul.f32 %v1063_v62, %v7892_v48 }
 0x41a   :  { %v1069_v26 = vadd.f32 %v1065_v21, %v1057_v17  ;;  %v1070_v50 = vadd.f32 %v1066_v37, %v1058_v46  ;;  %v1060_v34 = vadd.f32 %v1056_v13, %v7894_v57  ;;  %v9505_v13 = vld [vmem:[#allocation14_spill] sm:$0xff] }
 0x41c   :  { %v1072_v8 = vadd.f32 %v1068_v6, %v1060_v34  ;;  %v9506_v6 = vld [vmem:[#allocation15_spill] sm:$0xff] }
 0x423   :  { %v7372_v29 = vpop.eup %7371 }
 0x424   :  { %v1047_v61 = vmul.f32 %v7372_v29, %v1042_v60  ;;  %v1071_v29 = vadd.f32 %v1067_v59, %v1059_v15 }
 0x426   :  { %1138 = vmatmul.mubr.f32.vlgmr.msra.gmra.mrb[8].mxu0 %v1047_v61  ;;  %1209 = vmatmul.mubr.f32.vlgmr.msra.gmra.mrb[8].mxu1 %v1047_v61 }
 0x427   :  { %6038 = vmatpush1.bf16.msra.mxu0 %v7701_v10  ;;  %6070 = vmatpush1.bf16.msra.mxu1 %v7704_v14 }
 0x428   :  { %6040 = vmatprep.subr.bf16.mxu0 %v7708_v18  ;;  %6072 = vmatprep.subr.bf16.mxu1 %v7710_v19 }
 0x429   :  { %1323 = vmatprep.mubr.f32.mxu0 %v9481_v35  ;;  %1394 = vmatprep.mubr.f32.mxu1 %v9481_v35 }
 0x42b   :  { %6042 = vmatpush1.bf16.msra.mxu0 %v7713_v23  ;;  %6074 = vmatpush1.bf16.msra.mxu1 %v7717_v27 }
 0x42c   :  { %6044 = vmatprep.subr.bf16.mxu0 %v7719_v28  ;;  %6076 = vmatprep.subr.bf16.mxu1 %v7721_v32 }
 0x42f   :  { %6046 = vmatpush1.bf16.msra.mxu0 %v7724_v36  ;;  %6078 = vmatpush1.bf16.msra.mxu1 %v7728_v40 }
 0x430   :  { %6048 = vmatprep.subr.bf16.mxu0 %v7730_v41  ;;  %6080 = vmatprep.subr.bf16.mxu1 %v7733_v45 }
 0x433   :  { %6050 = vmatpush1.bf16.msra.mxu0 %v7736_v52  ;;  %6082 = vmatpush1.bf16.msra.mxu1 %v7740_v53 }
 0x434   :  { %6052 = vmatprep.subr.bf16.mxu0 %v7742_v54  ;;  %6084 = vmatprep.subr.bf16.mxu1 %v7745_v58 }
 0x437   :  { %6054 = vmatpush1.bf16.msra.mxu0 %v7748_v2  ;;  %6086 = vmatpush1.bf16.msra.mxu1 %v7752_v3 }
 0x438   :  { %6056 = vmatprep.subr.bf16.mxu0 %v7754_v4  ;;  %6088 = vmatprep.subr.bf16.mxu1 %v7757_v11 }
 0x43b   :  { %6058 = vmatpush1.bf16.msra.mxu0 %v7760_v20  ;;  %6090 = vmatpush1.bf16.msra.mxu1 %v7764_v24 }
 0x43c   :  { %6060 = vmatprep.subr.bf16.mxu0 %v7766_v25  ;;  %6092 = vmatprep.subr.bf16.mxu1 %v7775_v31 }
 0x43f   :  { %6062 = vmatpush1.bf16.msra.mxu0 %v7778_v39  ;;  %6094 = vmatpush1.bf16.msra.mxu1 %v7782_v42 }
 0x440   :  { %6064 = vmatprep.subr.bf16.mxu0 %v7784_v43  ;;  %6096 = vmatprep.subr.bf16.mxu1 %v7787_v47 }
 0x443   :  { %6066 = vmatpush1.bf16.msra.mxu0 %v7790_v51  ;;  %6098 = vmatpush1.bf16.msra.mxu1 %v7794_v55 }
 0x444   :  { %6100 = vmatprep.subr.bf16.mxu0 %v7697_v5  ;;  %6132 = vmatprep.subr.bf16.mxu1 %v7699_v9 }
 0x4f9   :  { %v1139_v22 = vpop.f32.mrb[8].mxu0  ;;  %v1210_v30 = vpop.f32.mrb[8].mxu1 }
 0x4fa   :  { %v1215_v60 = vadd.f32 %v1139_v22, %v1069_v26  ;;  %v1141_v61 = vpop.f32.mrb[9].mxu0  ;;  %v1212_v1 = vpop.f32.mrb[9].mxu1  ;;  %v1217_v49 = vadd.f32 %v1210_v30, %v1071_v29 }
 0x4fb   :  { %v1216_v33 = vadd.f32 %v1141_v61, %v1070_v50  ;;  %v1218_v17 = vadd.f32 %v1212_v1, %v1072_v8  ;;  %v1249_v61 = vpop.permute.xlu0 %1248 }
 0x4fc   :  { %7373 = vtanh.f32 %v1215_v60  ;;  %v9504_v60 = vld [vmem:[#allocation13_spill] sm:$0xff] }
 0x4fd   :  { %7375 = vtanh.f32 %v1216_v33 }
 0x4fe   :  { %7377 = vtanh.f32 %v1217_v49 }
 0x4ff   :  { %7379 = vtanh.f32 %v1218_v17  ;;  %v1251_v17 = vmul.f32 %v1249_v61, %v9506_v6 }
 0x506   :  { %v7374_v21 = vpop.eup %7373 }
 0x507   :  { %v1223_v12 = vmul.f32 0.5, %v7374_v21  ;;  %v7376_v46 = vpop.eup %7375 }
 0x508   :  { %v1224_v15 = vmul.f32 0.5, %v7376_v46  ;;  %v7378_v59 = vpop.eup %7377  ;;  %v1252_v46 = vmul.f32 %v1249_v61, %v9487_v16 }
 0x509   :  { %v1226_v37 = vadd.f32 0.5, %v1223_v12  ;;  %v7380_v33 = vpop.eup %7379 }
 0x50a   :  { %v1227_v26 = vadd.f32 0.5, %v1224_v15  ;;  %v1225_v62 = vmul.f32 0.5, %v7380_v33  ;;  %v9508_v15 = vld [vmem:[#allocation18_spill] sm:$0xff] }
 0x50b   :  { %v1230_v7 = vmul.f32 %v7378_v59, %v1226_v37  ;;  %v9507_v37 = vld [vmem:[#allocation17_spill] sm:$0xff] }
 0x50c   :  { %v1229_v22 = vmul.f32 %v1227_v26, %v8048_v44  ;;  %v1228_v49 = vadd.f32 0.5, %v1225_v62  ;;  %v1237_v44 = vpop.permute.xlu1 %1236 }
 0x50d   :  { %v1239_v12 = vmul.f32 %v1237_v44, %v9482_v38  ;;  %v1240_v8 = vmul.f32 %v1237_v44, %v9483_v63  ;;  %v1241_v29 = vmul.f32 %v1237_v44, %v9504_v60 }
 0x50e   :  { %v8098_v30 = vadd.f32 %v1230_v7, %v1229_v22 }
 0x50f   :  { %v1243_v34 = vadd.f32 %v1239_v12, %v9505_v13  ;;  %v1244_v21 = vadd.f32 %v1240_v8, %v7874_v56 }
 0x510   :  { %7381 = vtanh.f32 %v8098_v30 }
 0x511   :  { %v1255_v59 = vadd.f32 %v1251_v17, %v1243_v34  ;;  %v1256_v22 = vadd.f32 %v1252_v46, %v1244_v21 }
 0x51a   :  { %v7382_v50 = vpop.eup %7381 }
 0x51b   :  { %v1233_v1 = vmul.f32 %v7382_v50, %v1228_v49 }
 0x51d   :  { %1324 = vmatmul.mubr.f32.vlgmr.msra.gmra.mrb[10].mxu0 %v1233_v1  ;;  %1395 = vmatmul.mubr.f32.vlgmr.msra.gmra.mrb[10].mxu1 %v1233_v1  ;;  %v1242_v1 = vmul.f32 %v1237_v44, %v7889_v0 }
 0x51e   :  { %6102 = vmatpush1.bf16.msra.mxu0 %v7701_v10  ;;  %6134 = vmatpush1.bf16.msra.mxu1 %v7704_v14 }
 0x51f   :  { %6104 = vmatprep.subr.bf16.mxu0 %v7708_v18  ;;  %6136 = vmatprep.subr.bf16.mxu1 %v7710_v19  ;;  %v1246_v8 = vadd.f32 %v1242_v1, %v7894_v57 }
 0x520   :  { %1509 = vmatprep.mubr.f32.mxu0 %v9481_v35  ;;  %1580 = vmatprep.mubr.f32.mxu1 %v9481_v35 }
 0x522   :  { %6106 = vmatpush1.bf16.msra.mxu0 %v7713_v23  ;;  %6138 = vmatpush1.bf16.msra.mxu1 %v7717_v27 }
 0x523   :  { %6108 = vmatprep.subr.bf16.mxu0 %v7719_v28  ;;  %6140 = vmatprep.subr.bf16.mxu1 %v7721_v32 }
 0x526   :  { %6110 = vmatpush1.bf16.msra.mxu0 %v7724_v36  ;;  %6142 = vmatpush1.bf16.msra.mxu1 %v7728_v40 }
 0x527   :  { %6112 = vmatprep.subr.bf16.mxu0 %v7730_v41  ;;  %6144 = vmatprep.subr.bf16.mxu1 %v7733_v45 }
 0x52a   :  { %6114 = vmatpush1.bf16.msra.mxu0 %v7736_v52  ;;  %6146 = vmatpush1.bf16.msra.mxu1 %v7740_v53 }
 0x52b   :  { %6116 = vmatprep.subr.bf16.mxu0 %v7742_v54  ;;  %6148 = vmatprep.subr.bf16.mxu1 %v7745_v58 }
 0x52e   :  { %6118 = vmatpush1.bf16.msra.mxu0 %v7748_v2  ;;  %6150 = vmatpush1.bf16.msra.mxu1 %v7752_v3 }
 0x52f   :  { %6120 = vmatprep.subr.bf16.mxu0 %v7754_v4  ;;  %6152 = vmatprep.subr.bf16.mxu1 %v7757_v11 }
 0x532   :  { %6122 = vmatpush1.bf16.msra.mxu0 %v7760_v20  ;;  %6154 = vmatpush1.bf16.msra.mxu1 %v7764_v24 }
 0x533   :  { %6124 = vmatprep.subr.bf16.mxu0 %v7766_v25  ;;  %6156 = vmatprep.subr.bf16.mxu1 %v7775_v31 }
 0x536   :  { %6126 = vmatpush1.bf16.msra.mxu0 %v7778_v39  ;;  %6158 = vmatpush1.bf16.msra.mxu1 %v7782_v42 }
 0x537   :  { %6128 = vmatprep.subr.bf16.mxu0 %v7784_v43  ;;  %6160 = vmatprep.subr.bf16.mxu1 %v7787_v47 }
 0x53a   :  { %6130 = vmatpush1.bf16.msra.mxu0 %v7790_v51  ;;  %6162 = vmatpush1.bf16.msra.mxu1 %v7794_v55 }
 0x53b   :  { %6164 = vmatprep.subr.bf16.mxu0 %v7697_v5  ;;  %6196 = vmatprep.subr.bf16.mxu1 %v7699_v9  ;;  %v1245_v5 = vadd.f32 %v1241_v29, %v9507_v37  ;;  %v1253_v9 = vmul.f32 %v1249_v61, %v9508_v15  ;;  %v1254_v29 = vmul.f32 %v1249_v61, %v7892_v48 }
 0x53d   :  { %v1257_v62 = vadd.f32 %v1253_v9, %v1245_v5  ;;  %v1258_v15 = vadd.f32 %v1254_v29, %v1246_v8 }
 0x5f0   :  { %v1325_v26 = vpop.f32.mrb[10].mxu0  ;;  %v1396_v7 = vpop.f32.mrb[10].mxu1 }
 0x5f1   :  { %v1401_v33 = vadd.f32 %v1325_v26, %v1255_v59  ;;  %v1327_v49 = vpop.f32.mrb[11].mxu0  ;;  %v1398_v50 = vpop.f32.mrb[11].mxu1  ;;  %v1403_v6 = vadd.f32 %v1396_v7, %v1257_v62 }
 0x5f2   :  { %v1402_v12 = vadd.f32 %v1327_v49, %v1256_v22  ;;  %v1404_v34 = vadd.f32 %v1398_v50, %v1258_v15 }
 0x5f3   :  { %7383 = vtanh.f32 %v1401_v33 }
 0x5f4   :  { %7385 = vtanh.f32 %v1402_v12 }
 0x5f5   :  { %7387 = vtanh.f32 %v1403_v6 }
 0x5f6   :  { %7389 = vtanh.f32 %v1404_v34 }
 0x5fd   :  { %v7384_v17 = vpop.eup %7383 }
 0x5fe   :  { %v1409_v37 = vmul.f32 0.5, %v7384_v17  ;;  %v7386_v21 = vpop.eup %7385 }
 0x5ff   :  { %v1410_v5 = vmul.f32 0.5, %v7386_v21  ;;  %v7388_v9 = vpop.eup %7387 }
 0x600   :  { %v1412_v46 = vadd.f32 0.5, %v1409_v37  ;;  %v7390_v22 = vpop.eup %7389 }
 0x601   :  { %v1413_v59 = vadd.f32 0.5, %v1410_v5  ;;  %v1411_v61 = vmul.f32 0.5, %v7390_v22  ;;  %v128_v22 = vld [vmem:[#allocation5] sm:$0xff] }
 0x602   :  { %v1416_v44 = vmul.f32 %v7388_v9, %v1412_v46  ;;  %v193_v9 = vld [vmem:[%s9411_s5] sm:$0xff] }
 0x603   :  { %v1415_v26 = vmul.f32 %v1413_v59, %v8098_v30  ;;  %v1414_v6 = vadd.f32 0.5, %v1411_v61  ;;  %v194_v59 = vld [vmem:[%s9411_s5 + $0x8] sm:$0xff]  ;;  %v132_v61 = vld [vmem:[#allocation5 + $0x20] sm:$0xff] }
 0x605   :  { %v8148_v7 = vadd.f32 %v1416_v44, %v1415_v26  ;;  %v129_v44 = vld [vmem:[#allocation5 + $0x8] sm:$0xff]  ;;  %v8206_v26 = vpack.c.bf16 %v194_v59, %v193_v9  ;;  %v168_v59 = vld [vmem:[#allocation5 + $0x140] sm:$0xff] }
 0x606   :  { %v173_v9 = vld [vmem:[#allocation5 + $0x168] sm:$0xff] }
 0x607   :  { %7391 = vtanh.f32 %v8148_v7 }
 0x611   :  { %v7392_v33 = vpop.eup %7391 }
 0x612   :  { %v1419_v15 = vmul.f32 %v7392_v33, %v1414_v6  ;;  %v9432_v6 = vmov 0.0|0.0  }
 0x614   :  { %1510 = vmatmul.mubr.f32.vlgmr.msra.gmra.mrb[12].mxu0 %v1419_v15  ;;  %1581 = vmatmul.mubr.f32.vlgmr.msra.gmra.mrb[12].mxu1 %v1419_v15  ;;  %v8211_v15 = vpack.c.bf16 %v132_v61, %v128_v22  ;;  %v205_v61 = vld [vmem:[%s9411_s5 + $0x60] sm:$0xff] }
 0x615   :  { %6166 = vmatpush1.bf16.msra.mxu0 %v7701_v10  ;;  %6198 = vmatpush1.bf16.msra.mxu1 %v7704_v14  ;;  %v1423_v10 = vpop.permute.xlu1 %1422 }
 0x616   :  { %6168 = vmatprep.subr.bf16.mxu0 %v7708_v18  ;;  %6200 = vmatprep.subr.bf16.mxu1 %v7710_v19  ;;  %v1425_v14 = vmul.f32 %v1423_v10, %v9482_v38  ;;  %v1426_v18 = vmul.f32 %v1423_v10, %v9483_v63  ;;  %v1427_v19 = vmul.f32 %v1423_v10, %v9504_v60 }
 0x617   :  { %1695 = vmatprep.mubr.f32.mxu0 %v9481_v35  ;;  %1766 = vmatprep.mubr.f32.mxu1 %v9481_v35 }
 0x619   :  { %6170 = vmatpush1.bf16.msra.mxu0 %v7713_v23  ;;  %6202 = vmatpush1.bf16.msra.mxu1 %v7717_v27  ;;  %v1435_v23 = vpop.permute.xlu0 %1434  ;;  %v1429_v27 = vadd.f32 %v1425_v14, %v9505_v13  ;;  %v196_v14 = vld [vmem:[%s9411_s5 + $0x18] sm:$0xff] }
 0x61a   :  { %6172 = vmatprep.subr.bf16.mxu0 %v7719_v28  ;;  %6204 = vmatprep.subr.bf16.mxu1 %v7721_v32  ;;  %v9509_v28 = vld [vmem:[#allocation15_spill] sm:$0xff] }
 0x61b   :  { %v1437_v32 = vmul.f32 %v1435_v23, %v9509_v28 }
 0x61d   :  { %6174 = vmatpush1.bf16.msra.mxu0 %v7724_v36  ;;  %6206 = vmatpush1.bf16.msra.mxu1 %v7728_v40  ;;  %v1430_v36 = vadd.f32 %v1426_v18, %v7874_v56  ;;  %v1438_v40 = vmul.f32 %v1435_v23, %v9487_v16  ;;  %v137_v18 = vld [vmem:[#allocation5 + $0x48] sm:$0xff] }
 0x61e   :  { %6176 = vmatprep.subr.bf16.mxu0 %v7730_v41  ;;  %6208 = vmatprep.subr.bf16.mxu1 %v7733_v45  ;;  %v9510_v41 = vld [vmem:[#allocation17_spill] sm:$0xff] }
 0x61f   :  { %v1431_v45 = vadd.f32 %v1427_v19, %v9510_v41 }
 0x621   :  { %6178 = vmatpush1.bf16.msra.mxu0 %v7736_v52  ;;  %6210 = vmatpush1.bf16.msra.mxu1 %v7740_v53  ;;  %v9511_v52 = vld [vmem:[#allocation18_spill] sm:$0xff] }
 0x622   :  { %6180 = vmatprep.subr.bf16.mxu0 %v7742_v54  ;;  %6212 = vmatprep.subr.bf16.mxu1 %v7745_v58  ;;  %v1439_v53 = vmul.f32 %v1435_v23, %v9511_v52  ;;  %v1441_v54 = vadd.f32 %v1437_v32, %v1429_v27  ;;  %v136_v27 = vld [vmem:[#allocation5 + $0x40] sm:$0xff] }
 0x623   :  { %v140_v32 = vld [vmem:[#allocation5 + $0x60] sm:$0xff] }
 0x625   :  { %6182 = vmatpush1.bf16.msra.mxu0 %v7748_v2  ;;  %6214 = vmatpush1.bf16.msra.mxu1 %v7752_v3  ;;  %v1442_v3 = vadd.f32 %v1438_v40, %v1430_v36  ;;  %v8227_v40 = vpack.c.bf16 %v140_v32, %v136_v27  ;;  %v176_v27 = vld [vmem:[#allocation5 + $0x180] sm:$0xff] }
 0x626   :  { %6184 = vmatprep.subr.bf16.mxu0 %v7754_v4  ;;  %6216 = vmatprep.subr.bf16.mxu1 %v7757_v11  ;;  %v1443_v11 = vadd.f32 %v1439_v53, %v1431_v45  ;;  %v197_v45 = vld [vmem:[%s9411_s5 + $0x20] sm:$0xff]  ;;  %v198_v53 = vld [vmem:[%s9411_s5 + $0x28] sm:$0xff] }
 0x627   :  { %v180_v32 = vld [vmem:[#allocation5 + $0x1a0] sm:$0xff] }
 0x629   :  { %6186 = vmatpush1.bf16.msra.mxu0 %v7760_v20  ;;  %6218 = vmatpush1.bf16.msra.mxu1 %v7764_v24 }
 0x62a   :  { %6188 = vmatprep.subr.bf16.mxu0 %v7766_v25  ;;  %6220 = vmatprep.subr.bf16.mxu1 %v7775_v31  ;;  %v1428_v25 = vmul.f32 %v1423_v10, %v7889_v0  ;;  %v195_v10 = vld [vmem:[%s9411_s5 + $0x10] sm:$0xff] }
 0x62b   :  { %v8223_v19 = vpack.c.bf16 %v196_v14, %v195_v10  ;;  %v206_v10 = vld [vmem:[%s9411_s5 + $0x68] sm:$0xff] }
 0x62c   :  { %v177_v14 = vld [vmem:[#allocation5 + $0x188] sm:$0xff] }
 0x62d   :  { %6190 = vmatpush1.bf16.msra.mxu0 %v7778_v39  ;;  %6222 = vmatpush1.bf16.msra.mxu1 %v7782_v42  ;;  %v1432_v42 = vadd.f32 %v1428_v25, %v7894_v57  ;;  %v200_v25 = vld [vmem:[%s9411_s5 + $0x38] sm:$0xff] }
 0x62e   :  { %6192 = vmatprep.subr.bf16.mxu0 %v7784_v43  ;;  %6224 = vmatprep.subr.bf16.mxu1 %v7787_v47  ;;  %v1440_v43 = vmul.f32 %v1435_v23, %v7892_v48  ;;  %v141_v23 = vld [vmem:[#allocation5 + $0x68] sm:$0xff] }
 0x62f   :  { %v8225_v36 = vpack.c.bf16 %v141_v23, %v137_v18  ;;  %v8303_v18 = vpack.c.bf16 %v206_v10, %v205_v61  ;;  %v181_v23 = vld [vmem:[#allocation5 + $0x1a8] sm:$0xff] }
 0x630   :  { %v1444_v47 = vadd.f32 %v1440_v43, %v1432_v42  ;;  %v157_v42 = vld [vmem:[#allocation5 + $0xe8] sm:$0xff]  ;;  %v152_v43 = vld [vmem:[#allocation5 + $0xc0] sm:$0xff] }
 0x631   :  { %6194 = vmatpush1.bf16.msra.mxu0 %v7790_v51  ;;  %6226 = vmatpush1.bf16.msra.mxu1 %v7794_v55 }
 0x632   :  { %6227 = vmatprep.subr.bf16.mxu0 %v9432_v6 }
 0x6e7   :  { %v1511_v58 = vpop.f32.mrb[12].mxu0  ;;  %v1582_v2 = vpop.f32.mrb[12].mxu1 }
 0x6e8   :  { %v1587_v4 = vadd.f32 %v1511_v58, %v1441_v54  ;;  %v1513_v20 = vpop.f32.mrb[13].mxu0  ;;  %v1584_v24 = vpop.f32.mrb[13].mxu1  ;;  %v1589_v39 = vadd.f32 %v1582_v2, %v1443_v11  ;;  %v145_v54 = vld [vmem:[#allocation5 + $0x88] sm:$0xff]  ;;  %v8239_v58 = vpack.c.bf16 %v198_v53, %v197_v45  ;;  %v8305_v45 = vpack.c.bf16 %v181_v23, %v177_v14 }
 0x6e9   :  { %v1588_v31 = vadd.f32 %v1513_v20, %v1442_v3  ;;  %v1590_v51 = vadd.f32 %v1584_v24, %v1444_v47  ;;  %v149_v2 = vld [vmem:[#allocation5 + $0xa8] sm:$0xff]  ;;  %v144_v3 = vld [vmem:[#allocation5 + $0x80] sm:$0xff]  ;;  %v199_v24 = vld [vmem:[%s9411_s5 + $0x30] sm:$0xff]  ;;  %v8307_v53 = vpack.c.bf16 %v180_v32, %v176_v27 }
 0x6ea   :  { %7393 = vtanh.f32 %v1587_v4  ;;  %v148_v4 = vld [vmem:[#allocation5 + $0xa0] sm:$0xff]  ;;  %v8241_v11 = vpack.c.bf16 %v149_v2, %v145_v54  ;;  %9515 = vst [vmem:[#allocation21_spill] sm:$0xff] %v8305_v45  ;;  %v207_v54 = vld [vmem:[%s9411_s5 + $0x70] sm:$0xff]  ;;  %v208_v2 = vld [vmem:[%s9411_s5 + $0x78] sm:$0xff] }
 0x6eb   :  { %7395 = vtanh.f32 %v1588_v31  ;;  %v8243_v20 = vpack.c.bf16 %v148_v4, %v144_v3  ;;  %v153_v31 = vld [vmem:[#allocation5 + $0xc8] sm:$0xff]  ;;  %v156_v47 = vld [vmem:[#allocation5 + $0xe0] sm:$0xff]  ;;  %9516 = vst [vmem:[#allocation22_spill] sm:$0xff] %v8307_v53  ;;  %v8319_v4 = vpack.c.bf16 %v208_v2, %v207_v54 }
 0x6ec   :  { %7397 = vtanh.f32 %v1589_v39  ;;  %v8255_v39 = vpack.c.bf16 %v200_v25, %v199_v24  ;;  %v185_v3 = vld [vmem:[#allocation5 + $0x1c8] sm:$0xff]  ;;  %v184_v25 = vld [vmem:[#allocation5 + $0x1c0] sm:$0xff] }
 0x6ed   :  { %7399 = vtanh.f32 %v1590_v51  ;;  %v8257_v51 = vpack.c.bf16 %v157_v42, %v153_v31  ;;  %v189_v24 = vld [vmem:[#allocation5 + $0x1e8] sm:$0xff]  ;;  %v188_v31 = vld [vmem:[#allocation5 + $0x1e0] sm:$0xff] }
 0x6ee   :  { %v8321_v42 = vpack.c.bf16 %v189_v24, %v185_v3 }
 0x6f0   :  { %9517 = vst [vmem:[#allocation23_spill] sm:$0xff] %v8321_v42 }
 0x6f4   :  { %v7394_v55 = vpop.eup %7393 }
 0x6f5   :  { %v1595_v30 = vmul.f32 0.5, %v7394_v55  ;;  %v7396_v37 = vpop.eup %7395  ;;  %v8259_v55 = vpack.c.bf16 %v156_v47, %v152_v43  ;;  %v8323_v43 = vpack.c.bf16 %v188_v31, %v184_v25  ;;  %v131_v47 = vld [vmem:[#allocation5 + $0x18] sm:$0xff] }
 0x6f6   :  { %v1596_v49 = vmul.f32 0.5, %v7396_v37  ;;  %v7398_v50 = vpop.eup %7397  ;;  %v202_v37 = vld [vmem:[%s9411_s5 + $0x48] sm:$0xff] }
 0x6f7   :  { %v1598_v62 = vadd.f32 0.5, %v1595_v30  ;;  %v7400_v34 = vpop.eup %7399  ;;  %v201_v30 = vld [vmem:[%s9411_s5 + $0x40] sm:$0xff]  ;;  %9518 = vst [vmem:[#allocation24_spill] sm:$0xff] %v8323_v43 }
 0x6f8   :  { %v1599_v1 = vadd.f32 0.5, %v1596_v49  ;;  %v1597_v17 = vmul.f32 0.5, %v7400_v34  ;;  %v8271_v49 = vpack.c.bf16 %v202_v37, %v201_v30  ;;  %v135_v30 = vld [vmem:[#allocation5 + $0x38] sm:$0xff] }
 0x6f9   :  { %v1602_v12 = vmul.f32 %v7398_v50, %v1598_v62  ;;  %v161_v62 = vld [vmem:[#allocation5 + $0x108] sm:$0xff]  ;;  %v8327_v37 = vpack.c.bf16 %v135_v30, %v131_v47 }
 0x6fa   :  { %v1601_v8 = vmul.f32 %v1599_v1, %v8148_v7  ;;  %v1600_v21 = vadd.f32 0.5, %v1597_v17  ;;  %v133_v7 = vld [vmem:[#allocation5 + $0x28] sm:$0xff]  ;;  %v160_v1 = vld [vmem:[#allocation5 + $0x100] sm:$0xff]  ;;  %v203_v17 = vld [vmem:[%s9411_s5 + $0x50] sm:$0xff] }
 0x6fb   :  { %v8209_v33 = vpack.c.bf16 %v133_v7, %v129_v44  ;;  %v165_v50 = vld [vmem:[#allocation5 + $0x128] sm:$0xff]  ;;  %v172_v44 = vld [vmem:[#allocation5 + $0x160] sm:$0xff] }
 0x6fc   :  { %v8196_v29 = vadd.f32 %v1602_v12, %v1601_v8  ;;  %v164_v12 = vld [vmem:[#allocation5 + $0x120] sm:$0xff]  ;;  %v8273_v8 = vpack.c.bf16 %v165_v50, %v161_v62  ;;  %v8291_v22 = vpack.c.bf16 %v172_v44, %v168_v59  ;;  %v1609_v62 = vpop.permute.xlu1 %1608 }
 0x6fd   :  { %6252 = vmatprep.subr.bf16.mxu1 %v8209_v33  ;;  %v8275_v34 = vpack.c.bf16 %v164_v12, %v160_v1  ;;  %v1611_v50 = vmul.f32 %v1609_v62, %v9482_v38  ;;  %v1612_v1 = vmul.f32 %v1609_v62, %v9483_v63  ;;  %v1621_v12 = vpop.permute.xlu0 %1620  ;;  %v1614_v24 = vmul.f32 %v1609_v62, %v7889_v0 }
 0x6fe   :  { %7401 = vtanh.f32 %v8196_v29  ;;  %9514 = vst [vmem:[#allocation20_spill] sm:$0xff] %v8291_v22  ;;  %v1624_v59 = vmul.f32 %v1621_v12, %v9487_v16  ;;  %v1625_v61 = vmul.f32 %v1621_v12, %v9511_v52  ;;  %v1626_v30 = vmul.f32 %v1621_v12, %v7892_v48 }
 0x6ff   :  { %9512 = vst [vmem:[#allocation14_spill] sm:$0xff] %v8275_v34  ;;  %v1618_v47 = vadd.f32 %v1614_v24, %v7894_v57 }
 0x708   :  { %v7402_v46 = vpop.eup %7401 }
 0x709   :  { %v1605_v5 = vmul.f32 %v7402_v46, %v1600_v21  ;;  %v204_v21 = vld [vmem:[%s9411_s5 + $0x58] sm:$0xff]  ;;  %v169_v46 = vld [vmem:[#allocation5 + $0x148] sm:$0xff] }
 0x70a   :  { %v8289_v7 = vpack.c.bf16 %v173_v9, %v169_v46  ;;  %v1623_v46 = vmul.f32 %v1621_v12, %v9509_v28  ;;  %v1616_v9 = vadd.f32 %v1612_v1, %v7874_v56 }
 0x70b   :  { %1696 = vmatmul.mubr.f32.vlgmr.msra.gmra.mrb[14].mxu0 %v1605_v5  ;;  %1767 = vmatmul.mubr.f32.vlgmr.msra.gmra.mrb[14].mxu1 %v1605_v5  ;;  %v8287_v5 = vpack.c.bf16 %v204_v21, %v203_v17  ;;  %v1613_v17 = vmul.f32 %v1609_v62, %v9504_v60  ;;  %v1615_v21 = vadd.f32 %v1611_v50, %v9505_v13 }
 0x70c   :  { %1959 = vmatprep.mubr.f32.mxu1 %v9481_v35  ;;  %6229 = vmatpush3.bf16.msra.mxu0 %v8206_v26  ;;  %9513 = vst [vmem:[#allocation17_spill] sm:$0xff] %v8289_v7  ;;  %v1628_v27 = vadd.f32 %v1624_v59, %v1616_v9  ;;  %v1630_v50 = vadd.f32 %v1626_v30, %v1618_v47  ;;  %v138_v30 = vld [vmem:[#allocation5 + $0x50] sm:$0xff] }
 0x70d   :  { %6230 = vmatprep.subr.bf16.mxu0 %v9432_v6  ;;  %6254 = vmatpush1.bf16.msra.mxu1 %v8211_v15  ;;  %v1617_v44 = vadd.f32 %v1613_v17, %v9510_v41  ;;  %v1627_v10 = vadd.f32 %v1623_v46, %v1615_v21 }
 0x70e   :  { %6256 = vmatprep.subr.bf16.mxu1 %v8225_v36  ;;  %5292 = vmatprep.mubr.msk.f32.mxu0 %vm7616_vm0, %v9481_v35 }
 0x70f   :  { %v1629_v54 = vadd.f32 %v1625_v61, %v1617_v44 }
 0x710   :  { %6232 = vmatpush3.bf16.msra.mxu0 %v8223_v19 }
 0x711   :  { %6233 = vmatprep.subr.bf16.mxu0 %v9432_v6  ;;  %6258 = vmatpush1.bf16.msra.mxu1 %v8227_v40 }
 0x712   :  { %6260 = vmatprep.subr.bf16.mxu1 %v8241_v11 }
 0x714   :  { %6235 = vmatpush3.bf16.msra.mxu0 %v8239_v58 }
 0x715   :  { %6236 = vmatprep.subr.bf16.mxu0 %v9432_v6  ;;  %6262 = vmatpush1.bf16.msra.mxu1 %v8243_v20 }
 0x716   :  { %6264 = vmatprep.subr.bf16.mxu1 %v8257_v51 }
 0x718   :  { %6238 = vmatpush3.bf16.msra.mxu0 %v8255_v39 }
 0x719   :  { %6239 = vmatprep.subr.bf16.mxu0 %v9432_v6  ;;  %6266 = vmatpush1.bf16.msra.mxu1 %v8259_v55 }
 0x71a   :  { %6268 = vmatprep.subr.bf16.mxu1 %v8273_v8 }
 0x71c   :  { %6241 = vmatpush3.bf16.msra.mxu0 %v8271_v49 }
 0x71d   :  { %6242 = vmatprep.subr.bf16.mxu0 %v9432_v6  ;;  %6270 = vmatpush1.bf16.msra.mxu1 %v8275_v34 }
 0x71e   :  { %6272 = vmatprep.subr.bf16.mxu1 %v8289_v7 }
 0x720   :  { %6244 = vmatpush3.bf16.msra.mxu0 %v8287_v5 }
 0x721   :  { %6245 = vmatprep.subr.bf16.mxu0 %v9432_v6  ;;  %6274 = vmatpush1.bf16.msra.mxu1 %v8291_v22 }
 0x722   :  { %6276 = vmatprep.subr.bf16.mxu1 %v8305_v45 }
 0x724   :  { %6247 = vmatpush3.bf16.msra.mxu0 %v8303_v18 }
 0x725   :  { %6248 = vmatprep.subr.bf16.mxu0 %v9432_v6  ;;  %6278 = vmatpush1.bf16.msra.mxu1 %v8307_v53 }
 0x726   :  { %6280 = vmatprep.subr.bf16.mxu1 %v8321_v42 }
 0x728   :  { %6250 = vmatpush3.bf16.msra.mxu0 %v8319_v4 }
 0x729   :  { %6282 = vmatpush1.bf16.msra.mxu1 %v8323_v43  ;;  %6284 = vmatprep.subr.bf16.mxu0 %v8327_v37 }
 0x72a   :  { %6315 = vmatprep.subr.bf16.mxu1 %v9432_v6 }
 0x7de   :  { %v1697_v14 = vpop.f32.mrb[14].mxu0  ;;  %v1768_v23 = vpop.f32.mrb[14].mxu1 }
 0x7df   :  { %v1773_v32 = vadd.f32 %v1697_v14, %v1627_v10  ;;  %v1699_v2 = vpop.f32.mrb[15].mxu0  ;;  %v1770_v3 = vpop.f32.mrb[15].mxu1  ;;  %v1775_v31 = vadd.f32 %v1768_v23, %v1629_v54  ;;  %v139_v54 = vld [vmem:[#allocation5 + $0x58] sm:$0xff] }
 0x7e0   :  { %v1774_v25 = vadd.f32 %v1699_v2, %v1628_v27  ;;  %v1776_v1 = vadd.f32 %v1770_v3, %v1630_v50  ;;  %v130_v27 = vld [vmem:[#allocation5 + $0x10] sm:$0xff]  ;;  %v143_v2 = vld [vmem:[#allocation5 + $0x78] sm:$0xff] }
 0x7e1   :  { %7403 = vtanh.f32 %v1773_v32  ;;  %v134_v32 = vld [vmem:[#allocation5 + $0x30] sm:$0xff]  ;;  %v8354_v47 = vpack.c.bf16 %v143_v2, %v139_v54  ;;  %v147_v50 = vld [vmem:[#allocation5 + $0x98] sm:$0xff] }
 0x7e2   :  { %7405 = vtanh.f32 %v1774_v25  ;;  %v8350_v25 = vpack.c.bf16 %v134_v32, %v130_v27  ;;  %v167_v27 = vld [vmem:[#allocation5 + $0x138] sm:$0xff]  ;;  %v162_v2 = vld [vmem:[#allocation5 + $0x110] sm:$0xff] }
 0x7e3   :  { %7407 = vtanh.f32 %v1775_v31 }
 0x7e4   :  { %7409 = vtanh.f32 %v1776_v1  ;;  %v151_v1 = vld [vmem:[#allocation5 + $0xb8] sm:$0xff] }
 0x7eb   :  { %v7404_v17 = vpop.eup %7403 }
 0x7ec   :  { %v1781_v21 = vmul.f32 0.5, %v7404_v17  ;;  %v7406_v46 = vpop.eup %7405 }
 0x7ed   :  { %v1782_v59 = vmul.f32 0.5, %v7406_v46  ;;  %v7408_v44 = vpop.eup %7407  ;;  %v146_v46 = vld [vmem:[#allocation5 + $0x90] sm:$0xff] }
 0x7ee   :  { %v1784_v9 = vadd.f32 0.5, %v1781_v21  ;;  %v7410_v23 = vpop.eup %7409  ;;  %v8363_v21 = vpack.c.bf16 %v151_v1, %v147_v50  ;;  %v170_v1 = vld [vmem:[#allocation5 + $0x150] sm:$0xff] }
 0x7ef   :  { %v1785_v61 = vadd.f32 0.5, %v1782_v59  ;;  %v1783_v12 = vmul.f32 0.5, %v7410_v23  ;;  %v155_v59 = vld [vmem:[#allocation5 + $0xd8] sm:$0xff]  ;;  %v158_v23 = vld [vmem:[#allocation5 + $0xf0] sm:$0xff] }
 0x7f0   :  { %v1788_v62 = vmul.f32 %v7408_v44, %v1784_v9  ;;  %v150_v9 = vld [vmem:[#allocation5 + $0xb0] sm:$0xff]  ;;  %v159_v44 = vld [vmem:[#allocation5 + $0xf8] sm:$0xff] }
 0x7f1   :  { %v1787_v10 = vmul.f32 %v1785_v61, %v8196_v29  ;;  %v1786_v3 = vadd.f32 0.5, %v1783_v12  ;;  %v142_v29 = vld [vmem:[#allocation5 + $0x70] sm:$0xff]  ;;  %v8370_v61 = vpack.c.bf16 %v150_v9, %v146_v46  ;;  %v163_v12 = vld [vmem:[#allocation5 + $0x118] sm:$0xff] }
 0x7f2   :  { %v8359_v17 = vpack.c.bf16 %v142_v29, %v138_v30  ;;  %v8381_v54 = vpack.c.bf16 %v167_v27, %v163_v12  ;;  %v175_v30 = vld [vmem:[#allocation5 + $0x178] sm:$0xff]  ;;  %v174_v46 = vld [vmem:[#allocation5 + $0x170] sm:$0xff] }
 0x7f3   :  { %v8347_v14 = vadd.f32 %v1788_v62, %v1787_v10  ;;  %v8373_v62 = vpack.c.bf16 %v159_v44, %v155_v59  ;;  %v154_v10 = vld [vmem:[#allocation5 + $0xd0] sm:$0xff]  ;;  %v179_v9 = vld [vmem:[#allocation5 + $0x198] sm:$0xff]  ;;  %v8394_v44 = vpack.c.bf16 %v174_v46, %v170_v1 }
 0x7f4   :  { %v8378_v32 = vpack.c.bf16 %v158_v23, %v154_v10  ;;  %v183_v59 = vld [vmem:[#allocation5 + $0x1b8] sm:$0xff]  ;;  %v178_v23 = vld [vmem:[#allocation5 + $0x190] sm:$0xff] }
 0x7f5   :  { %7411 = vtanh.f32 %v8347_v14  ;;  %v8397_v10 = vpack.c.bf16 %v183_v59, %v179_v9  ;;  %v182_v12 = vld [vmem:[#allocation5 + $0x1b0] sm:$0xff]  ;;  %v187_v27 = vld [vmem:[#allocation5 + $0x1d8] sm:$0xff] }
 0x7f6   :  { %v190_v1 = vld [vmem:[#allocation5 + $0x1f0] sm:$0xff] }
 0x7ff   :  { %v7412_v24 = vpop.eup %7411 }
 0x800   :  { %v8352_v31 = vmul.f32 %v7412_v24, %v1786_v3  ;;  %v166_v3 = vld [vmem:[#allocation5 + $0x130] sm:$0xff]  ;;  %v171_v24 = vld [vmem:[#allocation5 + $0x158] sm:$0xff] }
 0x801   :  { %v8386_v29 = vpack.c.bf16 %v166_v3, %v162_v2  ;;  %v8389_v50 = vpack.c.bf16 %v175_v30, %v171_v24  ;;  %v191_v2 = vld [vmem:[#allocation5 + $0x1f8] sm:$0xff]  ;;  %v8402_v3 = vpack.c.bf16 %v182_v12, %v178_v23  ;;  %v186_v30 = vld [vmem:[#allocation5 + $0x1d0] sm:$0xff] }
 0x802   :  { %5293 = vmatmul.mubr.f32.vlgmr.msra.gmra.mrb[16].mxu0 %v8352_v31  ;;  %1960 = vmatmul.mubr.f32.vlgmr.msra.gmra.mrb[16].mxu1 %v8352_v31  ;;  %v8405_v24 = vpack.c.bf16 %v191_v2, %v187_v27  ;;  %v8410_v46 = vpack.c.bf16 %v190_v1, %v186_v30  ;;  %v8446_v2 = vld [vmem:[%s9406_s0 + $0x38] sm:$0xff] }
 0x803   :  { %6286 = vmatpush1.bf16.msra.mxu0 %v8350_v25  ;;  %2030 = vmatprep.mubr.f32.mxu0 %v9481_v35  ;;  %9520 = vst [vmem:[#allocation26_spill] sm:$0xff] %v8446_v2 }
 0x804   :  { %6288 = vmatprep.subr.bf16.mxu0 %v8354_v47  ;;  %6317 = vmatpush3.bf16.msra.mxu1 %v8206_v26 }
 0x805   :  { %6318 = vmatprep.subr.bf16.mxu1 %v9432_v6  ;;  %5327 = vmatprep.mubr.msk.f32.mxu1 %vm7616_vm0, %v9481_v35 }
 0x807   :  { %6290 = vmatpush1.bf16.msra.mxu0 %v8359_v17 }
 0x808   :  { %6292 = vmatprep.subr.bf16.mxu0 %v8363_v21  ;;  %6320 = vmatpush3.bf16.msra.mxu1 %v8223_v19 }
 0x809   :  { %6321 = vmatprep.subr.bf16.mxu1 %v9432_v6 }
 0x80b   :  { %6294 = vmatpush1.bf16.msra.mxu0 %v8370_v61 }
 0x80c   :  { %6296 = vmatprep.subr.bf16.mxu0 %v8373_v62  ;;  %6323 = vmatpush3.bf16.msra.mxu1 %v8239_v58 }
 0x80d   :  { %6324 = vmatprep.subr.bf16.mxu1 %v9432_v6 }
 0x80f   :  { %6298 = vmatpush1.bf16.msra.mxu0 %v8378_v32 }
 0x810   :  { %6300 = vmatprep.subr.bf16.mxu0 %v8381_v54  ;;  %6326 = vmatpush3.bf16.msra.mxu1 %v8255_v39 }
 0x811   :  { %6327 = vmatprep.subr.bf16.mxu1 %v9432_v6 }
 0x813   :  { %6302 = vmatpush1.bf16.msra.mxu0 %v8386_v29 }
 0x814   :  { %6304 = vmatprep.subr.bf16.mxu0 %v8389_v50  ;;  %6329 = vmatpush3.bf16.msra.mxu1 %v8271_v49 }
 0x815   :  { %6330 = vmatprep.subr.bf16.mxu1 %v9432_v6 }
 0x817   :  { %6306 = vmatpush1.bf16.msra.mxu0 %v8394_v44 }
 0x818   :  { %6308 = vmatprep.subr.bf16.mxu0 %v8397_v10  ;;  %6332 = vmatpush3.bf16.msra.mxu1 %v8287_v5 }
 0x819   :  { %6333 = vmatprep.subr.bf16.mxu1 %v9432_v6 }
 0x81b   :  { %6310 = vmatpush1.bf16.msra.mxu0 %v8402_v3 }
 0x81c   :  { %6312 = vmatprep.subr.bf16.mxu0 %v8405_v24  ;;  %6335 = vmatpush3.bf16.msra.mxu1 %v8303_v18 }
 0x81d   :  { %6336 = vmatprep.subr.bf16.mxu1 %v9432_v6 }
 0x81f   :  { %6314 = vmatpush1.bf16.msra.mxu0 %v8410_v46 }
 0x820   :  { %6340 = vmatprep.subr.bf16.mxu0 %v8209_v33  ;;  %6338 = vmatpush3.bf16.msra.mxu1 %v8319_v4 }
 0x821   :  { %6372 = vmatprep.subr.bf16.mxu1 %v8327_v37 }
 0x822   :  { %2031 = vmatmul.mubr.f32.vlgmr.msra.gmra.mrb[18].mxu0 %v8352_v31  ;;  %v8440_v31 = vld [vmem:[%s9412_s6] ss:$0 sm:$0xff] }
 0x823   :  { %6342 = vmatpush1.bf16.msra.mxu0 %v8211_v15  ;;  %2218 = vmatprep.mubr.f32.mxu0 %v9481_v35  ;;  %9519 = vst [vmem:[#allocation25_spill] sm:$0xff] %v8440_v31 }
 0x824   :  { %6344 = vmatprep.subr.bf16.mxu0 %v8225_v36 }
 0x827   :  { %6346 = vmatpush1.bf16.msra.mxu0 %v8227_v40 }
 0x828   :  { %6348 = vmatprep.subr.bf16.mxu0 %v8241_v11 }
 0x82b   :  { %6350 = vmatpush1.bf16.msra.mxu0 %v8243_v20 }
 0x82c   :  { %6352 = vmatprep.subr.bf16.mxu0 %v8257_v51 }
 0x82f   :  { %6354 = vmatpush1.bf16.msra.mxu0 %v8259_v55 }
 0x830   :  { %6356 = vmatprep.subr.bf16.mxu0 %v8273_v8 }
 0x833   :  { %6358 = vmatpush1.bf16.msra.mxu0 %v8275_v34 }
 0x834   :  { %6360 = vmatprep.subr.bf16.mxu0 %v8289_v7 }
 0x837   :  { %6362 = vmatpush1.bf16.msra.mxu0 %v8291_v22 }
 0x838   :  { %6364 = vmatprep.subr.bf16.mxu0 %v8305_v45 }
 0x83b   :  { %6366 = vmatpush1.bf16.msra.mxu0 %v8307_v53 }
 0x83c   :  { %6368 = vmatprep.subr.bf16.mxu0 %v8321_v42 }
 0x83f   :  { %6370 = vmatpush1.bf16.msra.mxu0 %v8323_v43 }
 0x840   :  { %6403 = vmatprep.subr.bf16.mxu0 %v9432_v6 }
 0x8d5   :  { %v1864_v9 = vpop.f32.mrb[16].mxu0  ;;  %v1961_v59 = vpop.f32.mrb[16].mxu1 }
 0x8d6   :  { %v1865_v23 = vadd.f32 %v8440_v31, %v1864_v9  ;;  %v5294_v12 = vpop.f32.mrb[17].mxu0  ;;  %v1963_v27 = vpop.f32.mrb[17].mxu1 }
 0x8d8   :  { %v1868_v30 = vsub.f32 %v8446_v2, %v1865_v23 }
 0x8da   :  { %v1869_v1 = vadd.f32 %v8440_v31, %v1868_v30 }
 0x8dc   :  { %1884 = vperm.xlu0 %7329, %v1869_v1   ;;  %1872 = vperm.xlu1 %7332, %v1869_v1  }
 0x8e0   :  { %2055 = vperm.xlu0 %7329, %v1865_v23   ;;  %2043 = vperm.xlu1 %7332, %v1865_v23  }
 0x8f5   :  { %v2032_v6 = vpop.f32.mrb[18].mxu0 }
 0x8f6   :  { %v2034_v43 = vpop.f32.mrb[19].mxu0 }
 0x95b   :  { %v1885_v42 = vpop.permute.xlu0 %1884  ;;  %v1873_v53 = vpop.permute.xlu1 %1872 }
 0x95c   :  { %v1875_v9 = vmul.f32 %v1873_v53, %v9482_v38  ;;  %v1876_v12 = vmul.f32 %v1873_v53, %v9483_v63  ;;  %v1877_v45 = vmul.f32 %v1873_v53, %v9504_v60  ;;  %v1887_v22 = vmul.f32 %v1885_v42, %v9509_v28 }
 0x95d   :  { %v1888_v2 = vmul.f32 %v1885_v42, %v9487_v16  ;;  %v1889_v30 = vmul.f32 %v1885_v42, %v9511_v52  ;;  %v1878_v7 = vmul.f32 %v1873_v53, %v7889_v0 }
 0x95e   :  { %v1879_v1 = vadd.f32 %v1875_v9, %v9505_v13  ;;  %v1880_v23 = vadd.f32 %v1876_v12, %v7874_v56  ;;  %v1881_v31 = vadd.f32 %v1877_v45, %v9510_v41  ;;  %v1890_v56 = vmul.f32 %v1885_v42, %v7892_v48  ;;  %v9522_v12 = vld [vmem:[#allocation14_spill] sm:$0xff] }
 0x95f   :  { %v1882_v52 = vadd.f32 %v1878_v7, %v7894_v57 }
 0x960   :  { %v8460_v34 = vadd.f32 %v1887_v22, %v1879_v1  ;;  %v8462_v38 = vadd.f32 %v1888_v2, %v1880_v23  ;;  %v8464_v63 = vadd.f32 %v1889_v30, %v1881_v31  ;;  %v9523_v30 = vld [vmem:[#allocation17_spill] sm:$0xff]  ;;  %v9524_v1 = vld [vmem:[#allocation20_spill] sm:$0xff] }
 0x961   :  { %v8471_v41 = vadd.f32 %v1890_v56, %v1882_v52  ;;  %v9525_v23 = vld [vmem:[#allocation21_spill] sm:$0xff]  ;;  %v9527_v56 = vld [vmem:[#allocation23_spill] sm:$0xff] }
 0x962   :  { %v2037_v60 = vadd.f32 %v1961_v59, %v8460_v34  ;;  %v2038_v28 = vadd.f32 %v1963_v27, %v8462_v38  ;;  %v2039_v13 = vadd.f32 %v2032_v6, %v8464_v63 }
 0x963   :  { %v2040_v22 = vadd.f32 %v2034_v43, %v8471_v41 }
 0x964   :  { %7413 = vtanh.f32 %v2037_v60 }
 0x965   :  { %7415 = vtanh.f32 %v2038_v28 }
 0x966   :  { %7417 = vtanh.f32 %v2039_v13  ;;  %v9526_v13 = vld [vmem:[#allocation22_spill] sm:$0xff] }
 0x967   :  { %7419 = vtanh.f32 %v2040_v22  ;;  %v9528_v22 = vld [vmem:[#allocation24_spill] sm:$0xff] }
 0x96e   :  { %v7414_v45 = vpop.eup %7413 }
 0x96f   :  { %v7416_v53 = vpop.eup %7415  ;;  %v2070_v31 = vmul.f32 0.5, %v7414_v45 }
 0x970   :  { %v2071_v59 = vmul.f32 0.5, %v7416_v53  ;;  %v7418_v27 = vpop.eup %7417 }
 0x971   :  { %v2073_v2 = vadd.f32 0.5, %v2070_v31  ;;  %v7420_v28 = vpop.eup %7419  ;;  %v9529_v31 = vld [vmem:[#allocation25_spill] sm:$0xff] }
 0x972   :  { %v2074_v9 = vadd.f32 0.5, %v2071_v59  ;;  %v2072_v52 = vmul.f32 0.5, %v7420_v28  ;;  %v9532_v28 = vld [vmem:[#allocation12_spill] sm:$0xff] }
 0x973   :  { %v2077_v57 = vmul.f32 %v7418_v27, %v2073_v2 }
 0x974   :  { %v2076_v6 = vmul.f32 %v2074_v9, %v8347_v14  ;;  %v2075_v7 = vadd.f32 0.5, %v2072_v52  ;;  %v9521_v14 = vmov 0.0|0.0   ;;  %v9530_v9 = vld [vmem:[#allocation26_spill] sm:$0xff] }
 0x976   :  { %v8475_v60 = vadd.f32 %v2077_v57, %v2076_v6  ;;  %v2044_v6 = vpop.permute.xlu1 %2043 }
 0x977   :  { %v2047_v52 = vmul.f32 %v2044_v6, %v9532_v28 }
 0x978   :  { %7421 = vtanh.f32 %v8475_v60 }
 0x982   :  { %v7422_v42 = vpop.eup %7421 }
 0x983   :  { %v2080_v43 = vmul.f32 %v7422_v42, %v2075_v7  ;;  %v9533_v7 = vld [vmem:[#allocation11_spill] sm:$0xff] }
 0x984   :  { %v2046_v42 = vmul.f32 %v2044_v6, %v9533_v7 }
 0x985   :  { %5328 = vmatmul.mubr.f32.vlgmr.msra.gmra.mrb[18].mxu1 %v2080_v43  ;;  %2219 = vmatmul.mubr.f32.vlgmr.msra.gmra.mrb[20].mxu0 %v2080_v43 }
 0x986   :  { %6374 = vmatpush1.bf16.msra.mxu1 %v8350_v25  ;;  %2289 = vmatprep.mubr.f32.mxu1 %v9481_v35 }
 0x987   :  { %6376 = vmatprep.subr.bf16.mxu1 %v8354_v47  ;;  %6405 = vmatpush3.bf16.msra.mxu0 %v8206_v26 }
 0x988   :  { %6406 = vmatprep.subr.bf16.mxu0 %v9521_v14  ;;  %5362 = vmatprep.mubr.msk.f32.mxu0 %vm7616_vm0, %v9481_v35 }
 0x98a   :  { %6378 = vmatpush1.bf16.msra.mxu1 %v8359_v17 }
 0x98b   :  { %6380 = vmatprep.subr.bf16.mxu1 %v8363_v21  ;;  %6408 = vmatpush3.bf16.msra.mxu0 %v8223_v19 }
 0x98c   :  { %6409 = vmatprep.subr.bf16.mxu0 %v9521_v14 }
 0x98e   :  { %6382 = vmatpush1.bf16.msra.mxu1 %v8370_v61 }
 0x98f   :  { %6384 = vmatprep.subr.bf16.mxu1 %v8373_v62  ;;  %6411 = vmatpush3.bf16.msra.mxu0 %v8239_v58 }
 0x990   :  { %6412 = vmatprep.subr.bf16.mxu0 %v9521_v14 }
 0x992   :  { %6386 = vmatpush1.bf16.msra.mxu1 %v8378_v32 }
 0x993   :  { %6388 = vmatprep.subr.bf16.mxu1 %v8381_v54  ;;  %6414 = vmatpush3.bf16.msra.mxu0 %v8255_v39 }
 0x994   :  { %6415 = vmatprep.subr.bf16.mxu0 %v9521_v14 }
 0x996   :  { %6390 = vmatpush1.bf16.msra.mxu1 %v8386_v29 }
 0x997   :  { %6392 = vmatprep.subr.bf16.mxu1 %v8389_v50  ;;  %6417 = vmatpush3.bf16.msra.mxu0 %v8271_v49 }
 0x998   :  { %6418 = vmatprep.subr.bf16.mxu0 %v9521_v14 }
 0x99a   :  { %6394 = vmatpush1.bf16.msra.mxu1 %v8394_v44 }
 0x99b   :  { %6396 = vmatprep.subr.bf16.mxu1 %v8397_v10  ;;  %6420 = vmatpush3.bf16.msra.mxu0 %v8287_v5 }
 0x99c   :  { %6421 = vmatprep.subr.bf16.mxu0 %v9521_v14 }
 0x99e   :  { %6398 = vmatpush1.bf16.msra.mxu1 %v8402_v3 }
 0x99f   :  { %6400 = vmatprep.subr.bf16.mxu1 %v8405_v24  ;;  %6423 = vmatpush3.bf16.msra.mxu0 %v8303_v18 }
 0x9a0   :  { %6424 = vmatprep.subr.bf16.mxu0 %v9521_v14 }
 0x9a2   :  { %6402 = vmatpush1.bf16.msra.mxu1 %v8410_v46 }
 0x9a3   :  { %6428 = vmatprep.subr.bf16.mxu1 %v8209_v33  ;;  %6426 = vmatpush3.bf16.msra.mxu0 %v8319_v4 }
 0x9a4   :  { %6460 = vmatprep.subr.bf16.mxu0 %v8327_v37 }
 0x9a5   :  { %2290 = vmatmul.mubr.f32.vlgmr.msra.gmra.mrb[20].mxu1 %v2080_v43  ;;  %v2056_v43 = vpop.permute.xlu0 %2055 }
 0x9a6   :  { %6430 = vmatpush1.bf16.msra.mxu1 %v8211_v15  ;;  %2481 = vmatprep.mubr.f32.mxu1 %v9481_v35 }
 0x9a7   :  { %6432 = vmatprep.subr.bf16.mxu1 %v8225_v36 }
 0x9aa   :  { %6434 = vmatpush1.bf16.msra.mxu1 %v8227_v40 }
 0x9ab   :  { %6436 = vmatprep.subr.bf16.mxu1 %v8241_v11 }
 0x9ae   :  { %6438 = vmatpush1.bf16.msra.mxu1 %v8243_v20 }
 0x9af   :  { %6440 = vmatprep.subr.bf16.mxu1 %v8257_v51 }
 0x9b2   :  { %6442 = vmatpush1.bf16.msra.mxu1 %v8259_v55 }
 0x9b3   :  { %6444 = vmatprep.subr.bf16.mxu1 %v8273_v8 }
 0x9b6   :  { %6446 = vmatpush1.bf16.msra.mxu1 %v9522_v12 }
 0x9b7   :  { %6448 = vmatprep.subr.bf16.mxu1 %v9523_v30 }
 0x9ba   :  { %6450 = vmatpush1.bf16.msra.mxu1 %v9524_v1 }
 0x9bb   :  { %6452 = vmatprep.subr.bf16.mxu1 %v9525_v23 }
 0x9be   :  { %6454 = vmatpush1.bf16.msra.mxu1 %v9526_v13 }
 0x9bf   :  { %6456 = vmatprep.subr.bf16.mxu1 %v9527_v56 }
 0x9c2   :  { %6458 = vmatpush1.bf16.msra.mxu1 %v9528_v22  ;;  %v2051_v22 = vadd.f32 %v2047_v52, %v8462_v38  ;;  %v9536_v52 = vld [vmem:[#allocation18_spill] sm:$0xff] }
 0x9c3   :  { %6491 = vmatprep.subr.bf16.mxu1 %v9521_v14 }
 0xa58   :  { %v2147_v45 = vpop.f32.mrb[18].mxu1  ;;  %v2220_v53 = vpop.f32.mrb[20].mxu0 }
 0xa59   :  { %v2148_v59 = vadd.f32 %v9529_v31, %v2147_v45  ;;  %v5329_v2 = vpop.f32.mrb[19].mxu1  ;;  %v2222_v27 = vpop.f32.mrb[21].mxu0  ;;  %v2050_v45 = vadd.f32 %v2046_v42, %v8460_v34  ;;  %v9534_v31 = vld [vmem:[#allocation15_spill] sm:$0xff]  ;;  %v2049_v34 = vmul.f32 %v2044_v6, %v7889_v0  ;;  %v2060_v42 = vmul.f32 %v2056_v43, %v9536_v52 }
 0xa5a   :  { %v2059_v2 = vmul.f32 %v2056_v43, %v9487_v16  ;;  %v2058_v56 = vmul.f32 %v2056_v43, %v9534_v31 }
 0xa5b   :  { %v8532_v57 = vadd.f32 %v9530_v9, %v2148_v59  ;;  %2314 = vperm.xlu0 %7329, %v2148_v59   ;;  %2302 = vperm.xlu1 %7332, %v2148_v59  }
 0xa5c   :  { %v8541_v9 = vadd.f32 %v2059_v2, %v2051_v22  ;;  %v8543_v13 = vadd.f32 %v2058_v56, %v2050_v45  ;;  %v2053_v56 = vadd.f32 %v2049_v34, %v8471_v41  ;;  %v2061_v2 = vmul.f32 %v2056_v43, %v7892_v48 }
 0xa5d   :  { %9531 = vst [vmem:[#allocation14_spill] sm:$0xff] %v8532_v57  ;;  %2153 = vst.msk [vmem:[#allocation7] sm:$0xff] %vm2152_vm1, %v8532_v57  ;;  %v9535_v57 = vld [vmem:[#allocation13_spill] sm:$0xff] }
 0xa5e   :  { %v2297_v59 = vadd.f32 %v2222_v27, %v8541_v9  ;;  %v2048_v23 = vmul.f32 %v2044_v6, %v9535_v57  ;;  %v2296_v28 = vadd.f32 %v2220_v53, %v8543_v13  ;;  %v8556_v53 = vadd.f32 %v2061_v2, %v2053_v56 }
 0xa60   :  { %7423 = vtanh.f32 %v2297_v59  ;;  %v2052_v38 = vadd.f32 %v2048_v23, %v8464_v63 }
 0xa61   :  { %7425 = vtanh.f32 %v2296_v28 }
 0xa62   :  { %v8551_v16 = vadd.f32 %v2060_v42, %v2052_v38 }
 0xa6a   :  { %v7424_v57 = vpop.eup %7423 }
 0xa6b   :  { %v7426_v28 = vpop.eup %7425  ;;  %v2330_v63 = vmul.f32 0.5, %v7424_v57  ;;  %v9539_v57 = vld [vmem:[#allocation23_spill] sm:$0xff] }
 0xa6c   :  { %v2329_v6 = vmul.f32 0.5, %v7426_v28 }
 0xa6d   :  { %v2333_v59 = vadd.f32 0.5, %v2330_v63 }
 0xa6e   :  { %v2332_v38 = vadd.f32 0.5, %v2329_v6 }
 0xa6f   :  { %v2335_v41 = vmul.f32 %v2333_v59, %v8475_v60  ;;  %v9538_v60 = vld [vmem:[#allocation22_spill] sm:$0xff] }
 0xa78   :  { %v2291_v22 = vpop.f32.mrb[20].mxu1 }
 0xa79   :  { %v2298_v45 = vadd.f32 %v2291_v22, %v8551_v16  ;;  %v2293_v27 = vpop.f32.mrb[21].mxu1 }
 0xa7a   :  { %v2299_v23 = vadd.f32 %v2293_v27, %v8556_v53  ;;  %v9540_v27 = vld [vmem:[#allocation24_spill] sm:$0xff] }
 0xa7b   :  { %7427 = vtanh.f32 %v2298_v45 }
 0xa7c   :  { %7429 = vtanh.f32 %v2299_v23  ;;  %v9541_v23 = vld [vmem:[#allocation25_spill] sm:$0xff] }
 0xa85   :  { %v7428_v42 = vpop.eup %7427 }
 0xa86   :  { %v2336_v34 = vmul.f32 %v7428_v42, %v2332_v38  ;;  %v7430_v43 = vpop.eup %7429 }
 0xa87   :  { %v2331_v45 = vmul.f32 0.5, %v7430_v43 }
 0xa88   :  { %v8560_v22 = vadd.f32 %v2336_v34, %v2335_v41  ;;  %v9543_v41 = vld [vmem:[#allocation12_spill] sm:$0xff] }
 0xa89   :  { %v2334_v56 = vadd.f32 0.5, %v2331_v45 }
 0xa8a   :  { %7431 = vtanh.f32 %v8560_v22 }
 0xa94   :  { %v7432_v2 = vpop.eup %7431 }
 0xa95   :  { %v2339_v48 = vmul.f32 %v7432_v2, %v2334_v56 }
 0xa97   :  { %5363 = vmatmul.mubr.f32.vlgmr.msra.gmra.mrb[22].mxu0 %v2339_v48  ;;  %2482 = vmatmul.mubr.f32.vlgmr.msra.gmra.mrb[22].mxu1 %v2339_v48 }
 0xa98   :  { %6462 = vmatpush1.bf16.msra.mxu0 %v8350_v25  ;;  %2552 = vmatprep.mubr.f32.mxu0 %v9481_v35 }
 0xa99   :  { %6464 = vmatprep.subr.bf16.mxu0 %v8354_v47  ;;  %6493 = vmatpush3.bf16.msra.mxu1 %v8206_v26 }
 0xa9a   :  { %6494 = vmatprep.subr.bf16.mxu1 %v9521_v14  ;;  %5397 = vmatprep.mubr.msk.f32.mxu1 %vm7616_vm0, %v9481_v35 }
 0xa9c   :  { %6466 = vmatpush1.bf16.msra.mxu0 %v8359_v17 }
 0xa9d   :  { %6468 = vmatprep.subr.bf16.mxu0 %v8363_v21  ;;  %6496 = vmatpush3.bf16.msra.mxu1 %v8223_v19 }
 0xa9e   :  { %6497 = vmatprep.subr.bf16.mxu1 %v9521_v14 }
 0xaa0   :  { %6470 = vmatpush1.bf16.msra.mxu0 %v8370_v61 }
 0xaa1   :  { %6472 = vmatprep.subr.bf16.mxu0 %v8373_v62  ;;  %6499 = vmatpush3.bf16.msra.mxu1 %v8239_v58 }
 0xaa2   :  { %6500 = vmatprep.subr.bf16.mxu1 %v9521_v14 }
 0xaa4   :  { %6474 = vmatpush1.bf16.msra.mxu0 %v8378_v32 }
 0xaa5   :  { %6476 = vmatprep.subr.bf16.mxu0 %v8381_v54  ;;  %6502 = vmatpush3.bf16.msra.mxu1 %v8255_v39 }
 0xaa6   :  { %6503 = vmatprep.subr.bf16.mxu1 %v9521_v14 }
 0xaa8   :  { %6478 = vmatpush1.bf16.msra.mxu0 %v8386_v29 }
 0xaa9   :  { %6480 = vmatprep.subr.bf16.mxu0 %v8389_v50  ;;  %6505 = vmatpush3.bf16.msra.mxu1 %v8271_v49 }
 0xaaa   :  { %6506 = vmatprep.subr.bf16.mxu1 %v9521_v14 }
 0xaac   :  { %6482 = vmatpush1.bf16.msra.mxu0 %v8394_v44 }
 0xaad   :  { %6484 = vmatprep.subr.bf16.mxu0 %v8397_v10  ;;  %6508 = vmatpush3.bf16.msra.mxu1 %v8287_v5 }
 0xaae   :  { %6509 = vmatprep.subr.bf16.mxu1 %v9521_v14 }
 0xab0   :  { %6486 = vmatpush1.bf16.msra.mxu0 %v8402_v3 }
 0xab1   :  { %6488 = vmatprep.subr.bf16.mxu0 %v8405_v24  ;;  %6511 = vmatpush3.bf16.msra.mxu1 %v8303_v18 }
 0xab2   :  { %6512 = vmatprep.subr.bf16.mxu1 %v9521_v14 }
 0xab4   :  { %6490 = vmatpush1.bf16.msra.mxu0 %v8410_v46 }
 0xab5   :  { %6516 = vmatprep.subr.bf16.mxu0 %v8209_v33  ;;  %6514 = vmatpush3.bf16.msra.mxu1 %v8319_v4 }
 0xab6   :  { %6548 = vmatprep.subr.bf16.mxu1 %v8327_v37 }
 0xab7   :  { %2553 = vmatmul.mubr.f32.vlgmr.msra.gmra.mrb[24].mxu0 %v2339_v48  ;;  %v9537_v48 = vld [vmem:[#allocation21_spill] sm:$0xff] }
 0xab8   :  { %6518 = vmatpush1.bf16.msra.mxu0 %v8211_v15  ;;  %2744 = vmatprep.mubr.f32.mxu0 %v9481_v35 }
 0xab9   :  { %6520 = vmatprep.subr.bf16.mxu0 %v8225_v36 }
 0xabc   :  { %6522 = vmatpush1.bf16.msra.mxu0 %v8227_v40 }
 0xabd   :  { %6524 = vmatprep.subr.bf16.mxu0 %v8241_v11 }
 0xac0   :  { %6526 = vmatpush1.bf16.msra.mxu0 %v8243_v20 }
 0xac1   :  { %6528 = vmatprep.subr.bf16.mxu0 %v8257_v51 }
 0xac4   :  { %6530 = vmatpush1.bf16.msra.mxu0 %v8259_v55 }
 0xac5   :  { %6532 = vmatprep.subr.bf16.mxu0 %v8273_v8 }
 0xac8   :  { %6534 = vmatpush1.bf16.msra.mxu0 %v9522_v12 }
 0xac9   :  { %6536 = vmatprep.subr.bf16.mxu0 %v9523_v30 }
 0xacc   :  { %6538 = vmatpush1.bf16.msra.mxu0 %v9524_v1 }
 0xacd   :  { %6540 = vmatprep.subr.bf16.mxu0 %v9537_v48 }
 0xad0   :  { %6542 = vmatpush1.bf16.msra.mxu0 %v9538_v60  ;;  %v9545_v60 = vld [vmem:[#allocation13_spill] sm:$0xff] }
 0xad1   :  { %6544 = vmatprep.subr.bf16.mxu0 %v9539_v57 }
 0xad4   :  { %6546 = vmatpush1.bf16.msra.mxu0 %v9540_v27  ;;  %v9544_v27 = vld [vmem:[#allocation16_spill] sm:$0xff] }
 0xad5   :  { %6579 = vmatprep.subr.bf16.mxu0 %v9521_v14 }
 0xada   :  { %v2303_v42 = vpop.permute.xlu1 %2302  ;;  %v2315_v45 = vpop.permute.xlu0 %2314 }
 0xadb   :  { %v2306_v34 = vmul.f32 %v2303_v42, %v9543_v41  ;;  %v2305_v43 = vmul.f32 %v2303_v42, %v9533_v7  ;;  %v2318_v57 = vmul.f32 %v2315_v45, %v9544_v27  ;;  %v2307_v48 = vmul.f32 %v2303_v42, %v9545_v60 }
 0xadd   :  { %v2310_v56 = vadd.f32 %v2306_v34, %v8541_v9  ;;  %v2309_v2 = vadd.f32 %v2305_v43, %v8543_v13  ;;  %v2311_v9 = vadd.f32 %v2307_v48, %v8551_v16  ;;  %v2308_v13 = vmul.f32 %v2303_v42, %v7889_v0 }
 0xade   :  { %v2319_v34 = vmul.f32 %v2315_v45, %v9536_v52 }
 0xae0   :  { %v8636_v43 = vadd.f32 %v2319_v34, %v2311_v9 }
 0xb6a   :  { %v2406_v28 = vpop.f32.mrb[22].mxu0  ;;  %v2483_v63 = vpop.f32.mrb[22].mxu1 }
 0xb6b   :  { %v8616_v6 = vadd.f32 %v9541_v23, %v2406_v28  ;;  %v5364_v59 = vpop.f32.mrb[23].mxu0  ;;  %v2485_v38 = vpop.f32.mrb[23].mxu1  ;;  %v2317_v28 = vmul.f32 %v2315_v45, %v9534_v31 }
 0xb6c   :  { %v8626_v59 = vadd.f32 %v2318_v57, %v2310_v56  ;;  %v2312_v56 = vadd.f32 %v2308_v13, %v8556_v53 }
 0xb6d   :  { %9542 = vst [vmem:[#allocation17_spill] sm:$0xff] %v8616_v6  ;;  %2577 = vperm.xlu0 %7329, %v8616_v6   ;;  %2565 = vperm.xlu1 %7332, %v8616_v6   ;;  %v8628_v23 = vadd.f32 %v2317_v28, %v2309_v2  ;;  %v9546_v28 = vld [vmem:[#allocation19_spill] sm:$0xff] }
 0xb6e   :  { %v2560_v6 = vadd.f32 %v2485_v38, %v8626_v59  ;;  %v2320_v60 = vmul.f32 %v2315_v45, %v9546_v28 }
 0xb6f   :  { %v2559_v41 = vadd.f32 %v2483_v63, %v8628_v23 }
 0xb70   :  { %7433 = vtanh.f32 %v2560_v6  ;;  %v8641_v63 = vadd.f32 %v2320_v60, %v2312_v56 }
 0xb71   :  { %7435 = vtanh.f32 %v2559_v41 }
 0xb7a   :  { %v7434_v31 = vpop.eup %7433 }
 0xb7b   :  { %v7436_v6 = vpop.eup %7435  ;;  %v2593_v16 = vmul.f32 0.5, %v7434_v31  ;;  %v9547_v31 = vld [vmem:[#allocation21_spill] sm:$0xff] }
 0xb7c   :  { %v2592_v42 = vmul.f32 0.5, %v7436_v6 }
 0xb7d   :  { %v2596_v41 = vadd.f32 0.5, %v2593_v16 }
 0xb7e   :  { %v2595_v9 = vadd.f32 0.5, %v2592_v42  ;;  %v9552_v42 = vld [vmem:[#allocation17_spill] sm:$0xff] }
 0xb7f   :  { %v2598_v53 = vmul.f32 %v2596_v41, %v8560_v22  ;;  %v9548_v22 = vld [vmem:[#allocation22_spill] sm:$0xff] }
 0xb8a   :  { %v2554_v57 = vpop.f32.mrb[24].mxu0 }
 0xb8b   :  { %v2561_v2 = vadd.f32 %v2554_v57, %v8636_v43  ;;  %v2556_v38 = vpop.f32.mrb[25].mxu0 }
 0xb8c   :  { %v2562_v48 = vadd.f32 %v2556_v38, %v8641_v63  ;;  %v9549_v38 = vld [vmem:[#allocation23_spill] sm:$0xff] }
 0xb8d   :  { %7437 = vtanh.f32 %v2561_v2 }
 0xb8e   :  { %7439 = vtanh.f32 %v2562_v48  ;;  %v9551_v48 = vld [vmem:[#allocation14_spill] sm:$0xff] }
 0xb8f   :  { %v8702_v41 = vadd.f32 %v9552_v42, %v9551_v48 }
 0xb91   :  { %9553 = vst [vmem:[#allocation20_spill] sm:$0xff] %v8702_v41 }
 0xb97   :  { %v7438_v34 = vpop.eup %7437 }
 0xb98   :  { %v2599_v13 = vmul.f32 %v7438_v34, %v2595_v9  ;;  %v7440_v45 = vpop.eup %7439  ;;  %v9554_v9 = vld [vmem:[#allocation25_spill] sm:$0xff] }
 0xb99   :  { %v2594_v2 = vmul.f32 0.5, %v7440_v45 }
 0xb9a   :  { %v8645_v57 = vadd.f32 %v2599_v13, %v2598_v53 }
 0xb9b   :  { %v2597_v60 = vadd.f32 0.5, %v2594_v2 }
 0xb9c   :  { %7441 = vtanh.f32 %v8645_v57 }
 0xba6   :  { %v7442_v56 = vpop.eup %7441 }
 0xba7   :  { %v2602_v28 = vmul.f32 %v7442_v56, %v2597_v60  ;;  %v9556_v60 = vld [vmem:[#allocation12_spill] sm:$0xff] }
 0xba9   :  { %5398 = vmatmul.mubr.f32.vlgmr.msra.gmra.mrb[24].mxu1 %v2602_v28  ;;  %2745 = vmatmul.mubr.f32.vlgmr.msra.gmra.mrb[26].mxu0 %v2602_v28 }
 0xbaa   :  { %6550 = vmatpush1.bf16.msra.mxu1 %v8350_v25  ;;  %2815 = vmatprep.mubr.f32.mxu1 %v9481_v35 }
 0xbab   :  { %6552 = vmatprep.subr.bf16.mxu1 %v8354_v47  ;;  %6581 = vmatpush3.bf16.msra.mxu0 %v8206_v26 }
 0xbac   :  { %6582 = vmatprep.subr.bf16.mxu0 %v9521_v14  ;;  %5432 = vmatprep.mubr.msk.f32.mxu0 %vm7616_vm0, %v9481_v35 }
 0xbae   :  { %6554 = vmatpush1.bf16.msra.mxu1 %v8359_v17 }
 0xbaf   :  { %6556 = vmatprep.subr.bf16.mxu1 %v8363_v21  ;;  %6584 = vmatpush3.bf16.msra.mxu0 %v8223_v19 }
 0xbb0   :  { %6585 = vmatprep.subr.bf16.mxu0 %v9521_v14 }
 0xbb2   :  { %6558 = vmatpush1.bf16.msra.mxu1 %v8370_v61 }
 0xbb3   :  { %6560 = vmatprep.subr.bf16.mxu1 %v8373_v62  ;;  %6587 = vmatpush3.bf16.msra.mxu0 %v8239_v58 }
 0xbb4   :  { %6588 = vmatprep.subr.bf16.mxu0 %v9521_v14 }
 0xbb6   :  { %6562 = vmatpush1.bf16.msra.mxu1 %v8378_v32 }
 0xbb7   :  { %6564 = vmatprep.subr.bf16.mxu1 %v8381_v54  ;;  %6590 = vmatpush3.bf16.msra.mxu0 %v8255_v39 }
 0xbb8   :  { %6591 = vmatprep.subr.bf16.mxu0 %v9521_v14 }
 0xbba   :  { %6566 = vmatpush1.bf16.msra.mxu1 %v8386_v29 }
 0xbbb   :  { %6568 = vmatprep.subr.bf16.mxu1 %v8389_v50  ;;  %6593 = vmatpush3.bf16.msra.mxu0 %v8271_v49 }
 0xbbc   :  { %6594 = vmatprep.subr.bf16.mxu0 %v9521_v14 }
 0xbbe   :  { %6570 = vmatpush1.bf16.msra.mxu1 %v8394_v44 }
 0xbbf   :  { %6572 = vmatprep.subr.bf16.mxu1 %v8397_v10  ;;  %6596 = vmatpush3.bf16.msra.mxu0 %v8287_v5 }
 0xbc0   :  { %6597 = vmatprep.subr.bf16.mxu0 %v9521_v14 }
 0xbc2   :  { %6574 = vmatpush1.bf16.msra.mxu1 %v8402_v3 }
 0xbc3   :  { %6576 = vmatprep.subr.bf16.mxu1 %v8405_v24  ;;  %6599 = vmatpush3.bf16.msra.mxu0 %v8303_v18 }
 0xbc4   :  { %6600 = vmatprep.subr.bf16.mxu0 %v9521_v14 }
 0xbc6   :  { %6578 = vmatpush1.bf16.msra.mxu1 %v8410_v46 }
 0xbc7   :  { %6604 = vmatprep.subr.bf16.mxu1 %v8209_v33  ;;  %6602 = vmatpush3.bf16.msra.mxu0 %v8319_v4 }
 0xbc8   :  { %6636 = vmatprep.subr.bf16.mxu0 %v8327_v37 }
 0xbc9   :  { %2816 = vmatmul.mubr.f32.vlgmr.msra.gmra.mrb[26].mxu1 %v2602_v28  ;;  %v9550_v28 = vld [vmem:[#allocation24_spill] sm:$0xff] }
 0xbca   :  { %6606 = vmatpush1.bf16.msra.mxu1 %v8211_v15  ;;  %3007 = vmatprep.mubr.f32.mxu1 %v9481_v35 }
 0xbcb   :  { %6608 = vmatprep.subr.bf16.mxu1 %v8225_v36 }
 0xbce   :  { %6610 = vmatpush1.bf16.msra.mxu1 %v8227_v40 }
 0xbcf   :  { %6612 = vmatprep.subr.bf16.mxu1 %v8241_v11 }
 0xbd2   :  { %6614 = vmatpush1.bf16.msra.mxu1 %v8243_v20 }
 0xbd3   :  { %6616 = vmatprep.subr.bf16.mxu1 %v8257_v51 }
 0xbd6   :  { %6618 = vmatpush1.bf16.msra.mxu1 %v8259_v55 }
 0xbd7   :  { %6620 = vmatprep.subr.bf16.mxu1 %v8273_v8 }
 0xbda   :  { %6622 = vmatpush1.bf16.msra.mxu1 %v9522_v12 }
 0xbdb   :  { %6624 = vmatprep.subr.bf16.mxu1 %v9523_v30 }
 0xbde   :  { %6626 = vmatpush1.bf16.msra.mxu1 %v9524_v1 }
 0xbdf   :  { %6628 = vmatprep.subr.bf16.mxu1 %v9547_v31 }
 0xbe2   :  { %6630 = vmatpush1.bf16.msra.mxu1 %v9548_v22 }
 0xbe3   :  { %6632 = vmatprep.subr.bf16.mxu1 %v9549_v38 }
 0xbe6   :  { %6634 = vmatpush1.bf16.msra.mxu1 %v9550_v28 }
 0xbe7   :  { %6667 = vmatprep.subr.bf16.mxu1 %v9521_v14 }
 0xbec   :  { %v2566_v2 = vpop.permute.xlu1 %2565  ;;  %v2578_v38 = vpop.permute.xlu0 %2577 }
 0xbed   :  { %v2569_v56 = vmul.f32 %v2566_v2, %v9556_v60  ;;  %v2568_v28 = vmul.f32 %v2566_v2, %v9533_v7  ;;  %v2581_v42 = vmul.f32 %v2578_v38, %v9544_v27 }
 0xbef   :  { %v2573_v22 = vadd.f32 %v2569_v56, %v8626_v59  ;;  %v2572_v48 = vadd.f32 %v2568_v28, %v8628_v23  ;;  %v2571_v23 = vmul.f32 %v2566_v2, %v7889_v0  ;;  %v2582_v28 = vmul.f32 %v2578_v38, %v9536_v52 }
 0xc7c   :  { %v2669_v6 = vpop.f32.mrb[24].mxu1  ;;  %v2746_v16 = vpop.f32.mrb[26].mxu0 }
 0xc7d   :  { %v2670_v34 = vadd.f32 %v9554_v9, %v2669_v6  ;;  %v5399_v53 = vpop.f32.mrb[25].mxu1  ;;  %v2748_v13 = vpop.f32.mrb[27].mxu0  ;;  %v9557_v6 = vld [vmem:[#allocation15_spill] sm:$0xff]  ;;  %v8714_v9 = vadd.f32 %v2581_v42, %v2573_v22 }
 0xc7e   :  { %v2580_v53 = vmul.f32 %v2578_v38, %v9557_v6 }
 0xc7f   :  { %2840 = vperm.xlu0 %7329, %v2670_v34   ;;  %2828 = vperm.xlu1 %7332, %v2670_v34   ;;  %v8706_v45 = vadd.f32 %v2670_v34, %v8702_v41  ;;  %v2823_v34 = vadd.f32 %v2748_v13, %v8714_v9  ;;  %v9558_v41 = vld [vmem:[#allocation13_spill] sm:$0xff] }
 0xc80   :  { %v8716_v31 = vadd.f32 %v2580_v53, %v2572_v48  ;;  %v2575_v48 = vadd.f32 %v2571_v23, %v8641_v63  ;;  %v9559_v53 = vld [vmem:[#allocation19_spill] sm:$0xff] }
 0xc81   :  { %9555 = vst [vmem:[#allocation26_spill] sm:$0xff] %v8706_v45  ;;  %v2570_v45 = vmul.f32 %v2566_v2, %v9558_v41  ;;  %7443 = vtanh.f32 %v2823_v34  ;;  %v2583_v41 = vmul.f32 %v2578_v38, %v9559_v53 }
 0xc82   :  { %v2822_v60 = vadd.f32 %v2746_v16, %v8716_v31 }
 0xc83   :  { %v2574_v59 = vadd.f32 %v2570_v45, %v8636_v43  ;;  %v8729_v16 = vadd.f32 %v2583_v41, %v2575_v48 }
 0xc84   :  { %7445 = vtanh.f32 %v2822_v60 }
 0xc85   :  { %v8724_v56 = vadd.f32 %v2582_v28, %v2574_v59 }
 0xc8b   :  { %v7444_v6 = vpop.eup %7443 }
 0xc8c   :  { %v2856_v43 = vmul.f32 0.5, %v7444_v6  ;;  %v9561_v6 = vld [vmem:[#allocation22_spill] sm:$0xff] }
 0xc8e   :  { %v7446_v60 = vpop.eup %7445  ;;  %v2859_v34 = vadd.f32 0.5, %v2856_v43 }
 0xc8f   :  { %v2855_v2 = vmul.f32 0.5, %v7446_v60 }
 0xc90   :  { %v2861_v63 = vmul.f32 %v2859_v34, %v8645_v57  ;;  %v9560_v57 = vld [vmem:[#allocation21_spill] sm:$0xff] }
 0xc91   :  { %v2858_v59 = vadd.f32 0.5, %v2855_v2 }
 0xc9c   :  { %v2817_v22 = vpop.f32.mrb[26].mxu1 }
 0xc9d   :  { %v2824_v42 = vadd.f32 %v2817_v22, %v8724_v56  ;;  %v2819_v13 = vpop.f32.mrb[27].mxu1 }
 0xc9e   :  { %v2825_v45 = vadd.f32 %v2819_v13, %v8729_v16  ;;  %v9562_v13 = vld [vmem:[#allocation23_spill] sm:$0xff] }
 0xc9f   :  { %7447 = vtanh.f32 %v2824_v42 }
 0xca0   :  { %7449 = vtanh.f32 %v2825_v45  ;;  %v9564_v45 = vld [vmem:[#allocation25_spill] sm:$0xff] }
 0xca9   :  { %v7448_v28 = vpop.eup %7447 }
 0xcaa   :  { %v2862_v23 = vmul.f32 %v7448_v28, %v2858_v59  ;;  %v7450_v38 = vpop.eup %7449  ;;  %v9565_v28 = vld [vmem:[#allocation26_spill] sm:$0xff] }
 0xcab   :  { %v2857_v42 = vmul.f32 0.5, %v7450_v38  ;;  %v9567_v38 = vld [vmem:[#allocation12_spill] sm:$0xff] }
 0xcac   :  { %v8733_v22 = vadd.f32 %v2862_v23, %v2861_v63 }
 0xcad   :  { %v2860_v41 = vadd.f32 0.5, %v2857_v42 }
 0xcae   :  { %7451 = vtanh.f32 %v8733_v22 }
 0xcb8   :  { %v7452_v48 = vpop.eup %7451 }
 0xcb9   :  { %v2865_v53 = vmul.f32 %v7452_v48, %v2860_v41 }
 0xcbb   :  { %5433 = vmatmul.mubr.f32.vlgmr.msra.gmra.mrb[28].mxu0 %v2865_v53  ;;  %3008 = vmatmul.mubr.f32.vlgmr.msra.gmra.mrb[28].mxu1 %v2865_v53 }
 0xcbc   :  { %6638 = vmatpush1.bf16.msra.mxu0 %v8350_v25  ;;  %3078 = vmatprep.mubr.f32.mxu0 %v9481_v35 }
 0xcbd   :  { %6640 = vmatprep.subr.bf16.mxu0 %v8354_v47  ;;  %6669 = vmatpush3.bf16.msra.mxu1 %v8206_v26 }
 0xcbe   :  { %6670 = vmatprep.subr.bf16.mxu1 %v9521_v14  ;;  %5467 = vmatprep.mubr.msk.f32.mxu1 %vm7616_vm0, %v9481_v35 }
 0xcc0   :  { %6642 = vmatpush1.bf16.msra.mxu0 %v8359_v17 }
 0xcc1   :  { %6644 = vmatprep.subr.bf16.mxu0 %v8363_v21  ;;  %6672 = vmatpush3.bf16.msra.mxu1 %v8223_v19 }
 0xcc2   :  { %6673 = vmatprep.subr.bf16.mxu1 %v9521_v14 }
 0xcc4   :  { %6646 = vmatpush1.bf16.msra.mxu0 %v8370_v61 }
 0xcc5   :  { %6648 = vmatprep.subr.bf16.mxu0 %v8373_v62  ;;  %6675 = vmatpush3.bf16.msra.mxu1 %v8239_v58 }
 0xcc6   :  { %6676 = vmatprep.subr.bf16.mxu1 %v9521_v14 }
 0xcc8   :  { %6650 = vmatpush1.bf16.msra.mxu0 %v8378_v32 }
 0xcc9   :  { %6652 = vmatprep.subr.bf16.mxu0 %v8381_v54  ;;  %6678 = vmatpush3.bf16.msra.mxu1 %v8255_v39 }
 0xcca   :  { %6679 = vmatprep.subr.bf16.mxu1 %v9521_v14 }
 0xccc   :  { %6654 = vmatpush1.bf16.msra.mxu0 %v8386_v29 }
 0xccd   :  { %6656 = vmatprep.subr.bf16.mxu0 %v8389_v50  ;;  %6681 = vmatpush3.bf16.msra.mxu1 %v8271_v49 }
 0xcce   :  { %6682 = vmatprep.subr.bf16.mxu1 %v9521_v14 }
 0xcd0   :  { %6658 = vmatpush1.bf16.msra.mxu0 %v8394_v44 }
 0xcd1   :  { %6660 = vmatprep.subr.bf16.mxu0 %v8397_v10  ;;  %6684 = vmatpush3.bf16.msra.mxu1 %v8287_v5 }
 0xcd2   :  { %6685 = vmatprep.subr.bf16.mxu1 %v9521_v14 }
 0xcd4   :  { %6662 = vmatpush1.bf16.msra.mxu0 %v8402_v3 }
 0xcd5   :  { %6664 = vmatprep.subr.bf16.mxu0 %v8405_v24  ;;  %6687 = vmatpush3.bf16.msra.mxu1 %v8303_v18 }
 0xcd6   :  { %6688 = vmatprep.subr.bf16.mxu1 %v9521_v14 }
 0xcd8   :  { %6666 = vmatpush1.bf16.msra.mxu0 %v8410_v46 }
 0xcd9   :  { %6692 = vmatprep.subr.bf16.mxu0 %v8209_v33  ;;  %6690 = vmatpush3.bf16.msra.mxu1 %v8319_v4 }
 0xcda   :  { %6724 = vmatprep.subr.bf16.mxu1 %v8327_v37 }
 0xcdb   :  { %3079 = vmatmul.mubr.f32.vlgmr.msra.gmra.mrb[30].mxu0 %v2865_v53  ;;  %v9563_v53 = vld [vmem:[#allocation24_spill] sm:$0xff] }
 0xcdc   :  { %6694 = vmatpush1.bf16.msra.mxu0 %v8211_v15  ;;  %3270 = vmatprep.mubr.f32.mxu0 %v9481_v35 }
 0xcdd   :  { %6696 = vmatprep.subr.bf16.mxu0 %v8225_v36 }
 0xce0   :  { %6698 = vmatpush1.bf16.msra.mxu0 %v8227_v40 }
 0xce1   :  { %6700 = vmatprep.subr.bf16.mxu0 %v8241_v11 }
 0xce4   :  { %6702 = vmatpush1.bf16.msra.mxu0 %v8243_v20 }
 0xce5   :  { %6704 = vmatprep.subr.bf16.mxu0 %v8257_v51 }
 0xce8   :  { %6706 = vmatpush1.bf16.msra.mxu0 %v8259_v55 }
 0xce9   :  { %6708 = vmatprep.subr.bf16.mxu0 %v8273_v8 }
 0xcec   :  { %6710 = vmatpush1.bf16.msra.mxu0 %v9522_v12 }
 0xced   :  { %6712 = vmatprep.subr.bf16.mxu0 %v9523_v30 }
 0xcf0   :  { %6714 = vmatpush1.bf16.msra.mxu0 %v9524_v1 }
 0xcf1   :  { %6716 = vmatprep.subr.bf16.mxu0 %v9560_v57 }
 0xcf4   :  { %6718 = vmatpush1.bf16.msra.mxu0 %v9561_v6 }
 0xcf5   :  { %6720 = vmatprep.subr.bf16.mxu0 %v9562_v13 }
 0xcf8   :  { %6722 = vmatpush1.bf16.msra.mxu0 %v9563_v53 }
 0xcf9   :  { %6755 = vmatprep.subr.bf16.mxu0 %v9521_v14 }
 0xcfe   :  { %v2829_v23 = vpop.permute.xlu1 %2828  ;;  %v2841_v48 = vpop.permute.xlu0 %2840 }
 0xcff   :  { %v2832_v42 = vmul.f32 %v2829_v23, %v9567_v38  ;;  %v2831_v41 = vmul.f32 %v2829_v23, %v9533_v7  ;;  %v2844_v6 = vmul.f32 %v2841_v48, %v9544_v27 }
 0xd01   :  { %v2836_v53 = vadd.f32 %v2832_v42, %v8714_v9  ;;  %v2835_v13 = vadd.f32 %v2831_v41, %v8716_v31  ;;  %v2834_v31 = vmul.f32 %v2829_v23, %v7889_v0  ;;  %v2845_v42 = vmul.f32 %v2841_v48, %v9536_v52 }
 0xd8e   :  { %v2932_v60 = vpop.f32.mrb[28].mxu0  ;;  %v3009_v43 = vpop.f32.mrb[28].mxu1 }
 0xd8f   :  { %v2933_v2 = vadd.f32 %v9564_v45, %v2932_v60  ;;  %v5434_v34 = vpop.f32.mrb[29].mxu0  ;;  %v3011_v59 = vpop.f32.mrb[29].mxu1  ;;  %v9568_v60 = vld [vmem:[#allocation15_spill] sm:$0xff] }
 0xd90   :  { %v2843_v45 = vmul.f32 %v2841_v48, %v9568_v60  ;;  %v8798_v34 = vadd.f32 %v2844_v6, %v2836_v53 }
 0xd91   :  { %3103 = vperm.xlu0 %7329, %v2933_v2   ;;  %3091 = vperm.xlu1 %7332, %v2933_v2   ;;  %v8790_v63 = vadd.f32 %v2933_v2, %v9565_v28  ;;  %v9569_v28 = vld [vmem:[#allocation13_spill] sm:$0xff] }
 0xd92   :  { %v8800_v57 = vadd.f32 %v2843_v45, %v2835_v13  ;;  %v3086_v2 = vadd.f32 %v3011_v59, %v8798_v34  ;;  %v2838_v13 = vadd.f32 %v2834_v31, %v8729_v16  ;;  %v9570_v45 = vld [vmem:[#allocation19_spill] sm:$0xff] }
 0xd93   :  { %9566 = vst [vmem:[#allocation11_spill] sm:$0xff] %v8790_v63  ;;  %v2833_v63 = vmul.f32 %v2829_v23, %v9569_v28  ;;  %v2846_v28 = vmul.f32 %v2841_v48, %v9570_v45 }
 0xd94   :  { %v3085_v38 = vadd.f32 %v3009_v43, %v8800_v57  ;;  %7453 = vtanh.f32 %v3086_v2 }
 0xd95   :  { %v2837_v9 = vadd.f32 %v2833_v63, %v8724_v56  ;;  %v8813_v43 = vadd.f32 %v2846_v28, %v2838_v13 }
 0xd96   :  { %7455 = vtanh.f32 %v3085_v38 }
 0xd97   :  { %v8808_v41 = vadd.f32 %v2845_v42, %v2837_v9 }
 0xd9e   :  { %v7454_v60 = vpop.eup %7453 }
 0xd9f   :  { %v3119_v56 = vmul.f32 0.5, %v7454_v60  ;;  %v9572_v60 = vld [vmem:[#allocation22_spill] sm:$0xff] }
 0xda0   :  { %v7456_v38 = vpop.eup %7455 }
 0xda1   :  { %v3118_v23 = vmul.f32 0.5, %v7456_v38  ;;  %v3122_v2 = vadd.f32 0.5, %v3119_v56 }
 0xda3   :  { %v3121_v9 = vadd.f32 0.5, %v3118_v23  ;;  %v3124_v16 = vmul.f32 %v3122_v2, %v8733_v22  ;;  %v9571_v22 = vld [vmem:[#allocation21_spill] sm:$0xff] }
 0xdae   :  { %v3080_v6 = vpop.f32.mrb[30].mxu0 }
 0xdaf   :  { %v3087_v53 = vadd.f32 %v3080_v6, %v8808_v41  ;;  %v3082_v59 = vpop.f32.mrb[31].mxu0 }
 0xdb0   :  { %v3088_v63 = vadd.f32 %v3082_v59, %v8813_v43  ;;  %v9573_v59 = vld [vmem:[#allocation23_spill] sm:$0xff] }
 0xdb1   :  { %7457 = vtanh.f32 %v3087_v53 }
 0xdb2   :  { %7459 = vtanh.f32 %v3088_v63  ;;  %v8875_v63 = vld [vmem:[%s9412_s6] ss:$0 sm:$0xff] }
 0xdb3   :  { %9575 = vst [vmem:[#allocation18_spill] sm:$0xff] %v8875_v63 }
 0xdbb   :  { %v7458_v42 = vpop.eup %7457 }
 0xdbc   :  { %v3125_v31 = vmul.f32 %v7458_v42, %v3121_v9  ;;  %v7460_v48 = vpop.eup %7459  ;;  %v9576_v42 = vld [vmem:[#allocation11_spill] sm:$0xff] }
 0xdbd   :  { %v3120_v53 = vmul.f32 0.5, %v7460_v48  ;;  %v9578_v48 = vld [vmem:[#allocation12_spill] sm:$0xff] }
 0xdbe   :  { %v8817_v6 = vadd.f32 %v3125_v31, %v3124_v16 }
 0xdbf   :  { %v3123_v28 = vadd.f32 0.5, %v3120_v53 }
 0xdc0   :  { %7461 = vtanh.f32 %v8817_v6 }
 0xdca   :  { %v7462_v13 = vpop.eup %7461 }
 0xdcb   :  { %v3128_v45 = vmul.f32 %v7462_v13, %v3123_v28 }
 0xdcd   :  { %5468 = vmatmul.mubr.f32.vlgmr.msra.gmra.mrb[30].mxu1 %v3128_v45  ;;  %3271 = vmatmul.mubr.f32.vlgmr.msra.gmra.mrb[32].mxu0 %v3128_v45 }
 0xdce   :  { %6726 = vmatpush1.bf16.msra.mxu1 %v8350_v25  ;;  %3341 = vmatprep.mubr.f32.mxu1 %v9481_v35 }
 0xdcf   :  { %6728 = vmatprep.subr.bf16.mxu1 %v8354_v47  ;;  %6757 = vmatpush3.bf16.msra.mxu0 %v8206_v26 }
 0xdd0   :  { %6758 = vmatprep.subr.bf16.mxu0 %v9521_v14  ;;  %5502 = vmatprep.mubr.msk.f32.mxu0 %vm7616_vm0, %v9481_v35 }
 0xdd2   :  { %6730 = vmatpush1.bf16.msra.mxu1 %v8359_v17 }
 0xdd3   :  { %6732 = vmatprep.subr.bf16.mxu1 %v8363_v21  ;;  %6760 = vmatpush3.bf16.msra.mxu0 %v8223_v19 }
 0xdd4   :  { %6761 = vmatprep.subr.bf16.mxu0 %v9521_v14 }
 0xdd6   :  { %6734 = vmatpush1.bf16.msra.mxu1 %v8370_v61 }
 0xdd7   :  { %6736 = vmatprep.subr.bf16.mxu1 %v8373_v62  ;;  %6763 = vmatpush3.bf16.msra.mxu0 %v8239_v58 }
 0xdd8   :  { %6764 = vmatprep.subr.bf16.mxu0 %v9521_v14 }
 0xdda   :  { %6738 = vmatpush1.bf16.msra.mxu1 %v8378_v32 }
 0xddb   :  { %6740 = vmatprep.subr.bf16.mxu1 %v8381_v54  ;;  %6766 = vmatpush3.bf16.msra.mxu0 %v8255_v39 }
 0xddc   :  { %6767 = vmatprep.subr.bf16.mxu0 %v9521_v14 }
 0xdde   :  { %6742 = vmatpush1.bf16.msra.mxu1 %v8386_v29 }
 0xddf   :  { %6744 = vmatprep.subr.bf16.mxu1 %v8389_v50  ;;  %6769 = vmatpush3.bf16.msra.mxu0 %v8271_v49 }
 0xde0   :  { %6770 = vmatprep.subr.bf16.mxu0 %v9521_v14 }
 0xde2   :  { %6746 = vmatpush1.bf16.msra.mxu1 %v8394_v44 }
 0xde3   :  { %6748 = vmatprep.subr.bf16.mxu1 %v8397_v10  ;;  %6772 = vmatpush3.bf16.msra.mxu0 %v8287_v5 }
 0xde4   :  { %6773 = vmatprep.subr.bf16.mxu0 %v9521_v14 }
 0xde6   :  { %6750 = vmatpush1.bf16.msra.mxu1 %v8402_v3 }
 0xde7   :  { %6752 = vmatprep.subr.bf16.mxu1 %v8405_v24  ;;  %6775 = vmatpush3.bf16.msra.mxu0 %v8303_v18 }
 0xde8   :  { %6776 = vmatprep.subr.bf16.mxu0 %v9521_v14 }
 0xdea   :  { %6754 = vmatpush1.bf16.msra.mxu1 %v8410_v46 }
 0xdeb   :  { %6780 = vmatprep.subr.bf16.mxu1 %v8209_v33  ;;  %6778 = vmatpush3.bf16.msra.mxu0 %v8319_v4 }
 0xdec   :  { %6812 = vmatprep.subr.bf16.mxu0 %v8327_v37 }
 0xded   :  { %3342 = vmatmul.mubr.f32.vlgmr.msra.gmra.mrb[32].mxu1 %v3128_v45  ;;  %v9574_v45 = vld [vmem:[#allocation24_spill] sm:$0xff] }
 0xdee   :  { %6782 = vmatpush1.bf16.msra.mxu1 %v8211_v15  ;;  %3533 = vmatprep.mubr.f32.mxu1 %v9481_v35 }
 0xdef   :  { %6784 = vmatprep.subr.bf16.mxu1 %v8225_v36 }
 0xdf2   :  { %6786 = vmatpush1.bf16.msra.mxu1 %v8227_v40 }
 0xdf3   :  { %6788 = vmatprep.subr.bf16.mxu1 %v8241_v11 }
 0xdf6   :  { %6790 = vmatpush1.bf16.msra.mxu1 %v8243_v20 }
 0xdf7   :  { %6792 = vmatprep.subr.bf16.mxu1 %v8257_v51 }
 0xdfa   :  { %6794 = vmatpush1.bf16.msra.mxu1 %v8259_v55 }
 0xdfb   :  { %6796 = vmatprep.subr.bf16.mxu1 %v8273_v8 }
 0xdfe   :  { %6798 = vmatpush1.bf16.msra.mxu1 %v9522_v12 }
 0xdff   :  { %6800 = vmatprep.subr.bf16.mxu1 %v9523_v30 }
 0xe02   :  { %6802 = vmatpush1.bf16.msra.mxu1 %v9524_v1 }
 0xe03   :  { %6804 = vmatprep.subr.bf16.mxu1 %v9571_v22 }
 0xe06   :  { %6806 = vmatpush1.bf16.msra.mxu1 %v9572_v60 }
 0xe07   :  { %6808 = vmatprep.subr.bf16.mxu1 %v9573_v59 }
 0xe0a   :  { %6810 = vmatpush1.bf16.msra.mxu1 %v9574_v45 }
 0xe0b   :  { %6843 = vmatprep.subr.bf16.mxu1 %v9521_v14 }
 0xe10   :  { %v3092_v31 = vpop.permute.xlu1 %3091  ;;  %v3104_v13 = vpop.permute.xlu0 %3103 }
 0xe11   :  { %v3095_v53 = vmul.f32 %v3092_v31, %v9578_v48  ;;  %v3094_v28 = vmul.f32 %v3092_v31, %v9533_v7  ;;  %v3107_v60 = vmul.f32 %v3104_v13, %v9544_v27 }
 0xe13   :  { %v3099_v45 = vadd.f32 %v3095_v53, %v8798_v34  ;;  %v3098_v59 = vadd.f32 %v3094_v28, %v8800_v57  ;;  %v3097_v57 = vmul.f32 %v3092_v31, %v7889_v0  ;;  %v3108_v53 = vmul.f32 %v3104_v13, %v9536_v52 }
 0xea0   :  { %v3195_v38 = vpop.f32.mrb[30].mxu1  ;;  %v3272_v56 = vpop.f32.mrb[32].mxu0 }
 0xea1   :  { %v3196_v23 = vadd.f32 %v8875_v63, %v3195_v38  ;;  %v5469_v2 = vpop.f32.mrb[31].mxu1  ;;  %v3274_v9 = vpop.f32.mrb[33].mxu0  ;;  %v9579_v38 = vld [vmem:[#allocation15_spill] sm:$0xff]  ;;  %v8887_v63 = vadd.f32 %v3107_v60, %v3099_v45 }
 0xea2   :  { %v3106_v2 = vmul.f32 %v3104_v13, %v9579_v38 }
 0xea3   :  { %3366 = vperm.xlu0 %7329, %v3196_v23   ;;  %3354 = vperm.xlu1 %7332, %v3196_v23   ;;  %v8879_v16 = vadd.f32 %v3196_v23, %v9576_v42  ;;  %v3349_v23 = vadd.f32 %v3274_v9, %v8887_v63  ;;  %v9580_v42 = vld [vmem:[#allocation13_spill] sm:$0xff] }
 0xea4   :  { %v8889_v22 = vadd.f32 %v3106_v2, %v3098_v59  ;;  %v3101_v59 = vadd.f32 %v3097_v57, %v8813_v43  ;;  %v9581_v2 = vld [vmem:[#allocation19_spill] sm:$0xff] }
 0xea5   :  { %9577 = vst [vmem:[#allocation16_spill] sm:$0xff] %v8879_v16  ;;  %v3096_v16 = vmul.f32 %v3092_v31, %v9580_v42  ;;  %7463 = vtanh.f32 %v3349_v23  ;;  %v3109_v42 = vmul.f32 %v3104_v13, %v9581_v2 }
 0xea6   :  { %v3348_v48 = vadd.f32 %v3272_v56, %v8889_v22 }
 0xea7   :  { %v3100_v34 = vadd.f32 %v3096_v16, %v8808_v41  ;;  %v8902_v56 = vadd.f32 %v3109_v42, %v3101_v59 }
 0xea8   :  { %7465 = vtanh.f32 %v3348_v48 }
 0xea9   :  { %v8897_v28 = vadd.f32 %v3108_v53, %v3100_v34 }
 0xeaf   :  { %v7464_v38 = vpop.eup %7463 }
 0xeb0   :  { %v3382_v41 = vmul.f32 0.5, %v7464_v38  ;;  %v9583_v38 = vld [vmem:[#allocation22_spill] sm:$0xff] }
 0xeb2   :  { %v7466_v48 = vpop.eup %7465  ;;  %v3385_v23 = vadd.f32 0.5, %v3382_v41 }
 0xeb3   :  { %v3381_v31 = vmul.f32 0.5, %v7466_v48 }
 0xeb4   :  { %v3387_v43 = vmul.f32 %v3385_v23, %v8817_v6  ;;  %v9582_v6 = vld [vmem:[#allocation21_spill] sm:$0xff] }
 0xeb5   :  { %v3384_v34 = vadd.f32 0.5, %v3381_v31 }
 0xec0   :  { %v3343_v60 = vpop.f32.mrb[32].mxu1 }
 0xec1   :  { %v3350_v45 = vadd.f32 %v3343_v60, %v8897_v28  ;;  %v3345_v9 = vpop.f32.mrb[33].mxu1 }
 0xec2   :  { %v3351_v16 = vadd.f32 %v3345_v9, %v8902_v56  ;;  %v9584_v9 = vld [vmem:[#allocation23_spill] sm:$0xff] }
 0xec3   :  { %7467 = vtanh.f32 %v3350_v45 }
 0xec4   :  { %7469 = vtanh.f32 %v3351_v16  ;;  %v9586_v16 = vld [vmem:[#allocation18_spill] sm:$0xff] }
 0xecd   :  { %v7468_v53 = vpop.eup %7467 }
 0xece   :  { %v3388_v57 = vmul.f32 %v7468_v53, %v3384_v34  ;;  %v7470_v13 = vpop.eup %7469  ;;  %v9587_v53 = vld [vmem:[#allocation16_spill] sm:$0xff] }
 0xecf   :  { %v3383_v45 = vmul.f32 0.5, %v7470_v13  ;;  %v9589_v13 = vld [vmem:[#allocation12_spill] sm:$0xff] }
 0xed0   :  { %v8906_v60 = vadd.f32 %v3388_v57, %v3387_v43 }
 0xed1   :  { %v3386_v42 = vadd.f32 0.5, %v3383_v45 }
 0xed2   :  { %7471 = vtanh.f32 %v8906_v60 }
 0xedc   :  { %v7472_v59 = vpop.eup %7471 }
 0xedd   :  { %v3391_v2 = vmul.f32 %v7472_v59, %v3386_v42 }
 0xedf   :  { %5503 = vmatmul.mubr.f32.vlgmr.msra.gmra.mrb[34].mxu0 %v3391_v2  ;;  %3534 = vmatmul.mubr.f32.vlgmr.msra.gmra.mrb[34].mxu1 %v3391_v2 }
 0xee0   :  { %6814 = vmatpush1.bf16.msra.mxu0 %v8350_v25  ;;  %3604 = vmatprep.mubr.f32.mxu0 %v9481_v35 }
 0xee1   :  { %6816 = vmatprep.subr.bf16.mxu0 %v8354_v47  ;;  %6845 = vmatpush3.bf16.msra.mxu1 %v8206_v26 }
 0xee2   :  { %6846 = vmatprep.subr.bf16.mxu1 %v9521_v14  ;;  %5537 = vmatprep.mubr.msk.f32.mxu1 %vm7616_vm0, %v9481_v35 }
 0xee4   :  { %6818 = vmatpush1.bf16.msra.mxu0 %v8359_v17 }
 0xee5   :  { %6820 = vmatprep.subr.bf16.mxu0 %v8363_v21  ;;  %6848 = vmatpush3.bf16.msra.mxu1 %v8223_v19 }
 0xee6   :  { %6849 = vmatprep.subr.bf16.mxu1 %v9521_v14 }
 0xee8   :  { %6822 = vmatpush1.bf16.msra.mxu0 %v8370_v61 }
 0xee9   :  { %6824 = vmatprep.subr.bf16.mxu0 %v8373_v62  ;;  %6851 = vmatpush3.bf16.msra.mxu1 %v8239_v58 }
 0xeea   :  { %6852 = vmatprep.subr.bf16.mxu1 %v9521_v14 }
 0xeec   :  { %6826 = vmatpush1.bf16.msra.mxu0 %v8378_v32 }
 0xeed   :  { %6828 = vmatprep.subr.bf16.mxu0 %v8381_v54  ;;  %6854 = vmatpush3.bf16.msra.mxu1 %v8255_v39 }
 0xeee   :  { %6855 = vmatprep.subr.bf16.mxu1 %v9521_v14 }
 0xef0   :  { %6830 = vmatpush1.bf16.msra.mxu0 %v8386_v29 }
 0xef1   :  { %6832 = vmatprep.subr.bf16.mxu0 %v8389_v50  ;;  %6857 = vmatpush3.bf16.msra.mxu1 %v8271_v49 }
 0xef2   :  { %6858 = vmatprep.subr.bf16.mxu1 %v9521_v14 }
 0xef4   :  { %6834 = vmatpush1.bf16.msra.mxu0 %v8394_v44 }
 0xef5   :  { %6836 = vmatprep.subr.bf16.mxu0 %v8397_v10  ;;  %6860 = vmatpush3.bf16.msra.mxu1 %v8287_v5 }
 0xef6   :  { %6861 = vmatprep.subr.bf16.mxu1 %v9521_v14 }
 0xef8   :  { %6838 = vmatpush1.bf16.msra.mxu0 %v8402_v3 }
 0xef9   :  { %6840 = vmatprep.subr.bf16.mxu0 %v8405_v24  ;;  %6863 = vmatpush3.bf16.msra.mxu1 %v8303_v18 }
 0xefa   :  { %6864 = vmatprep.subr.bf16.mxu1 %v9521_v14 }
 0xefc   :  { %6842 = vmatpush1.bf16.msra.mxu0 %v8410_v46 }
 0xefd   :  { %6868 = vmatprep.subr.bf16.mxu0 %v8209_v33  ;;  %6866 = vmatpush3.bf16.msra.mxu1 %v8319_v4 }
 0xefe   :  { %6900 = vmatprep.subr.bf16.mxu1 %v8327_v37 }
 0xeff   :  { %3605 = vmatmul.mubr.f32.vlgmr.msra.gmra.mrb[36].mxu0 %v3391_v2  ;;  %v9585_v2 = vld [vmem:[#allocation24_spill] sm:$0xff] }
 0xf00   :  { %6870 = vmatpush1.bf16.msra.mxu0 %v8211_v15  ;;  %3796 = vmatprep.mubr.f32.mxu0 %v9481_v35 }
 0xf01   :  { %6872 = vmatprep.subr.bf16.mxu0 %v8225_v36 }
 0xf04   :  { %6874 = vmatpush1.bf16.msra.mxu0 %v8227_v40 }
 0xf05   :  { %6876 = vmatprep.subr.bf16.mxu0 %v8241_v11 }
 0xf08   :  { %6878 = vmatpush1.bf16.msra.mxu0 %v8243_v20 }
 0xf09   :  { %6880 = vmatprep.subr.bf16.mxu0 %v8257_v51 }
 0xf0c   :  { %6882 = vmatpush1.bf16.msra.mxu0 %v8259_v55 }
 0xf0d   :  { %6884 = vmatprep.subr.bf16.mxu0 %v8273_v8 }
 0xf10   :  { %6886 = vmatpush1.bf16.msra.mxu0 %v9522_v12 }
 0xf11   :  { %6888 = vmatprep.subr.bf16.mxu0 %v9523_v30 }
 0xf14   :  { %6890 = vmatpush1.bf16.msra.mxu0 %v9524_v1 }
 0xf15   :  { %6892 = vmatprep.subr.bf16.mxu0 %v9582_v6 }
 0xf18   :  { %6894 = vmatpush1.bf16.msra.mxu0 %v9583_v38 }
 0xf19   :  { %6896 = vmatprep.subr.bf16.mxu0 %v9584_v9 }
 0xf1c   :  { %6898 = vmatpush1.bf16.msra.mxu0 %v9585_v2 }
 0xf1d   :  { %6931 = vmatprep.subr.bf16.mxu0 %v9521_v14 }
 0xf22   :  { %v3355_v57 = vpop.permute.xlu1 %3354  ;;  %v3367_v59 = vpop.permute.xlu0 %3366 }
 0xf23   :  { %v3358_v45 = vmul.f32 %v3355_v57, %v9589_v13  ;;  %v3357_v42 = vmul.f32 %v3355_v57, %v9533_v7  ;;  %v3370_v38 = vmul.f32 %v3367_v59, %v9544_v27 }
 0xf25   :  { %v3362_v2 = vadd.f32 %v3358_v45, %v8887_v63  ;;  %v3361_v9 = vadd.f32 %v3357_v42, %v8889_v22  ;;  %v3360_v22 = vmul.f32 %v3355_v57, %v7889_v0  ;;  %v3371_v45 = vmul.f32 %v3367_v59, %v9536_v52 }
 0xfb2   :  { %v3458_v48 = vpop.f32.mrb[34].mxu0  ;;  %v3535_v41 = vpop.f32.mrb[34].mxu1 }
 0xfb3   :  { %v3459_v31 = vadd.f32 %v9586_v16, %v3458_v48  ;;  %v5504_v23 = vpop.f32.mrb[35].mxu0  ;;  %v3537_v34 = vpop.f32.mrb[35].mxu1  ;;  %v9590_v48 = vld [vmem:[#allocation15_spill] sm:$0xff]  ;;  %v8971_v16 = vadd.f32 %v3370_v38, %v3362_v2 }
 0xfb4   :  { %v3369_v23 = vmul.f32 %v3367_v59, %v9590_v48 }
 0xfb5   :  { %3629 = vperm.xlu0 %7329, %v3459_v31   ;;  %3617 = vperm.xlu1 %7332, %v3459_v31   ;;  %v8963_v43 = vadd.f32 %v3459_v31, %v9587_v53  ;;  %v3612_v31 = vadd.f32 %v3537_v34, %v8971_v16  ;;  %v9591_v53 = vld [vmem:[#allocation13_spill] sm:$0xff] }
 0xfb6   :  { %v8973_v6 = vadd.f32 %v3369_v23, %v3361_v9  ;;  %v3364_v9 = vadd.f32 %v3360_v22, %v8902_v56  ;;  %v9592_v23 = vld [vmem:[#allocation19_spill] sm:$0xff] }
 0xfb7   :  { %9588 = vst [vmem:[#allocation14_spill] sm:$0xff] %v8963_v43  ;;  %v3359_v43 = vmul.f32 %v3355_v57, %v9591_v53  ;;  %7473 = vtanh.f32 %v3612_v31  ;;  %v3372_v53 = vmul.f32 %v3367_v59, %v9592_v23 }
 0xfb8   :  { %v3611_v13 = vadd.f32 %v3535_v41, %v8973_v6 }
 0xfb9   :  { %v3363_v63 = vadd.f32 %v3359_v43, %v8897_v28  ;;  %v8986_v41 = vadd.f32 %v3372_v53, %v3364_v9 }
 0xfba   :  { %7475 = vtanh.f32 %v3611_v13 }
 0xfbb   :  { %v8981_v42 = vadd.f32 %v3371_v45, %v3363_v63 }
 0xfc1   :  { %v7474_v48 = vpop.eup %7473 }
 0xfc2   :  { %v3645_v28 = vmul.f32 0.5, %v7474_v48  ;;  %v9594_v48 = vld [vmem:[#allocation22_spill] sm:$0xff] }
 0xfc4   :  { %v7476_v13 = vpop.eup %7475  ;;  %v3648_v31 = vadd.f32 0.5, %v3645_v28 }
 0xfc5   :  { %v3644_v57 = vmul.f32 0.5, %v7476_v13 }
 0xfc6   :  { %v3650_v56 = vmul.f32 %v3648_v31, %v8906_v60  ;;  %v9593_v60 = vld [vmem:[#allocation21_spill] sm:$0xff] }
 0xfc7   :  { %v3647_v63 = vadd.f32 0.5, %v3644_v57 }
 0xfd2   :  { %v3606_v38 = vpop.f32.mrb[36].mxu0 }
 0xfd3   :  { %v3613_v2 = vadd.f32 %v3606_v38, %v8981_v42  ;;  %v3608_v34 = vpop.f32.mrb[37].mxu0 }
 0xfd4   :  { %v3614_v43 = vadd.f32 %v3608_v34, %v8986_v41  ;;  %v9595_v34 = vld [vmem:[#allocation23_spill] sm:$0xff] }
 0xfd5   :  { %7477 = vtanh.f32 %v3613_v2 }
 0xfd6   :  { %7479 = vtanh.f32 %v3614_v43  ;;  %v9597_v43 = vld [vmem:[#allocation18_spill] sm:$0xff] }
 0xfdf   :  { %v7478_v45 = vpop.eup %7477 }
 0xfe0   :  { %v3651_v22 = vmul.f32 %v7478_v45, %v3647_v63  ;;  %v7480_v59 = vpop.eup %7479  ;;  %v9598_v45 = vld [vmem:[#allocation14_spill] sm:$0xff] }
 0xfe1   :  { %v3646_v2 = vmul.f32 0.5, %v7480_v59  ;;  %v9600_v59 = vld [vmem:[#allocation12_spill] sm:$0xff] }
 0xfe2   :  { %v8990_v38 = vadd.f32 %v3651_v22, %v3650_v56 }
 0xfe3   :  { %v3649_v53 = vadd.f32 0.5, %v3646_v2 }
 0xfe4   :  { %7481 = vtanh.f32 %v8990_v38 }
 0xfee   :  { %v7482_v9 = vpop.eup %7481 }
 0xfef   :  { %v3654_v23 = vmul.f32 %v7482_v9, %v3649_v53 }
 0xff1   :  { %5538 = vmatmul.mubr.f32.vlgmr.msra.gmra.mrb[36].mxu1 %v3654_v23  ;;  %3797 = vmatmul.mubr.f32.vlgmr.msra.gmra.mrb[38].mxu0 %v3654_v23 }
 0xff2   :  { %6902 = vmatpush1.bf16.msra.mxu1 %v8350_v25  ;;  %3867 = vmatprep.mubr.f32.mxu1 %v9481_v35 }
 0xff3   :  { %6904 = vmatprep.subr.bf16.mxu1 %v8354_v47  ;;  %6933 = vmatpush3.bf16.msra.mxu0 %v8206_v26 }
 0xff4   :  { %6934 = vmatprep.subr.bf16.mxu0 %v9521_v14  ;;  %5572 = vmatprep.mubr.msk.f32.mxu0 %vm7616_vm0, %v9481_v35 }
 0xff6   :  { %6906 = vmatpush1.bf16.msra.mxu1 %v8359_v17 }
 0xff7   :  { %6908 = vmatprep.subr.bf16.mxu1 %v8363_v21  ;;  %6936 = vmatpush3.bf16.msra.mxu0 %v8223_v19 }
 0xff8   :  { %6937 = vmatprep.subr.bf16.mxu0 %v9521_v14 }
 0xffa   :  { %6910 = vmatpush1.bf16.msra.mxu1 %v8370_v61 }
 0xffb   :  { %6912 = vmatprep.subr.bf16.mxu1 %v8373_v62  ;;  %6939 = vmatpush3.bf16.msra.mxu0 %v8239_v58 }
 0xffc   :  { %6940 = vmatprep.subr.bf16.mxu0 %v9521_v14 }
 0xffe   :  { %6914 = vmatpush1.bf16.msra.mxu1 %v8378_v32 }
 0xfff   :  { %6916 = vmatprep.subr.bf16.mxu1 %v8381_v54  ;;  %6942 = vmatpush3.bf16.msra.mxu0 %v8255_v39 }
0x1000   :  { %6943 = vmatprep.subr.bf16.mxu0 %v9521_v14 }
0x1002   :  { %6918 = vmatpush1.bf16.msra.mxu1 %v8386_v29 }
0x1003   :  { %6920 = vmatprep.subr.bf16.mxu1 %v8389_v50  ;;  %6945 = vmatpush3.bf16.msra.mxu0 %v8271_v49 }
0x1004   :  { %6946 = vmatprep.subr.bf16.mxu0 %v9521_v14 }
0x1006   :  { %6922 = vmatpush1.bf16.msra.mxu1 %v8394_v44 }
0x1007   :  { %6924 = vmatprep.subr.bf16.mxu1 %v8397_v10  ;;  %6948 = vmatpush3.bf16.msra.mxu0 %v8287_v5 }
0x1008   :  { %6949 = vmatprep.subr.bf16.mxu0 %v9521_v14 }
0x100a   :  { %6926 = vmatpush1.bf16.msra.mxu1 %v8402_v3 }
0x100b   :  { %6928 = vmatprep.subr.bf16.mxu1 %v8405_v24  ;;  %6951 = vmatpush3.bf16.msra.mxu0 %v8303_v18 }
0x100c   :  { %6952 = vmatprep.subr.bf16.mxu0 %v9521_v14 }
0x100e   :  { %6930 = vmatpush1.bf16.msra.mxu1 %v8410_v46 }
0x100f   :  { %6956 = vmatprep.subr.bf16.mxu1 %v8209_v33  ;;  %6954 = vmatpush3.bf16.msra.mxu0 %v8319_v4 }
0x1010   :  { %6988 = vmatprep.subr.bf16.mxu0 %v8327_v37 }
0x1011   :  { %3868 = vmatmul.mubr.f32.vlgmr.msra.gmra.mrb[38].mxu1 %v3654_v23  ;;  %v9596_v23 = vld [vmem:[#allocation24_spill] sm:$0xff] }
0x1012   :  { %6958 = vmatpush1.bf16.msra.mxu1 %v8211_v15  ;;  %4059 = vmatprep.mubr.f32.mxu1 %v9481_v35 }
0x1013   :  { %6960 = vmatprep.subr.bf16.mxu1 %v8225_v36 }
0x1016   :  { %6962 = vmatpush1.bf16.msra.mxu1 %v8227_v40 }
0x1017   :  { %6964 = vmatprep.subr.bf16.mxu1 %v8241_v11 }
0x101a   :  { %6966 = vmatpush1.bf16.msra.mxu1 %v8243_v20 }
0x101b   :  { %6968 = vmatprep.subr.bf16.mxu1 %v8257_v51 }
0x101e   :  { %6970 = vmatpush1.bf16.msra.mxu1 %v8259_v55 }
0x101f   :  { %6972 = vmatprep.subr.bf16.mxu1 %v8273_v8 }
0x1022   :  { %6974 = vmatpush1.bf16.msra.mxu1 %v9522_v12 }
0x1023   :  { %6976 = vmatprep.subr.bf16.mxu1 %v9523_v30 }
0x1026   :  { %6978 = vmatpush1.bf16.msra.mxu1 %v9524_v1 }
0x1027   :  { %6980 = vmatprep.subr.bf16.mxu1 %v9593_v60 }
0x102a   :  { %6982 = vmatpush1.bf16.msra.mxu1 %v9594_v48 }
0x102b   :  { %6984 = vmatprep.subr.bf16.mxu1 %v9595_v34 }
0x102e   :  { %6986 = vmatpush1.bf16.msra.mxu1 %v9596_v23 }
0x102f   :  { %7019 = vmatprep.subr.bf16.mxu1 %v9521_v14 }
0x1034   :  { %v3618_v22 = vpop.permute.xlu1 %3617  ;;  %v3630_v9 = vpop.permute.xlu0 %3629 }
0x1035   :  { %v3621_v2 = vmul.f32 %v3618_v22, %v9600_v59  ;;  %v3620_v53 = vmul.f32 %v3618_v22, %v9533_v7  ;;  %v3633_v48 = vmul.f32 %v3630_v9, %v9544_v27 }
0x1037   :  { %v3625_v23 = vadd.f32 %v3621_v2, %v8971_v16  ;;  %v3624_v34 = vadd.f32 %v3620_v53, %v8973_v6  ;;  %v3623_v6 = vmul.f32 %v3618_v22, %v7889_v0  ;;  %v3634_v2 = vmul.f32 %v3630_v9, %v9536_v52 }
0x10c4   :  { %v3721_v13 = vpop.f32.mrb[36].mxu1  ;;  %v3798_v28 = vpop.f32.mrb[38].mxu0 }
0x10c5   :  { %v3722_v57 = vadd.f32 %v9597_v43, %v3721_v13  ;;  %v5539_v31 = vpop.f32.mrb[37].mxu1  ;;  %v3800_v63 = vpop.f32.mrb[39].mxu0  ;;  %v9601_v13 = vld [vmem:[#allocation15_spill] sm:$0xff]  ;;  %v9055_v43 = vadd.f32 %v3633_v48, %v3625_v23 }
0x10c6   :  { %v3632_v31 = vmul.f32 %v3630_v9, %v9601_v13 }
0x10c7   :  { %3892 = vperm.xlu0 %7329, %v3722_v57   ;;  %3880 = vperm.xlu1 %7332, %v3722_v57   ;;  %v9047_v56 = vadd.f32 %v3722_v57, %v9598_v45  ;;  %v3875_v57 = vadd.f32 %v3800_v63, %v9055_v43  ;;  %v9602_v45 = vld [vmem:[#allocation13_spill] sm:$0xff] }
0x10c8   :  { %v9057_v60 = vadd.f32 %v3632_v31, %v3624_v34  ;;  %v3627_v34 = vadd.f32 %v3623_v6, %v8986_v41  ;;  %v9603_v31 = vld [vmem:[#allocation19_spill] sm:$0xff] }
0x10c9   :  { %9599 = vst [vmem:[#allocation17_spill] sm:$0xff] %v9047_v56  ;;  %v3622_v56 = vmul.f32 %v3618_v22, %v9602_v45  ;;  %7483 = vtanh.f32 %v3875_v57  ;;  %v3635_v45 = vmul.f32 %v3630_v9, %v9603_v31 }
0x10ca   :  { %v3874_v59 = vadd.f32 %v3798_v28, %v9057_v60 }
0x10cb   :  { %v3626_v16 = vadd.f32 %v3622_v56, %v8981_v42  ;;  %v9070_v28 = vadd.f32 %v3635_v45, %v3627_v34 }
0x10cc   :  { %7485 = vtanh.f32 %v3874_v59 }
0x10cd   :  { %v9065_v53 = vadd.f32 %v3634_v2, %v3626_v16 }
0x10d3   :  { %v7484_v13 = vpop.eup %7483 }
0x10d4   :  { %v3908_v42 = vmul.f32 0.5, %v7484_v13  ;;  %v9605_v13 = vld [vmem:[#allocation22_spill] sm:$0xff] }
0x10d6   :  { %v7486_v59 = vpop.eup %7485  ;;  %v3911_v57 = vadd.f32 0.5, %v3908_v42 }
0x10d7   :  { %v3907_v22 = vmul.f32 0.5, %v7486_v59 }
0x10d8   :  { %v3913_v41 = vmul.f32 %v3911_v57, %v8990_v38  ;;  %v9604_v38 = vld [vmem:[#allocation21_spill] sm:$0xff] }
0x10d9   :  { %v3910_v16 = vadd.f32 0.5, %v3907_v22 }
0x10e4   :  { %v3869_v48 = vpop.f32.mrb[38].mxu1 }
0x10e5   :  { %v3876_v23 = vadd.f32 %v3869_v48, %v9065_v53  ;;  %v3871_v63 = vpop.f32.mrb[39].mxu1 }
0x10e6   :  { %v3877_v56 = vadd.f32 %v3871_v63, %v9070_v28  ;;  %v9606_v63 = vld [vmem:[#allocation23_spill] sm:$0xff] }
0x10e7   :  { %7487 = vtanh.f32 %v3876_v23 }
0x10e8   :  { %7489 = vtanh.f32 %v3877_v56  ;;  %v9608_v56 = vld [vmem:[#allocation18_spill] sm:$0xff] }
0x10f1   :  { %v7488_v2 = vpop.eup %7487 }
0x10f2   :  { %v3914_v6 = vmul.f32 %v7488_v2, %v3910_v16  ;;  %v7490_v9 = vpop.eup %7489  ;;  %v9609_v2 = vld [vmem:[#allocation17_spill] sm:$0xff] }
0x10f3   :  { %v3909_v23 = vmul.f32 0.5, %v7490_v9  ;;  %v9611_v9 = vld [vmem:[#allocation12_spill] sm:$0xff] }
0x10f4   :  { %v9074_v48 = vadd.f32 %v3914_v6, %v3913_v41 }
0x10f5   :  { %v3912_v45 = vadd.f32 0.5, %v3909_v23 }
0x10f6   :  { %7491 = vtanh.f32 %v9074_v48 }
0x1100   :  { %v7492_v34 = vpop.eup %7491 }
0x1101   :  { %v3917_v31 = vmul.f32 %v7492_v34, %v3912_v45 }
0x1103   :  { %5573 = vmatmul.mubr.f32.vlgmr.msra.gmra.mrb[40].mxu0 %v3917_v31  ;;  %4060 = vmatmul.mubr.f32.vlgmr.msra.gmra.mrb[40].mxu1 %v3917_v31 }
0x1104   :  { %6990 = vmatpush1.bf16.msra.mxu0 %v8350_v25  ;;  %4130 = vmatprep.mubr.f32.mxu0 %v9481_v35 }
0x1105   :  { %6992 = vmatprep.subr.bf16.mxu0 %v8354_v47  ;;  %7021 = vmatpush3.bf16.msra.mxu1 %v8206_v26 }
0x1106   :  { %7022 = vmatprep.subr.bf16.mxu1 %v9521_v14  ;;  %5607 = vmatprep.mubr.msk.f32.mxu1 %vm7616_vm0, %v9481_v35 }
0x1108   :  { %6994 = vmatpush1.bf16.msra.mxu0 %v8359_v17 }
0x1109   :  { %6996 = vmatprep.subr.bf16.mxu0 %v8363_v21  ;;  %7024 = vmatpush3.bf16.msra.mxu1 %v8223_v19 }
0x110a   :  { %7025 = vmatprep.subr.bf16.mxu1 %v9521_v14 }
0x110c   :  { %6998 = vmatpush1.bf16.msra.mxu0 %v8370_v61 }
0x110d   :  { %7000 = vmatprep.subr.bf16.mxu0 %v8373_v62  ;;  %7027 = vmatpush3.bf16.msra.mxu1 %v8239_v58 }
0x110e   :  { %7028 = vmatprep.subr.bf16.mxu1 %v9521_v14 }
0x1110   :  { %7002 = vmatpush1.bf16.msra.mxu0 %v8378_v32 }
0x1111   :  { %7004 = vmatprep.subr.bf16.mxu0 %v8381_v54  ;;  %7030 = vmatpush3.bf16.msra.mxu1 %v8255_v39 }
0x1112   :  { %7031 = vmatprep.subr.bf16.mxu1 %v9521_v14 }
0x1114   :  { %7006 = vmatpush1.bf16.msra.mxu0 %v8386_v29 }
0x1115   :  { %7008 = vmatprep.subr.bf16.mxu0 %v8389_v50  ;;  %7033 = vmatpush3.bf16.msra.mxu1 %v8271_v49 }
0x1116   :  { %7034 = vmatprep.subr.bf16.mxu1 %v9521_v14 }
0x1118   :  { %7010 = vmatpush1.bf16.msra.mxu0 %v8394_v44 }
0x1119   :  { %7012 = vmatprep.subr.bf16.mxu0 %v8397_v10  ;;  %7036 = vmatpush3.bf16.msra.mxu1 %v8287_v5 }
0x111a   :  { %7037 = vmatprep.subr.bf16.mxu1 %v9521_v14 }
0x111c   :  { %7014 = vmatpush1.bf16.msra.mxu0 %v8402_v3 }
0x111d   :  { %7016 = vmatprep.subr.bf16.mxu0 %v8405_v24  ;;  %7039 = vmatpush3.bf16.msra.mxu1 %v8303_v18 }
0x111e   :  { %7040 = vmatprep.subr.bf16.mxu1 %v9521_v14 }
0x1120   :  { %7018 = vmatpush1.bf16.msra.mxu0 %v8410_v46 }
0x1121   :  { %7044 = vmatprep.subr.bf16.mxu0 %v8209_v33  ;;  %7042 = vmatpush3.bf16.msra.mxu1 %v8319_v4 }
0x1122   :  { %7076 = vmatprep.subr.bf16.mxu1 %v8327_v37 }
0x1123   :  { %4131 = vmatmul.mubr.f32.vlgmr.msra.gmra.mrb[42].mxu0 %v3917_v31  ;;  %v9607_v31 = vld [vmem:[#allocation24_spill] sm:$0xff] }
0x1124   :  { %7046 = vmatpush1.bf16.msra.mxu0 %v8211_v15  ;;  %4322 = vmatprep.mubr.f32.mxu0 %v9481_v35 }
0x1125   :  { %7048 = vmatprep.subr.bf16.mxu0 %v8225_v36 }
0x1128   :  { %7050 = vmatpush1.bf16.msra.mxu0 %v8227_v40 }
0x1129   :  { %7052 = vmatprep.subr.bf16.mxu0 %v8241_v11 }
0x112c   :  { %7054 = vmatpush1.bf16.msra.mxu0 %v8243_v20 }
0x112d   :  { %7056 = vmatprep.subr.bf16.mxu0 %v8257_v51 }
0x1130   :  { %7058 = vmatpush1.bf16.msra.mxu0 %v8259_v55 }
0x1131   :  { %7060 = vmatprep.subr.bf16.mxu0 %v8273_v8 }
0x1134   :  { %7062 = vmatpush1.bf16.msra.mxu0 %v9522_v12 }
0x1135   :  { %7064 = vmatprep.subr.bf16.mxu0 %v9523_v30 }
0x1138   :  { %7066 = vmatpush1.bf16.msra.mxu0 %v9524_v1 }
0x1139   :  { %7068 = vmatprep.subr.bf16.mxu0 %v9604_v38 }
0x113c   :  { %7070 = vmatpush1.bf16.msra.mxu0 %v9605_v13 }
0x113d   :  { %7072 = vmatprep.subr.bf16.mxu0 %v9606_v63 }
0x1140   :  { %7074 = vmatpush1.bf16.msra.mxu0 %v9607_v31 }
0x1141   :  { %7107 = vmatprep.subr.bf16.mxu0 %v9521_v14 }
0x1146   :  { %v3881_v6 = vpop.permute.xlu1 %3880  ;;  %v3893_v34 = vpop.permute.xlu0 %3892 }
0x1147   :  { %v3884_v23 = vmul.f32 %v3881_v6, %v9611_v9  ;;  %v3883_v45 = vmul.f32 %v3881_v6, %v9533_v7  ;;  %v3896_v13 = vmul.f32 %v3893_v34, %v9544_v27 }
0x1149   :  { %v3888_v31 = vadd.f32 %v3884_v23, %v9055_v43  ;;  %v3887_v63 = vadd.f32 %v3883_v45, %v9057_v60  ;;  %v3886_v60 = vmul.f32 %v3881_v6, %v7889_v0  ;;  %v3897_v23 = vmul.f32 %v3893_v34, %v9536_v52 }
0x11d6   :  { %v3984_v59 = vpop.f32.mrb[40].mxu0  ;;  %v4061_v42 = vpop.f32.mrb[40].mxu1 }
0x11d7   :  { %v3985_v22 = vadd.f32 %v9608_v56, %v3984_v59  ;;  %v5574_v57 = vpop.f32.mrb[41].mxu0  ;;  %v4063_v16 = vpop.f32.mrb[41].mxu1  ;;  %v9612_v59 = vld [vmem:[#allocation15_spill] sm:$0xff]  ;;  %v9139_v56 = vadd.f32 %v3896_v13, %v3888_v31 }
0x11d8   :  { %v3895_v57 = vmul.f32 %v3893_v34, %v9612_v59 }
0x11d9   :  { %4155 = vperm.xlu0 %7329, %v3985_v22   ;;  %4143 = vperm.xlu1 %7332, %v3985_v22   ;;  %v9131_v41 = vadd.f32 %v3985_v22, %v9609_v2  ;;  %v4138_v22 = vadd.f32 %v4063_v16, %v9139_v56  ;;  %v9613_v2 = vld [vmem:[#allocation13_spill] sm:$0xff] }
0x11da   :  { %v9141_v38 = vadd.f32 %v3895_v57, %v3887_v63  ;;  %v3890_v63 = vadd.f32 %v3886_v60, %v9070_v28  ;;  %v9614_v57 = vld [vmem:[#allocation19_spill] sm:$0xff] }
0x11db   :  { %9610 = vst [vmem:[#allocation25_spill] sm:$0xff] %v9131_v41  ;;  %v3885_v41 = vmul.f32 %v3881_v6, %v9613_v2  ;;  %7493 = vtanh.f32 %v4138_v22  ;;  %v3898_v2 = vmul.f32 %v3893_v34, %v9614_v57 }
0x11dc   :  { %v4137_v9 = vadd.f32 %v4061_v42, %v9141_v38 }
0x11dd   :  { %v3889_v43 = vadd.f32 %v3885_v41, %v9065_v53  ;;  %v9154_v42 = vadd.f32 %v3898_v2, %v3890_v63 }
0x11de   :  { %7495 = vtanh.f32 %v4137_v9 }
0x11df   :  { %v9149_v45 = vadd.f32 %v3897_v23, %v3889_v43 }
0x11e5   :  { %v7494_v59 = vpop.eup %7493 }
0x11e6   :  { %v4171_v53 = vmul.f32 0.5, %v7494_v59  ;;  %v9616_v59 = vld [vmem:[#allocation22_spill] sm:$0xff] }
0x11e8   :  { %v7496_v9 = vpop.eup %7495  ;;  %v4174_v22 = vadd.f32 0.5, %v4171_v53 }
0x11e9   :  { %v4170_v6 = vmul.f32 0.5, %v7496_v9 }
0x11ea   :  { %v4176_v28 = vmul.f32 %v4174_v22, %v9074_v48  ;;  %v9615_v48 = vld [vmem:[#allocation21_spill] sm:$0xff] }
0x11eb   :  { %v4173_v43 = vadd.f32 0.5, %v4170_v6 }
0x11f6   :  { %v4132_v13 = vpop.f32.mrb[42].mxu0 }
0x11f7   :  { %v4139_v31 = vadd.f32 %v4132_v13, %v9149_v45  ;;  %v4134_v16 = vpop.f32.mrb[43].mxu0 }
0x11f8   :  { %v4140_v41 = vadd.f32 %v4134_v16, %v9154_v42  ;;  %v9617_v16 = vld [vmem:[#allocation23_spill] sm:$0xff] }
0x11f9   :  { %7497 = vtanh.f32 %v4139_v31 }
0x11fa   :  { %7499 = vtanh.f32 %v4140_v41  ;;  %v9619_v41 = vld [vmem:[#allocation18_spill] sm:$0xff] }
0x1203   :  { %v7498_v23 = vpop.eup %7497 }
0x1204   :  { %v4177_v60 = vmul.f32 %v7498_v23, %v4173_v43  ;;  %v7500_v34 = vpop.eup %7499  ;;  %v9620_v23 = vld [vmem:[#allocation25_spill] sm:$0xff] }
0x1205   :  { %v4172_v31 = vmul.f32 0.5, %v7500_v34  ;;  %v9622_v34 = vld [vmem:[#allocation12_spill] sm:$0xff] }
0x1206   :  { %v9158_v13 = vadd.f32 %v4177_v60, %v4176_v28 }
0x1207   :  { %v4175_v2 = vadd.f32 0.5, %v4172_v31 }
0x1208   :  { %7501 = vtanh.f32 %v9158_v13 }
0x1212   :  { %v7502_v63 = vpop.eup %7501 }
0x1213   :  { %v4180_v57 = vmul.f32 %v7502_v63, %v4175_v2 }
0x1215   :  { %5608 = vmatmul.mubr.f32.vlgmr.msra.gmra.mrb[42].mxu1 %v4180_v57  ;;  %4323 = vmatmul.mubr.f32.vlgmr.msra.gmra.mrb[44].mxu0 %v4180_v57 }
0x1216   :  { %7078 = vmatpush1.bf16.msra.mxu1 %v8350_v25  ;;  %4393 = vmatprep.mubr.f32.mxu1 %v9481_v35 }
0x1217   :  { %7080 = vmatprep.subr.bf16.mxu1 %v8354_v47  ;;  %7109 = vmatpush3.bf16.msra.mxu0 %v8206_v26 }
0x1218   :  { %7110 = vmatprep.subr.bf16.mxu0 %v9521_v14  ;;  %5642 = vmatprep.mubr.msk.f32.mxu0 %vm7616_vm0, %v9481_v35 }
0x121a   :  { %7082 = vmatpush1.bf16.msra.mxu1 %v8359_v17 }
0x121b   :  { %7084 = vmatprep.subr.bf16.mxu1 %v8363_v21  ;;  %7112 = vmatpush3.bf16.msra.mxu0 %v8223_v19 }
0x121c   :  { %7113 = vmatprep.subr.bf16.mxu0 %v9521_v14 }
0x121e   :  { %7086 = vmatpush1.bf16.msra.mxu1 %v8370_v61 }
0x121f   :  { %7088 = vmatprep.subr.bf16.mxu1 %v8373_v62  ;;  %7115 = vmatpush3.bf16.msra.mxu0 %v8239_v58 }
0x1220   :  { %7116 = vmatprep.subr.bf16.mxu0 %v9521_v14 }
0x1222   :  { %7090 = vmatpush1.bf16.msra.mxu1 %v8378_v32 }
0x1223   :  { %7092 = vmatprep.subr.bf16.mxu1 %v8381_v54  ;;  %7118 = vmatpush3.bf16.msra.mxu0 %v8255_v39 }
0x1224   :  { %7119 = vmatprep.subr.bf16.mxu0 %v9521_v14 }
0x1226   :  { %7094 = vmatpush1.bf16.msra.mxu1 %v8386_v29 }
0x1227   :  { %7096 = vmatprep.subr.bf16.mxu1 %v8389_v50  ;;  %7121 = vmatpush3.bf16.msra.mxu0 %v8271_v49 }
0x1228   :  { %7122 = vmatprep.subr.bf16.mxu0 %v9521_v14 }
0x122a   :  { %7098 = vmatpush1.bf16.msra.mxu1 %v8394_v44 }
0x122b   :  { %7100 = vmatprep.subr.bf16.mxu1 %v8397_v10  ;;  %7124 = vmatpush3.bf16.msra.mxu0 %v8287_v5 }
0x122c   :  { %7125 = vmatprep.subr.bf16.mxu0 %v9521_v14 }
0x122e   :  { %7102 = vmatpush1.bf16.msra.mxu1 %v8402_v3 }
0x122f   :  { %7104 = vmatprep.subr.bf16.mxu1 %v8405_v24  ;;  %7127 = vmatpush3.bf16.msra.mxu0 %v8303_v18 }
0x1230   :  { %7128 = vmatprep.subr.bf16.mxu0 %v9521_v14 }
0x1232   :  { %7106 = vmatpush1.bf16.msra.mxu1 %v8410_v46 }
0x1233   :  { %7132 = vmatprep.subr.bf16.mxu1 %v8209_v33  ;;  %7130 = vmatpush3.bf16.msra.mxu0 %v8319_v4 }
0x1234   :  { %7164 = vmatprep.subr.bf16.mxu0 %v8327_v37 }
0x1235   :  { %4394 = vmatmul.mubr.f32.vlgmr.msra.gmra.mrb[44].mxu1 %v4180_v57  ;;  %v9618_v57 = vld [vmem:[#allocation24_spill] sm:$0xff] }
0x1236   :  { %7134 = vmatpush1.bf16.msra.mxu1 %v8211_v15  ;;  %4585 = vmatprep.mubr.f32.mxu1 %v9481_v35 }
0x1237   :  { %7136 = vmatprep.subr.bf16.mxu1 %v8225_v36 }
0x123a   :  { %7138 = vmatpush1.bf16.msra.mxu1 %v8227_v40 }
0x123b   :  { %7140 = vmatprep.subr.bf16.mxu1 %v8241_v11 }
0x123e   :  { %7142 = vmatpush1.bf16.msra.mxu1 %v8243_v20 }
0x123f   :  { %7144 = vmatprep.subr.bf16.mxu1 %v8257_v51 }
0x1242   :  { %7146 = vmatpush1.bf16.msra.mxu1 %v8259_v55 }
0x1243   :  { %7148 = vmatprep.subr.bf16.mxu1 %v8273_v8 }
0x1246   :  { %7150 = vmatpush1.bf16.msra.mxu1 %v9522_v12 }
0x1247   :  { %7152 = vmatprep.subr.bf16.mxu1 %v9523_v30 }
0x124a   :  { %7154 = vmatpush1.bf16.msra.mxu1 %v9524_v1 }
0x124b   :  { %7156 = vmatprep.subr.bf16.mxu1 %v9615_v48 }
0x124e   :  { %7158 = vmatpush1.bf16.msra.mxu1 %v9616_v59 }
0x124f   :  { %7160 = vmatprep.subr.bf16.mxu1 %v9617_v16 }
0x1252   :  { %7162 = vmatpush1.bf16.msra.mxu1 %v9618_v57 }
0x1253   :  { %7195 = vmatprep.subr.bf16.mxu1 %v9521_v14 }
0x1258   :  { %v4144_v60 = vpop.permute.xlu1 %4143  ;;  %v4156_v63 = vpop.permute.xlu0 %4155 }
0x1259   :  { %v4147_v31 = vmul.f32 %v4144_v60, %v9622_v34  ;;  %v4146_v2 = vmul.f32 %v4144_v60, %v9533_v7  ;;  %v4159_v59 = vmul.f32 %v4156_v63, %v9544_v27 }
0x125b   :  { %v4151_v57 = vadd.f32 %v4147_v31, %v9139_v56  ;;  %v4150_v16 = vadd.f32 %v4146_v2, %v9141_v38  ;;  %v4149_v38 = vmul.f32 %v4144_v60, %v7889_v0  ;;  %v4160_v31 = vmul.f32 %v4156_v63, %v9536_v52 }
0x12e8   :  { %v4247_v9 = vpop.f32.mrb[42].mxu1  ;;  %v4324_v53 = vpop.f32.mrb[44].mxu0 }
0x12e9   :  { %v4248_v6 = vadd.f32 %v9619_v41, %v4247_v9  ;;  %v5609_v22 = vpop.f32.mrb[43].mxu1  ;;  %v4326_v43 = vpop.f32.mrb[45].mxu0  ;;  %v9623_v9 = vld [vmem:[#allocation15_spill] sm:$0xff] }
0x12ea   :  { %v4158_v41 = vmul.f32 %v4156_v63, %v9623_v9  ;;  %v9223_v22 = vadd.f32 %v4159_v59, %v4151_v57 }
0x12eb   :  { %4418 = vperm.xlu0 %7329, %v4248_v6   ;;  %4406 = vperm.xlu1 %7332, %v4248_v6   ;;  %v9215_v28 = vadd.f32 %v4248_v6, %v9620_v23  ;;  %v9624_v23 = vld [vmem:[#allocation13_spill] sm:$0xff] }
0x12ec   :  { %v9225_v48 = vadd.f32 %v4158_v41, %v4150_v16  ;;  %v4401_v6 = vadd.f32 %v4326_v43, %v9223_v22  ;;  %v4153_v16 = vadd.f32 %v4149_v38, %v9154_v42  ;;  %v9625_v41 = vld [vmem:[#allocation19_spill] sm:$0xff] }
0x12ed   :  { %9621 = vst [vmem:[#allocation18_spill] sm:$0xff] %v9215_v28  ;;  %v4148_v28 = vmul.f32 %v4144_v60, %v9624_v23  ;;  %v4161_v23 = vmul.f32 %v4156_v63, %v9625_v41 }
0x12ee   :  { %v4400_v34 = vadd.f32 %v4324_v53, %v9225_v48  ;;  %7503 = vtanh.f32 %v4401_v6 }
0x12ef   :  { %v4152_v56 = vadd.f32 %v4148_v28, %v9149_v45  ;;  %v9238_v53 = vadd.f32 %v4161_v23, %v4153_v16 }
0x12f0   :  { %7505 = vtanh.f32 %v4400_v34 }
0x12f1   :  { %v9233_v2 = vadd.f32 %v4160_v31, %v4152_v56 }
0x12f8   :  { %v7504_v9 = vpop.eup %7503 }
0x12f9   :  { %v4434_v45 = vmul.f32 0.5, %v7504_v9 }
0x12fa   :  { %v7506_v34 = vpop.eup %7505 }
0x12fb   :  { %v4433_v60 = vmul.f32 0.5, %v7506_v34  ;;  %v4437_v6 = vadd.f32 0.5, %v4434_v45  ;;  %v9634_v34 = vld [vmem:[#allocation16_spill] sm:$0xff]  ;;  %v9635_v45 = vld [vmem:[#allocation11_spill] sm:$0xff] }
0x12fd   :  { %v4436_v56 = vadd.f32 0.5, %v4433_v60  ;;  %v4439_v42 = vmul.f32 %v4437_v6, %v9158_v13  ;;  %v9632_v13 = vld [vmem:[#allocation20_spill] sm:$0xff] }
0x1308   :  { %v4395_v59 = vpop.f32.mrb[44].mxu1 }
0x1309   :  { %v4402_v57 = vadd.f32 %v4395_v59, %v9233_v2  ;;  %v4397_v43 = vpop.f32.mrb[45].mxu1 }
0x130a   :  { %v4403_v28 = vadd.f32 %v4397_v43, %v9238_v53  ;;  %v9633_v43 = vld [vmem:[#allocation12_spill] sm:$0xff] }
0x130b   :  { %7507 = vtanh.f32 %v4402_v57 }
0x130c   :  { %7509 = vtanh.f32 %v4403_v28 }
0x1315   :  { %v7508_v31 = vpop.eup %7507 }
0x1316   :  { %v4440_v38 = vmul.f32 %v7508_v31, %v4436_v56  ;;  %v7510_v63 = vpop.eup %7509  ;;  %v9636_v56 = vld [vmem:[#allocation17_spill] sm:$0xff]  ;;  %v9637_v31 = vld [vmem:[#allocation14_spill] sm:$0xff] }
0x1317   :  { %v4435_v57 = vmul.f32 0.5, %v7510_v63  ;;  %v9638_v63 = vld [vmem:[#allocation15_spill] sm:$0xff] }
0x1318   :  { %v9242_v59 = vadd.f32 %v4440_v38, %v4439_v42 }
0x1319   :  { %v4438_v23 = vadd.f32 0.5, %v4435_v57 }
0x131a   :  { %7511 = vtanh.f32 %v9242_v59 }
0x1324   :  { %v7512_v16 = vpop.eup %7511 }
0x1325   :  { %v4443_v41 = vmul.f32 %v7512_v16, %v4438_v23  ;;  %v9639_v16 = vld [vmem:[#allocation25_spill] sm:$0xff] }
0x1327   :  { %5643 = vmatmul.mubr.f32.vlgmr.msra.gmra.mrb[46].mxu0 %v4443_v41  ;;  %4586 = vmatmul.mubr.f32.vlgmr.msra.gmra.mrb[46].mxu1 %v4443_v41 }
0x1328   :  { %7166 = vmatpush1.bf16.msra.mxu0 %v8350_v25  ;;  %4656 = vmatprep.mubr.f32.mxu0 %v9481_v35 }
0x1329   :  { %7168 = vmatprep.subr.bf16.mxu0 %v8354_v47  ;;  %7197 = vmatpush3.bf16.msra.mxu1 %v8206_v26 }
0x132a   :  { %7198 = vmatprep.subr.bf16.mxu1 %v9521_v14  ;;  %5677 = vmatprep.mubr.msk.f32.mxu1 %vm7616_vm0, %v9481_v35 }
0x132c   :  { %7170 = vmatpush1.bf16.msra.mxu0 %v8359_v17 }
0x132d   :  { %7172 = vmatprep.subr.bf16.mxu0 %v8363_v21  ;;  %7200 = vmatpush3.bf16.msra.mxu1 %v8223_v19 }
0x132e   :  { %7201 = vmatprep.subr.bf16.mxu1 %v9521_v14 }
0x1330   :  { %7174 = vmatpush1.bf16.msra.mxu0 %v8370_v61 }
0x1331   :  { %7176 = vmatprep.subr.bf16.mxu0 %v8373_v62  ;;  %7203 = vmatpush3.bf16.msra.mxu1 %v8239_v58 }
0x1332   :  { %7204 = vmatprep.subr.bf16.mxu1 %v9521_v14 }
0x1334   :  { %7178 = vmatpush1.bf16.msra.mxu0 %v8378_v32 }
0x1335   :  { %7180 = vmatprep.subr.bf16.mxu0 %v8381_v54  ;;  %7206 = vmatpush3.bf16.msra.mxu1 %v8255_v39 }
0x1336   :  { %7207 = vmatprep.subr.bf16.mxu1 %v9521_v14 }
0x1338   :  { %7182 = vmatpush1.bf16.msra.mxu0 %v8386_v29 }
0x1339   :  { %7184 = vmatprep.subr.bf16.mxu0 %v8389_v50  ;;  %7209 = vmatpush3.bf16.msra.mxu1 %v8271_v49 }
0x133a   :  { %7210 = vmatprep.subr.bf16.mxu1 %v9521_v14 }
0x133c   :  { %7186 = vmatpush1.bf16.msra.mxu0 %v8394_v44 }
0x133d   :  { %7188 = vmatprep.subr.bf16.mxu0 %v8397_v10  ;;  %7212 = vmatpush3.bf16.msra.mxu1 %v8287_v5 }
0x133e   :  { %7213 = vmatprep.subr.bf16.mxu1 %v9521_v14 }
0x1340   :  { %7190 = vmatpush1.bf16.msra.mxu0 %v8402_v3 }
0x1341   :  { %7192 = vmatprep.subr.bf16.mxu0 %v8405_v24  ;;  %7215 = vmatpush3.bf16.msra.mxu1 %v8303_v18 }
0x1342   :  { %7216 = vmatprep.subr.bf16.mxu1 %v9521_v14 }
0x1344   :  { %7194 = vmatpush1.bf16.msra.mxu0 %v8410_v46 }
0x1345   :  { %7220 = vmatprep.subr.bf16.mxu0 %v8209_v33  ;;  %7218 = vmatpush3.bf16.msra.mxu1 %v8319_v4  ;;  %v9626_v33 = vld [vmem:[#allocation21_spill] sm:$0xff] }
0x1346   :  { %7252 = vmatprep.subr.bf16.mxu1 %v8327_v37 }
0x1347   :  { %4657 = vmatmul.mubr.f32.vlgmr.msra.gmra.mrb[48].mxu0 %v4443_v41 }
0x1348   :  { %7222 = vmatpush1.bf16.msra.mxu0 %v8211_v15  ;;  %4848 = vmatprep.mubr.f32.mxu0 %v9481_v35  ;;  %v9627_v15 = vld [vmem:[#allocation22_spill] sm:$0xff] }
0x1349   :  { %7224 = vmatprep.subr.bf16.mxu0 %v8225_v36  ;;  %v9628_v36 = vld [vmem:[#allocation23_spill] sm:$0xff] }
0x134c   :  { %7226 = vmatpush1.bf16.msra.mxu0 %v8227_v40  ;;  %v9629_v40 = vld [vmem:[#allocation24_spill] sm:$0xff] }
0x134d   :  { %7228 = vmatprep.subr.bf16.mxu0 %v8241_v11 }
0x1350   :  { %7230 = vmatpush1.bf16.msra.mxu0 %v8243_v20 }
0x1351   :  { %7232 = vmatprep.subr.bf16.mxu0 %v8257_v51  ;;  %v9300_v51 = vld [vmem:[%s9412_s6] ss:$0 sm:$0xff]  ;;  %s7619_s6 = smov 8  }
0x1354   :  { %7234 = vmatpush1.bf16.msra.mxu0 %v8259_v55 }
0x1355   :  { %7236 = vmatprep.subr.bf16.mxu0 %v8273_v8 }
0x1358   :  { %7238 = vmatpush1.bf16.msra.mxu0 %v9522_v12  ;;  %v9630_v12 = vld [vmem:[#allocation18_spill] sm:$0xff] }
0x1359   :  { %7240 = vmatprep.subr.bf16.mxu0 %v9523_v30 }
0x135c   :  { %7242 = vmatpush1.bf16.msra.mxu0 %v9524_v1  ;;  %v9631_v1 = vld [vmem:[#allocation26_spill] sm:$0xff] }
0x135d   :  { %7244 = vmatprep.subr.bf16.mxu0 %v9626_v33 }
0x1360   :  { %7246 = vmatpush1.bf16.msra.mxu0 %v9627_v15  ;;  %v9640_v15 = vld [vmem:[#allocation13_spill] sm:$0xff] }
0x1361   :  { %7248 = vmatprep.subr.bf16.mxu0 %v9628_v36 }
0x1364   :  { %7250 = vmatpush1.bf16.msra.mxu0 %v9629_v40 }
0x1365   :  { %7283 = vmatprep.subr.bf16.mxu0 %v9521_v14 }
0x136a   :  { %v4407_v9 = vpop.permute.xlu1 %4406  ;;  %v4419_v60 = vpop.permute.xlu0 %4418 }
0x136b   :  { %v4410_v41 = vmul.f32 %v4407_v9, %v9633_v43  ;;  %v4409_v28 = vmul.f32 %v4407_v9, %v9533_v7  ;;  %v4422_v38 = vmul.f32 %v4419_v60, %v9544_v27  ;;  %v4421_v57 = vmul.f32 %v4419_v60, %v9638_v63 }
0x136c   :  { %v4411_v36 = vmul.f32 %v4407_v9, %v9640_v15 }
0x136d   :  { %v4414_v6 = vadd.f32 %v4410_v41, %v9223_v22  ;;  %v4413_v42 = vadd.f32 %v4409_v28, %v9225_v48 }
0x136e   :  { %v4415_v40 = vadd.f32 %v4411_v36, %v9233_v2 }
0x136f   :  { %v9318_v23 = vadd.f32 %v4422_v38, %v4414_v6  ;;  %v9322_v22 = vadd.f32 %v4421_v57, %v4413_v42 }
0x13fa   :  { %v4510_v11 = vpop.f32.mrb[46].mxu0  ;;  %v4587_v20 = vpop.f32.mrb[46].mxu1 }
0x13fb   :  { %v4511_v55 = vadd.f32 %v9300_v51, %v4510_v11  ;;  %v5644_v8 = vpop.f32.mrb[47].mxu0  ;;  %v4589_v37 = vpop.f32.mrb[47].mxu1  ;;  %v4663_v48 = vadd.f32 %v4587_v20, %v9322_v22  ;;  %v4412_v11 = vmul.f32 %v4407_v9, %v7889_v0  ;;  %v9641_v20 = vld [vmem:[#allocation19_spill] sm:$0xff] }
0x13fc   :  { %v4664_v33 = vadd.f32 %v4589_v37, %v9318_v23  ;;  %v4424_v41 = vmul.f32 %v4419_v60, %v9641_v20 }
0x13fd   :  { %4681 = vperm.xlu0 %7329, %v4511_v55   ;;  %4669 = vperm.xlu1 %7332, %v4511_v55   ;;  %v9304_v30 = vadd.f32 %v4511_v55, %v9630_v12  ;;  %v4423_v55 = vmul.f32 %v4419_v60, %v9536_v52  ;;  %v4416_v37 = vadd.f32 %v4412_v11, %v9238_v53 }
0x13fe   :  { %7513 = vtanh.f32 %v4664_v33 }
0x13ff   :  { %7515 = vtanh.f32 %v4663_v48  ;;  %v9331_v8 = vadd.f32 %v4423_v55, %v4415_v40 }
0x1401   :  { %2675 = vrot.lane.b32.xlu0 %v9631_v1, %s7617_s29  ;;  %2412 = vrot.lane.b32.xlu1 %v9632_v13, %s7618_s30 }
0x1405   :  { %3201 = vrot.lane.b32.xlu0 %v9634_v34, %s7619_s6  ;;  %2938 = vrot.lane.b32.xlu1 %v9635_v45, %s7620_s8  ;;  %v9336_v45 = vadd.f32 %v4424_v41, %v4416_v37 }
0x1408   :  { %v7514_v34 = vpop.eup %7513 }
0x1409   :  { %3727 = vrot.lane.b32.xlu0 %v9636_v56, %s7621_s9  ;;  %3464 = vrot.lane.b32.xlu1 %v9637_v31, %s7622_s10  ;;  %v7516_v28 = vpop.eup %7515  ;;  %v4697_v2 = vmul.f32 0.5, %v7514_v34 }
0x140a   :  { %v4696_v6 = vmul.f32 0.5, %v7516_v28 }
0x140b   :  { %v4700_v56 = vadd.f32 0.5, %v4697_v2 }
0x140c   :  { %v4699_v31 = vadd.f32 0.5, %v4696_v6 }
0x140d   :  { %4253 = vrot.lane.b32.xlu0 %v9630_v12, %s7623_s11  ;;  %3990 = vrot.lane.b32.xlu1 %v9639_v16, %s7624_s12  ;;  %v4702_v53 = vmul.f32 %v4700_v56, %v9242_v59 }
0x1411   :  { %4516 = vrot.lane.b32.xlu1 %v9304_v30, %s7625_s13 }
0x141a   :  { %v4658_v12 = vpop.f32.mrb[48].mxu0 }
0x141b   :  { %v4665_v1 = vadd.f32 %v4658_v12, %v9331_v8  ;;  %v4660_v13 = vpop.f32.mrb[49].mxu0 }
0x141c   :  { %v4666_v9 = vadd.f32 %v4660_v13, %v9336_v45 }
0x141d   :  { %7517 = vtanh.f32 %v4665_v1 }
0x141e   :  { %7519 = vtanh.f32 %v4666_v9 }
0x1427   :  { %v7518_v42 = vpop.eup %7517 }
0x1428   :  { %v4703_v38 = vmul.f32 %v7518_v42, %v4699_v31  ;;  %v7520_v60 = vpop.eup %7519 }
0x1429   :  { %v4698_v16 = vmul.f32 0.5, %v7520_v60 }
0x142a   :  { %v9340_v57 = vadd.f32 %v4703_v38, %v4702_v53 }
0x142b   :  { %v4701_v33 = vadd.f32 0.5, %v4698_v16 }
0x142c   :  { %7521 = vtanh.f32 %v9340_v57 }
0x1436   :  { %v7522_v36 = vpop.eup %7521 }
0x1437   :  { %v4706_v48 = vmul.f32 %v7522_v36, %v4701_v33 }
0x1439   :  { %5678 = vmatmul.mubr.f32.vlgmr.msra.gmra.mrb[48].mxu1 %v4706_v48  ;;  %4849 = vmatmul.mubr.f32.vlgmr.msra.gmra.mrb[50].mxu0 %v4706_v48 }
0x143a   :  { %7254 = vmatpush1.bf16.msra.mxu1 %v8350_v25  ;;  %4919 = vmatprep.mubr.f32.mxu1 %v9481_v35 }
0x143b   :  { %7256 = vmatprep.subr.bf16.mxu1 %v8354_v47  ;;  %7285 = vmatpush3.bf16.msra.mxu0 %v8206_v26 }
0x143c   :  { %7286 = vmatprep.subr.bf16.mxu0 %v9521_v14  ;;  %5712 = vmatprep.mubr.msk.f32.mxu0 %vm7616_vm0, %v9481_v35 }
0x143e   :  { %7258 = vmatpush1.bf16.msra.mxu1 %v8359_v17 }
0x143f   :  { %7260 = vmatprep.subr.bf16.mxu1 %v8363_v21  ;;  %7288 = vmatpush3.bf16.msra.mxu0 %v8223_v19 }
0x1440   :  { %7289 = vmatprep.subr.bf16.mxu0 %v9521_v14 }
0x1442   :  { %7262 = vmatpush1.bf16.msra.mxu1 %v8370_v61 }
0x1443   :  { %7264 = vmatprep.subr.bf16.mxu1 %v8373_v62  ;;  %7291 = vmatpush3.bf16.msra.mxu0 %v8239_v58 }
0x1444   :  { %7292 = vmatprep.subr.bf16.mxu0 %v9521_v14 }
0x1446   :  { %7266 = vmatpush1.bf16.msra.mxu1 %v8378_v32 }
0x1447   :  { %7268 = vmatprep.subr.bf16.mxu1 %v8381_v54  ;;  %7294 = vmatpush3.bf16.msra.mxu0 %v8255_v39 }
0x1448   :  { %7295 = vmatprep.subr.bf16.mxu0 %v9521_v14 }
0x144a   :  { %7270 = vmatpush1.bf16.msra.mxu1 %v8386_v29 }
0x144b   :  { %7272 = vmatprep.subr.bf16.mxu1 %v8389_v50  ;;  %7297 = vmatpush3.bf16.msra.mxu0 %v8271_v49 }
0x144c   :  { %7298 = vmatprep.subr.bf16.mxu0 %v9521_v14 }
0x144e   :  { %7274 = vmatpush1.bf16.msra.mxu1 %v8394_v44 }
0x144f   :  { %7276 = vmatprep.subr.bf16.mxu1 %v8397_v10  ;;  %7300 = vmatpush3.bf16.msra.mxu0 %v8287_v5 }
0x1450   :  { %7301 = vmatprep.subr.bf16.mxu0 %v9521_v14 }
0x1452   :  { %7278 = vmatpush1.bf16.msra.mxu1 %v8402_v3 }
0x1453   :  { %7280 = vmatprep.subr.bf16.mxu1 %v8405_v24  ;;  %7303 = vmatpush3.bf16.msra.mxu0 %v8303_v18 }
0x1454   :  { %7304 = vmatprep.subr.bf16.mxu0 %v9521_v14 }
0x1456   :  { %7282 = vmatpush1.bf16.msra.mxu1 %v8410_v46 }
0x1457   :  { %7306 = vmatpush3.bf16.msra.mxu0 %v8319_v4 }
0x1459   :  { %4920 = vmatmul.mubr.f32.vlgmr.msra.gmra.mrb[50].mxu1 %v4706_v48 }
0x147c   :  { %v4682_v35 = vpop.permute.xlu0 %4681  ;;  %v4670_v26 = vpop.permute.xlu1 %4669 }
0x147d   :  { %v4672_v19 = vmul.f32 %v4670_v26, %v9533_v7  ;;  %v4673_v58 = vmul.f32 %v4670_v26, %v9633_v43  ;;  %v4674_v39 = vmul.f32 %v4670_v26, %v9640_v15  ;;  %v4675_v49 = vmul.f32 %v4670_v26, %v7889_v0 }
0x147e   :  { %v4684_v5 = vmul.f32 %v4682_v35, %v9638_v63  ;;  %v4685_v18 = vmul.f32 %v4682_v35, %v9544_v27  ;;  %v4686_v25 = vmul.f32 %v4682_v35, %v9536_v52  ;;  %v4687_v4 = vmul.f32 %v4682_v35, %v9641_v20 }
0x147f   :  { %v4676_v47 = vadd.f32 %v4672_v19, %v9322_v22  ;;  %v4677_v17 = vadd.f32 %v4673_v58, %v9318_v23  ;;  %v4678_v21 = vadd.f32 %v4674_v39, %v9331_v8  ;;  %v4679_v61 = vadd.f32 %v4675_v49, %v9336_v45 }
0x1480   :  { %v2676_v62 = vpop.permute.xlu0 %2675  ;;  %v2413_v32 = vpop.permute.xlu1 %2412 }
0x1481   :  { %2416 = vst.msk [vmem:[#allocation7] sm:$0xff] %vm2415_vm2, %v2413_v32  ;;  %v4688_v0 = vadd.f32 %v4684_v5, %v4676_v47  ;;  %v4689_v54 = vadd.f32 %v4685_v18, %v4677_v17  ;;  %v4690_v29 = vadd.f32 %v4686_v25, %v4678_v21  ;;  %v4691_v50 = vadd.f32 %v4687_v4, %v4679_v61 }
0x1482   :  { %2679 = vst.msk [vmem:[#allocation7] sm:$0xff] %vm2678_vm3, %v2676_v62 }
0x1484   :  { %v3202_v44 = vpop.permute.xlu0 %3201  ;;  %v2939_v10 = vpop.permute.xlu1 %2938 }
0x1485   :  { %2942 = vst.msk [vmem:[#allocation7] sm:$0xff] %vm2941_vm4, %v2939_v10 }
0x1486   :  { %3205 = vst.msk [vmem:[#allocation7] sm:$0xff] %vm3204_vm5, %v3202_v44 }
0x1488   :  { %v3728_v3 = vpop.permute.xlu0 %3727  ;;  %v3465_v24 = vpop.permute.xlu1 %3464 }
0x1489   :  { %3468 = vst.msk [vmem:[#allocation7] sm:$0xff] %vm3467_vm6, %v3465_v24 }
0x148a   :  { %3731 = vst.msk [vmem:[#allocation7] sm:$0xff] %vm3730_vm7, %v3728_v3 }
0x148c   :  { %v4254_v46 = vpop.permute.xlu0 %4253  ;;  %v3991_v14 = vpop.permute.xlu1 %3990 }
0x148d   :  { %3994 = vst.msk [vmem:[#allocation7] sm:$0xff] %vm3993_vm8, %v3991_v14 }
0x148e   :  { %4257 = vst.msk [vmem:[#allocation7] sm:$0xff] %vm4256_vm9, %v4254_v46 }
0x1490   :  { %v4517_v7 = vpop.permute.xlu1 %4516 }
0x1491   :  { %4520 = vst.msk [vmem:[#allocation7] sm:$0xff] %vm4519_vm10, %v4517_v7 }
0x150c   :  { %v4773_v52 = vpop.f32.mrb[48].mxu1  ;;  %v4850_v27 = vpop.f32.mrb[50].mxu0 }
0x150d   :  { %v4774_v59 = vadd.f32 %v9300_v51, %v4773_v52  ;;  %v4926_v43 = vadd.f32 %v4850_v27, %v4688_v0  ;;  %v5679_v63 = vpop.f32.mrb[49].mxu1  ;;  %v4852_v23 = vpop.f32.mrb[51].mxu0 }
0x150e   :  { %v4927_v22 = vadd.f32 %v4852_v23, %v4689_v54 }
0x150f   :  { %v4777_v15 = vadd.f32 %v4774_v59, %v9304_v30 }
0x1510   :  { %7523 = vtanh.f32 %v4927_v22 }
0x1511   :  { %4779 = vrot.lane.b32.xlu0 %v4777_v15, %s7626_s14  ;;  %7525 = vtanh.f32 %v4926_v43 }
0x151a   :  { %v7524_v12 = vpop.eup %7523 }
0x151b   :  { %v7526_v37 = vpop.eup %7525  ;;  %v4935_v1 = vmul.f32 0.5, %v7524_v12 }
0x151c   :  { %v4934_v13 = vmul.f32 0.5, %v7526_v37 }
0x151d   :  { %v4938_v20 = vadd.f32 0.5, %v4935_v1 }
0x151e   :  { %v4937_v41 = vadd.f32 0.5, %v4934_v13 }
0x151f   :  { %v4940_v45 = vmul.f32 %v4938_v20, %v9340_v57 }
0x152c   :  { %v4921_v40 = vpop.f32.mrb[50].mxu1 }
0x152d   :  { %v4928_v11 = vadd.f32 %v4921_v40, %v4690_v29  ;;  %v4923_v55 = vpop.f32.mrb[51].mxu1 }
0x152e   :  { %v4929_v8 = vadd.f32 %v4923_v55, %v4691_v50 }
0x152f   :  { %7527 = vtanh.f32 %v4928_v11 }
0x1530   :  { %7529 = vtanh.f32 %v4929_v8 }
0x1539   :  { %v7528_v34 = vpop.eup %7527 }
0x153a   :  { %v4941_v30 = vmul.f32 %v7528_v34, %v4937_v41  ;;  %v7530_v2 = vpop.eup %7529 }
0x153b   :  { %v4936_v9 = vmul.f32 0.5, %v7530_v2 }
0x153c   :  { %v4942_v28 = vadd.f32 %v4941_v30, %v4940_v45 }
0x153d   :  { %v4939_v6 = vadd.f32 0.5, %v4936_v9 }
0x153e   :  { %7531 = vtanh.f32 %v4942_v28 }
0x1548   :  { %v7532_v56 = vpop.eup %7531 }
0x1549   :  { %v4944_v31 = vmul.f32 %v7532_v56, %v4939_v6 }
0x154b   :  { %5713 = vmatmul.mubr.f32.vlgmr.msra.gmra.mrb[52].mxu0 %v4944_v31 }
0x1583   :  { %v4780_v42 = vpop.permute.xlu0 %4779 }
0x1584   :  { %4783 = vst.msk [vmem:[#allocation7] sm:$0xff] %vm4782_vm11, %v4780_v42 }
0x161e   :  { %v5011_v53 = vpop.f32.mrb[52].mxu0 }
0x161f   :  { %v5012_v38 = vadd.f32 %v9300_v51, %v5011_v53  ;;  %v5714_v60 = vpop.f32.mrb[53].mxu0 }
0x1621   :  { %v5015_v16 = vadd.f32 %v5012_v38, %v4777_v15 }
0x1623   :  { %5017 = vrot.lane.b32.xlu1 %v5015_v16, %s7627_s15 }
0x1695   :  { %v5018_v57 = vpop.permute.xlu1 %5017 }
0x1696   :  { %5021 = vst.msk [vmem:[#allocation7] sm:$0xff] %vm5020_vm12, %v5018_v57 }
0x1697   :  { %7591 = shalt.err (!%p7588_p6)
}
0x1698   :  { %s7592_s21 = scalar_lea.hbm %s9413_s7, 128 }
0x1699   :  { %p7593_p7 = scmp.ne.s32.totalorder %s9413_s7, %s7592_s21  ;;  %p7596_p8 = scmp.lt.u32.totalorder %s7592_s21, %s9413_s7 }
0x169b   :  { %p7598_p9 = pnand %p7596_p8, %p7593_p7 }
0x169d   :  { %7601 = shalt.err (!%p7598_p9)
}
0x169e   :  { %5031 = dma.vmem_to_hbm [thread:$0]  %s5029_s17, 128, %s9413_s7, [#allocation4]  }
0x169f   :  { %7606 = dma.done.wait [#allocation4], 128  }
0x16a0   :  { %7607 = vsyncadd [#allocation4], 4294967168 }
0x16a1   :  { %5035 = vsyncpa [#allocation3], 1 }
0x16a2   :  { %5036 = vsyncpa [#allocation6], 1 }
0x16a3   :  { %5037 = vsyncpa [#allocation4], 1 }

</bundles_post_ra>
